<compile_context>
chip_gen: v7x
topology: tpu7x:2x2x1
jax: 0.10.0
libtpu: 0.0.40
codegen_flags: <defaults>
</compile_context>

<pallas_src>
import jax
import jax.numpy as jnp
from jax.experimental import pallas as pl
from jax.experimental.pallas import tpu as pltpu


def _round_up(x, m):
    return ((x + m - 1) // m) * m


_PIXEL_TILE = 1024          # pixels per grid step (multiple of 256)
_V_PAD_PALLAS_LIMIT = 2048  # largest padded voxel table handled by the one-hot kernel


# ----------------------------------------------------------------------------
# Pallas kernel: masked feature gather for one pixel tile.  The feature table is
# VMEM-resident across all grid steps; one grid axis (pixel tiles, parallel).
# ----------------------------------------------------------------------------
def _gather_kernel(idx_ref, feat_ref, out_ref, cnt_ref):
    # idx_ref : (TP, 1)        int32  sanitized voxel index per pixel (-1 = miss/pad)
    # feat_ref: (V_pad, C_pad) f32    full feature table, resident (index_map (0,0))
    # out_ref : (TP, C_pad)    f32    gathered features (0 where idx < 0)
    # cnt_ref : (1, 8, V_pad)  f32    per-tile voxel->pixel counts (rows replicated)
    tp = idx_ref.shape[0]
    v_pad = feat_ref.shape[0]

    idx = idx_ref[...]                                                # (TP, 1)
    vox_id = jax.lax.broadcasted_iota(jnp.int32, (tp, v_pad), 1)      # grid-invariant
    onehot = (jnp.broadcast_to(idx, (tp, v_pad)) == vox_id).astype(jnp.float32)

    # Stream TP one-hot rows through the small stationary (V_pad, C_pad) slab.
    # Exact gather: each row selects exactly one feature row (or none).
    out_ref[...] = jnp.dot(onehot, feat_ref[...],
                           preferred_element_type=jnp.float32)

    # Per-voxel pixel counts for this tile (exact in f32: counts << 2^24).
    cnt = jnp.sum(onehot, axis=0, keepdims=True)                      # (1, V_pad)
    cnt_ref[0, :, :] = jnp.broadcast_to(cnt, (8, v_pad))


def _project_features_pallas(idx_clean, features_3d, tp, v_pad):
    v, c = features_3d.shape
    p = idx_clean.shape[0]
    c_pad = _round_up(c, 8)
    p_pad = _round_up(max(p, 1), tp)
    n_tiles = p_pad // tp

    # Pads fuse into the surrounding jit; padded pixels are -1 (never match),
    # padded voxel rows are zero and never referenced.
    idx2 = jnp.full((p_pad, 1), -1, jnp.int32).at[:p, 0].set(idx_clean)
    feat = jnp.zeros((v_pad, c_pad), jnp.float32).at[:v, :c].set(features_3d)

    out, cnt_part = pl.pallas_call(
        _gather_kernel,
        out_shape=(
            jax.ShapeDtypeStruct((p_pad, c_pad), jnp.float32),
            jax.ShapeDtypeStruct((n_tiles, 8, v_pad), jnp.float32),
        ),
        grid_spec=pltpu.PrefetchScalarGridSpec(
            num_scalar_prefetch=0,
            grid=(n_tiles,),
            in_specs=[
                pl.BlockSpec((tp, 1), lambda i: (i, 0)),            # pixel indices
                pl.BlockSpec((v_pad, c_pad), lambda i: (0, 0)),     # resident table
            ],
            out_specs=(
                pl.BlockSpec((tp, c_pad), lambda i: (i, 0)),        # gathered feats
                pl.BlockSpec((1, 8, v_pad), lambda i: (i, 0, 0)),   # count partials
            ),
        ),
        compiler_params=pltpu.CompilerParams(
            dimension_semantics=("parallel",),       # pixel tiles are independent
            vmem_limit_bytes=48 * 1024 * 1024,       # headroom for the one-hot plane
        ),
    )(idx2, feat)

    projected = out[:p, :c]                                           # already (P, C)
    cnt = cnt_part[:, 0, :].sum(axis=0)[:v].astype(jnp.int32)
    return projected, cnt


def project_features(idx_flat, features_3d, ignore_label):
    """projected[p] = features_3d[idx[p]] (0 when no hit) + per-voxel pixel counts."""
    features_3d = features_3d.astype(jnp.float32)
    v, c = features_3d.shape
    p = idx_flat.shape[0]
    assert p < 2**31 and v < 2**31, "int32 index path requires P, V < 2^31"

    idxi = idx_flat.astype(jnp.int32)
    # Sanitize indices: anything that is not a valid voxel row becomes -1, so the
    # kernel's "negative never matches" masking holds for any ignore_label sign.
    valid = (idxi != ignore_label) & (idxi >= 0) & (idxi < v)
    idx_clean = jnp.where(valid, idxi, -1)

    v_pad = _round_up(v, 128)
    if v_pad <= _V_PAD_PALLAS_LIMIT:
        return _project_features_pallas(idx_clean, features_3d, _PIXEL_TILE, v_pad)

    # Large voxel tables: the one-hot form would be O(P*V*C) fake FLOPs, so use the
    # XLA masked row gather (O(P*C) HBM traffic) recommended by the perf review.
    safe = jnp.where(valid, idxi, 0)
    projected = jnp.where(valid[:, None], jnp.take(features_3d, safe, axis=0), 0.0)
    cnt = jnp.zeros((v,), jnp.int32).at[safe].add(valid.astype(jnp.int32))
    return projected, cnt


# ----------------------------------------------------------------------------
# Plain-JAX ray marcher (approximates raycast_cuda.raycast_features).
# lax.scan over depth steps carrying the first hit: no (H, W, S) intermediates.
# ----------------------------------------------------------------------------
def raycast_indexes(occ_dense, local_views, intrinsic_params, height, width,
                    depth_min, depth_max, ray_increment, dims3d, ignore_label):
    """occ_dense: (B, Z, Y, X) int32 (-1 == empty); returns (B, n_views, H, W) int32."""
    fx, fy = intrinsic_params[0], intrinsic_params[1]
    cx, cy = intrinsic_params[2], intrinsic_params[3]
    dim_x, dim_y, dim_z = dims3d
    b, nv = local_views.shape[0], local_views.shape[1]
    n_steps = int((depth_max - depth_min) // ray_increment) + 1

    ys, xs = jnp.meshgrid(jnp.arange(height, dtype=jnp.float32),
                          jnp.arange(width, dtype=jnp.float32), indexing="ij")
    dirs = jnp.stack([(xs - cx) / fx, (ys - cy) / fy, jnp.ones_like(xs)], axis=-1)

    rot = local_views[:, :, :3, :3]                                   # (B,nv,3,3)
    trans = local_views[:, :, :3, 3]                                  # (B,nv,3)
    # World-space ray direction per pixel, computed once and reused every step.
    dirs_w = jnp.einsum("hwc,bvdc->bvhwd", dirs, rot)                 # (B,nv,H,W,3)
    origin = trans[:, :, None, None, :]                               # (B,nv,1,1,3)

    occ_flat = occ_dense.reshape(-1)
    cells_per_batch = dim_z * dim_y * dim_x
    batch_base = (jnp.arange(b, dtype=jnp.int32) * cells_per_batch)[:, None, None, None]

    ts = depth_min + ray_increment * jnp.arange(n_steps, dtype=jnp.float32)

    def step(carry, t):
        hit_idx, found = carry
        pts = dirs_w * t + origin                                     # (B,nv,H,W,3)
        vox = jnp.floor(pts).astype(jnp.int32)
        vx, vy, vz = vox[..., 0], vox[..., 1], vox[..., 2]
        inside = ((vx >= 0) & (vx < dim_x) & (vy >= 0) & (vy < dim_y)
                  & (vz >= 0) & (vz < dim_z))
        flat = ((jnp.clip(vz, 0, dim_z - 1) * dim_y + jnp.clip(vy, 0, dim_y - 1))
                * dim_x + jnp.clip(vx, 0, dim_x - 1))
        occ = jnp.take(occ_flat, batch_base + flat)                   # (B,nv,H,W)
        occ = jnp.where(inside, occ, -1)
        new_hit = jnp.logical_and(jnp.logical_not(found), occ >= 0)
        hit_idx = jnp.where(new_hit, occ, hit_idx)
        return (hit_idx, jnp.logical_or(found, new_hit)), None

    init = (jnp.full((b, nv, height, width), ignore_label, dtype=jnp.int32),
            jnp.zeros((b, nv, height, width), dtype=jnp.bool_))
    (hit_idx, _), _ = jax.lax.scan(step, init, ts)
    return hit_idx


# ----------------------------------------------------------------------------
# Module wrapper (mirrors RaycastFeatures.forward), fully jitted.
# ----------------------------------------------------------------------------
class RaycastFeaturesJAX:
    def __init__(self, dims3d, width, height, voxel_size, ignore_label,
                 depth_min=0.1, depth_max=4.0):
        self.dims3d = dims3d                      # (X, Y, Z)
        self.width = width
        self.height = height
        self.voxel_size = voxel_size
        self.ray_increment = voxel_size / 2.0
        self.depth_min = depth_min / voxel_size
        self.depth_max = depth_max / voxel_size
        self.ignore_label = ignore_label
        assert ignore_label < 0, "masking assumes a negative ignore_label"
        self._forward = jax.jit(self._forward_impl)

    def _forward_impl(self, coords, features_3d, view_matrix, intrinsic_params):
        # coords: (N, 4) int [batch, x, y, z]; features_3d: (N, C) f32
        # view_matrix: (B, n_views, 4, 4) cam->world; intrinsic_params: (4,) fx fy cx cy
        batch_size = view_matrix.shape[0]          # static -> no host sync
        voxel_num = coords.shape[0]
        coords = coords.astype(jnp.int32)
        b_ids = coords[:, 0]

        # Per-batch coordinate shift: segment-min via scatter-min (no Python loop).
        int_max = jnp.iinfo(jnp.int32).max
        shifts = jnp.full((batch_size, 3), int_max, jnp.int32).at[b_ids].min(coords[:, 1:])
        shifts = jnp.where(shifts == int_max, 0, shifts)
        xyz = coords[:, 1:] - shifts[b_ids]
        local_views = view_matrix.astype(jnp.float32).at[:, :, :3, 3].add(
            -shifts.astype(jnp.float32)[:, None, :])

        # Dense occupancy/index grid, layout (B, Z, Y, X) like the permuted dense().
        dim_x, dim_y, dim_z = self.dims3d
        occ3d = jnp.full((batch_size, dim_z, dim_y, dim_x), -1, dtype=jnp.int32)
        occ3d = occ3d.at[b_ids, xyz[:, 2], xyz[:, 1], xyz[:, 0]].set(
            jnp.arange(voxel_num, dtype=jnp.int32))

        indexes_image = raycast_indexes(
            occ3d, local_views, intrinsic_params, self.height, self.width,
            self.depth_min, self.depth_max, self.ray_increment,
            self.dims3d, self.ignore_label)

        projected_features, mapping3dto2d_num = project_features(
            indexes_image.reshape(-1), features_3d, self.ignore_label)
        return projected_features, indexes_image, mapping3dto2d_num

    def __call__(self, coords, features_3d, view_matrix, intrinsic_params):
        return self._forward(coords, features_3d, view_matrix, intrinsic_params)


# ----------------------------------------------------------------------------
# Demo / correctness check
# ----------------------------------------------------------------------------
if __name__ == "__main__":
    key = jax.random.PRNGKey(0)
    B, n_views, H, W = 2, 1, 16, 16
    dims3d = (16, 16, 16)            # (X, Y, Z)
    voxel_size = 1.0
    C = 32
    ignore_label = -100
    n_random_per_batch = 64

    # deterministic sparse voxel set per batch (unique cells + a small slab in
    # front of the camera so some rays actually hit)
    coords_list = []
    for b in range(B):
        kb = jax.random.fold_in(key, b)
        flat = jax.random.choice(kb, dims3d[0] * dims3d[1] * dims3d[2],
                                 shape=(n_random_per_batch,), replace=False)
        x = (flat % dims3d[0]).astype(jnp.int32)
        y = ((flat // dims3d[0]) % dims3d[1]).astype(jnp.int32)
        z = (flat // (dims3d[0] * dims3d[1])).astype(jnp.int32)
        rnd = jnp.stack([jnp.full_like(x, b), x, y, z], axis=1)
        planted = jnp.array([[b, px, py, pz]
                             for px in (7, 8) for py in (7, 8) for pz in (1, 2)],
                            dtype=jnp.int32)
        coords_list.append(jnp.concatenate([rnd, planted], axis=0))
    coords = jnp.concatenate(coords_list, axis=0).astype(jnp.int32)
    voxel_num = coords.shape[0]

    kf = jax.random.fold_in(key, 1234)
    features_3d = jax.random.normal(kf, (voxel_num, C), dtype=jnp.float32)

    # camera-to-world views: identity rotation, camera centered at (8, 8, 0) looking +z
    view = jnp.eye(4, dtype=jnp.float32).at[:3, 3].set(jnp.array([8.0, 8.0, 0.0]))
    view_matrix = jnp.broadcast_to(view, (B, n_views, 4, 4))
    intrinsic_params = jnp.array([16.0, 16.0, 8.0, 8.0], dtype=jnp.float32)  # fx fy cx cy

    model = RaycastFeaturesJAX(dims3d, W, H, voxel_size, ignore_label)
    projected, indexes_image, mapping_num = model(
        coords, features_3d, view_matrix, intrinsic_params)
    jax.block_until_ready((projected, indexes_image, mapping_num))

    # reference check for the Pallas hot path (masked gather) + counts
    flat = indexes_image.reshape(-1)
    matched = flat != ignore_label
    ref = jnp.where(matched[:, None],
                    features_3d[jnp.clip(flat, 0, voxel_num - 1)], 0.0)
    ref_cnt = jnp.sum(flat[:, None] == jnp.arange(voxel_num)[None, :],
                      axis=0).astype(jnp.int32)
    assert projected.shape == (B * n_views * H * W, C)
    assert bool(jnp.allclose(projected, ref, atol=1e-5))
    assert mapping_num.shape == (voxel_num,)
    assert bool(jnp.array_equal(mapping_num, ref_cnt))
    assert int(mapping_num.sum()) == int(jnp.sum(matched))

    print("KERNEL_OK")
</pallas_src>

<mosaic_0001>
module attributes {stable_mosaic.version = 11 : i64} {
  func.func @_gather_kernel(%arg0: i32, %arg1: memref<1024x1xi32, #tpu.memory_space<vmem>>, %arg2: memref<256x32xf32, #tpu.memory_space<vmem>>, %arg3: memref<1024x32xf32, #tpu.memory_space<vmem>>, %arg4: memref<1x8x256xf32, #tpu.memory_space<vmem>>) attributes {dimension_semantics = [#tpu.dimension_semantics<parallel>], iteration_bounds = array<i64: 1>, scalar_prefetch = 0 : i64, scratch_operands = 0 : i64, tpu.core_type = #tpu.core_type<tc>, window_params = [{transform_indices = @transform_0, window_bounds = array<i64: 1024, 1>}, {pipeline_mode = #tpu.pipeline_mode<synchronous>, transform_indices = @transform_1, window_bounds = array<i64: 256, 32>}, {transform_indices = @transform_2, window_bounds = array<i64: 1024, 32>}, {transform_indices = @transform_3, window_bounds = array<i64: 1, 8, 256>}]} {
    %c0 = arith.constant 0 : index
    %c0_0 = arith.constant 0 : index
    %0 = vector.load %arg1[%c0, %c0_0] : memref<1024x1xi32, #tpu.memory_space<vmem>>, vector<1024x1xi32>
    %1 = tpu.iota {dimensions = array<i32: 1>} : vector<1024x256xi32>
    %2 = vector.shape_cast %0 : vector<1024x1xi32> to vector<1024x1xi32>
    %3 = vector.broadcast %2 : vector<1024x1xi32> to vector<1024x256xi32>
    %4 = arith.cmpi eq, %3, %1 : vector<1024x256xi32>
    %5 = arith.extui %4 : vector<1024x256xi1> to vector<1024x256xi32>
    %6 = arith.sitofp %5 : vector<1024x256xi32> to vector<1024x256xf32>
    %c0_1 = arith.constant 0 : index
    %c0_2 = arith.constant 0 : index
    %7 = vector.load %arg2[%c0_1, %c0_2] : memref<256x32xf32, #tpu.memory_space<vmem>>, vector<256x32xf32>
    %cst = arith.constant dense<0.000000e+00> : vector<1024x32xf32>
    %8 = tpu.matmul %6, %7, %cst {dimension_numbers = #tpu.dot_dimension_numbers<[1], [0], [0], [1], [0, 0, 1, 1], [], []>} : vector<1024x256xf32>, vector<256x32xf32>, vector<1024x32xf32> -> vector<1024x32xf32>
    %c0_3 = arith.constant 0 : index
    %c0_4 = arith.constant 0 : index
    %9 = vector.load %arg3[%c0_3, %c0_4] : memref<1024x32xf32, #tpu.memory_space<vmem>>, vector<1024x32xf32>
    tpu.vector_store %arg3[%c0_3, %c0_4], %8 {strides = array<i32>} : memref<1024x32xf32, #tpu.memory_space<vmem>>, vector<1024x32xf32>,
    %cst_5 = arith.constant dense<0.000000e+00> : vector<256xf32>
    %10 = vector.multi_reduction <add>, %6, %cst_5 [0] : vector<1024x256xf32> to vector<256xf32>
    %11 = vector.shape_cast %10 : vector<256xf32> to vector<1x256xf32>
    %12 = vector.shape_cast %11 : vector<1x256xf32> to vector<1x256xf32>
    %13 = vector.broadcast %12 : vector<1x256xf32> to vector<8x256xf32>
    %c0_6 = arith.constant 0 : index
    %c0_7 = arith.constant 0 : index
    %c0_8 = arith.constant 0 : index
    %14 = vector.load %arg4[%c0_6, %c0_7, %c0_8] : memref<1x8x256xf32, #tpu.memory_space<vmem>>, vector<1x8x256xf32>
    %15 = vector.shape_cast %14 : vector<1x8x256xf32> to vector<8x256xf32>
    %16 = vector.shape_cast %13 : vector<8x256xf32> to vector<1x8x256xf32>
    tpu.vector_store %arg4[%c0_6, %c0_7, %c0_8], %16 {strides = array<i32>} : memref<1x8x256xf32, #tpu.memory_space<vmem>>, vector<1x8x256xf32>,
    return
  }
  func.func @transform_0(%arg0: i32) -> (i32, i32) {
    %c0_i32 = arith.constant 0 : i32
    %c0_i32_0 = arith.constant 0 : i32
    return %arg0, %c0_i32 : i32, i32
  }
  func.func @transform_1(%arg0: i32) -> (i32, i32) {
    %c0_i32 = arith.constant 0 : i32
    %c0_i32_0 = arith.constant 0 : i32
    %c0_i32_1 = arith.constant 0 : i32
    return %c0_i32, %c0_i32_0 : i32, i32
  }
  func.func @transform_2(%arg0: i32) -> (i32, i32) {
    %c0_i32 = arith.constant 0 : i32
    %c0_i32_0 = arith.constant 0 : i32
    return %arg0, %c0_i32 : i32, i32
  }
  func.func @transform_3(%arg0: i32) -> (i32, i32, i32) {
    %c0_i32 = arith.constant 0 : i32
    %c0_i32_0 = arith.constant 0 : i32
    %c0_i32_1 = arith.constant 0 : i32
    return %arg0, %c0_i32, %c0_i32_0 : i32, i32, i32
  }
}

</mosaic_0001>

<bundles_post_ra>
// kernel: custom-call.3
= control target key start
LH: loop header
LB: loop body
LE: loop exit
PB: predicated region body
PF: predicated region fallthrough
CT: control target
= control target key end

     0   :  { %s6_s0 = inlined_call_operand.vmem [shape: pred[2,1,16,16], index: 0, kind: output, shape index: {}]  }

// kernel: custom-call.2
= control target key start
LH: loop header
LB: loop body
LE: loop exit
PB: predicated region body
PF: predicated region fallthrough
CT: control target
= control target key end

     0   :  { %s6_s0 = inlined_call_operand.vmem [shape: s32[2,1,16,16], index: 0, kind: output, shape index: {}]  }

// kernel: _forward_impl.1
= control target key start
LH: loop header
LB: loop body
LE: loop exit
PB: predicated region body
PF: predicated region fallthrough
CT: control target
= control target key end

     0   :  { %v3036_v0 = vmov 0   ;;  %v3037_v5 = vmov 0.0|0.0   ;;  %s6345_s0 = inlined_call_operand.vmem [shape: s32[1024,1], index: 0, kind: input, shape index: {}]   ;;  %s6346_s1 = inlined_call_operand.vmem [shape: f32[256,32], index: 1, kind: input, shape index: {}]   ;;  %s6347_s2 = inlined_call_operand.vmem [shape: f32[1024,32], index: 2, kind: output, shape index: {0}]   ;;  %s6348_s3 = inlined_call_operand.vmem [shape: f32[1,8,256], index: 3, kind: output, shape index: {1}]  }
   0x1   :  { %3035 = vset.pattern.permute.xlu1 %v3036_v0  ;;  %3034 = vset.pattern.permute.xlu0 %v3036_v0  ;;  %v14_v1 = vld [vmem:[%s6345_s0 + $0x8] sm:$0xff]  ;;  %v13_v2 = vld [vmem:[%s6345_s0] sm:$0xff]  ;;  %v79_v6 = vld [vmem:[%s6345_s0 + $0x210] sm:$0xff] }
   0x2   :  { %148 = vperm.xlu1 %3035, %v14_v1   ;;  %145 = vperm.xlu0 %3034, %v13_v2   ;;  %v78_v3 = vld [vmem:[%s6345_s0 + $0x208] sm:$0xff]  ;;  %v77_v4 = vld [vmem:[%s6345_s0 + $0x200] sm:$0xff]  ;;  %v15_v7 = vld [vmem:[%s6345_s0 + $0x10] sm:$0xff] }
   0x3   :  { %2950 = vmatprep.subr.bf16.mxu0 %v3037_v5  ;;  %2998 = vmatprep.subr.bf16.mxu1 %v3037_v5  ;;  %v80_v8 = vld [vmem:[%s6345_s0 + $0x218] sm:$0xff]  ;;  %v1296_v10 = vld [vmem:[%s6346_s1] sm:$0xff]  ;;  %v1297_v11 = vld [vmem:[%s6346_s1 + $0x8] sm:$0xff] }
   0x4   :  { %v16_v9 = vld [vmem:[%s6345_s0 + $0x18] sm:$0xff]  ;;  %v2951_v12 = vpack.c.bf16 %v1297_v11, %v1296_v10  ;;  %v1298_v13 = vld [vmem:[%s6346_s1 + $0x10] sm:$0xff]  ;;  %v81_v15 = vld [vmem:[%s6345_s0 + $0x220] sm:$0xff] }
   0x5   :  { %v1299_v14 = vld [vmem:[%s6346_s1 + $0x18] sm:$0xff]  ;;  %v17_v16 = vld [vmem:[%s6345_s0 + $0x20] sm:$0xff]  ;;  %v1301_v19 = vld [vmem:[%s6346_s1 + $0x28] sm:$0xff] }
   0x6   :  { %340 = vperm.xlu1 %3035, %v78_v3   ;;  %337 = vperm.xlu0 %3034, %v77_v4   ;;  %v2954_v17 = vpack.c.bf16 %v1299_v14, %v1298_v13  ;;  %v1300_v18 = vld [vmem:[%s6346_s1 + $0x20] sm:$0xff]  ;;  %v82_v20 = vld [vmem:[%s6345_s0 + $0x228] sm:$0xff]  ;;  %v1302_v23 = vld [vmem:[%s6346_s1 + $0x30] sm:$0xff] }
   0x7   :  { %2952 = vmatpush1.bf16.msra.mxu0 %v2951_v12  ;;  %3014 = vmatpush1.bf16.msra.mxu1 %v2951_v12  ;;  %v18_v21 = vld [vmem:[%s6345_s0 + $0x28] sm:$0xff]  ;;  %v2957_v22 = vpack.c.bf16 %v1301_v19, %v1300_v18  ;;  %v1303_v24 = vld [vmem:[%s6346_s1 + $0x38] sm:$0xff]  ;;  %v83_v25 = vld [vmem:[%s6345_s0 + $0x230] sm:$0xff] }
   0x8   :  { %2953 = vmatprep.subr.bf16.mxu0 %v3037_v5  ;;  %2999 = vmatprep.subr.bf16.mxu1 %v3037_v5  ;;  %v19_v26 = vld [vmem:[%s6345_s0 + $0x30] sm:$0xff]  ;;  %v2960_v27 = vpack.c.bf16 %v1303_v24, %v1302_v23  ;;  %v1304_v28 = vld [vmem:[%s6346_s1 + $0x40] sm:$0xff]  ;;  %v1305_v29 = vld [vmem:[%s6346_s1 + $0x48] sm:$0xff] }
   0x9   :  { %v84_v30 = vld [vmem:[%s6345_s0 + $0x238] sm:$0xff]  ;;  %v2963_v32 = vpack.c.bf16 %v1305_v29, %v1304_v28  ;;  %v1306_v33 = vld [vmem:[%s6346_s1 + $0x50] sm:$0xff]  ;;  %v85_v35 = vld [vmem:[%s6345_s0 + $0x240] sm:$0xff] }
   0xa   :  { %343 = vperm.xlu1 %3035, %v79_v6   ;;  %151 = vperm.xlu0 %3034, %v15_v7   ;;  %v20_v31 = vld [vmem:[%s6345_s0 + $0x38] sm:$0xff]  ;;  %v21_v36 = vld [vmem:[%s6345_s0 + $0x40] sm:$0xff]  ;;  %v1309_v39 = vld [vmem:[%s6346_s1 + $0x68] sm:$0xff] }
   0xb   :  { %2955 = vmatpush1.bf16.msra.mxu0 %v2954_v17  ;;  %3015 = vmatpush1.bf16.msra.mxu1 %v2954_v17  ;;  %v1307_v34 = vld [vmem:[%s6346_s1 + $0x58] sm:$0xff]  ;;  %v1308_v38 = vld [vmem:[%s6346_s1 + $0x60] sm:$0xff]  ;;  %v86_v40 = vld [vmem:[%s6345_s0 + $0x248] sm:$0xff] }
   0xc   :  { %2956 = vmatprep.subr.bf16.mxu0 %v3037_v5  ;;  %3000 = vmatprep.subr.bf16.mxu1 %v3037_v5  ;;  %v2966_v37 = vpack.c.bf16 %v1307_v34, %v1306_v33  ;;  %v22_v41 = vld [vmem:[%s6345_s0 + $0x48] sm:$0xff]  ;;  %v2969_v42 = vpack.c.bf16 %v1309_v39, %v1308_v38  ;;  %v1310_v43 = vld [vmem:[%s6346_s1 + $0x70] sm:$0xff]  ;;  %v1311_v44 = vld [vmem:[%s6346_s1 + $0x78] sm:$0xff] }
   0xd   :  { %v87_v45 = vld [vmem:[%s6345_s0 + $0x250] sm:$0xff]  ;;  %v2972_v47 = vpack.c.bf16 %v1311_v44, %v1310_v43  ;;  %v1312_v48 = vld [vmem:[%s6346_s1 + $0x80] sm:$0xff]  ;;  %v1313_v49 = vld [vmem:[%s6346_s1 + $0x88] sm:$0xff] }
   0xe   :  { %346 = vperm.xlu1 %3035, %v80_v8   ;;  %154 = vperm.xlu0 %3034, %v16_v9   ;;  %v23_v46 = vld [vmem:[%s6345_s0 + $0x50] sm:$0xff]  ;;  %v88_v50 = vld [vmem:[%s6345_s0 + $0x258] sm:$0xff]  ;;  %v2975_v52 = vpack.c.bf16 %v1313_v49, %v1312_v48  ;;  %v89_v55 = vld [vmem:[%s6345_s0 + $0x260] sm:$0xff] }
   0xf   :  { %2958 = vmatpush1.bf16.msra.mxu0 %v2957_v22  ;;  %3016 = vmatpush1.bf16.msra.mxu1 %v2957_v22  ;;  %v24_v51 = vld [vmem:[%s6345_s0 + $0x58] sm:$0xff]  ;;  %v1314_v53 = vld [vmem:[%s6346_s1 + $0x90] sm:$0xff]  ;;  %v25_v56 = vld [vmem:[%s6345_s0 + $0x60] sm:$0xff] }
  0x10   :  { %2959 = vmatprep.subr.bf16.mxu0 %v3037_v5  ;;  %3001 = vmatprep.subr.bf16.mxu1 %v3037_v5  ;;  %v1315_v54 = vld [vmem:[%s6346_s1 + $0x98] sm:$0xff]  ;;  %v1316_v58 = vld [vmem:[%s6346_s1 + $0xa0] sm:$0xff]  ;;  %v1317_v59 = vld [vmem:[%s6346_s1 + $0xa8] sm:$0xff] }
  0x11   :  { %v2978_v57 = vpack.c.bf16 %v1315_v54, %v1314_v53  ;;  %v90_v60 = vld [vmem:[%s6345_s0 + $0x268] sm:$0xff]  ;;  %v2981_v62 = vpack.c.bf16 %v1317_v59, %v1316_v58  ;;  %v1318_v63 = vld [vmem:[%s6346_s1 + $0xb0] sm:$0xff]  ;;  %v1319_v0 = vld [vmem:[%s6346_s1 + $0xb8] sm:$0xff] }
  0x12   :  { %349 = vperm.xlu1 %3035, %v81_v15   ;;  %157 = vperm.xlu0 %3034, %v17_v16   ;;  %v26_v61 = vld [vmem:[%s6345_s0 + $0x68] sm:$0xff]  ;;  %v91_v1 = vld [vmem:[%s6345_s0 + $0x270] sm:$0xff]  ;;  %v2984_v3 = vpack.c.bf16 %v1319_v0, %v1318_v63  ;;  %v1320_v4 = vld [vmem:[%s6346_s1 + $0xc0] sm:$0xff] }
  0x13   :  { %2961 = vmatpush1.bf16.msra.mxu0 %v2960_v27  ;;  %3017 = vmatpush1.bf16.msra.mxu1 %v2960_v27  ;;  %v27_v2 = vld [vmem:[%s6345_s0 + $0x70] sm:$0xff]  ;;  %v1321_v6 = vld [vmem:[%s6346_s1 + $0xc8] sm:$0xff]  ;;  %v92_v7 = vld [vmem:[%s6345_s0 + $0x278] sm:$0xff] }
  0x14   :  { %2962 = vmatprep.subr.bf16.mxu0 %v3037_v5  ;;  %3002 = vmatprep.subr.bf16.mxu1 %v3037_v5  ;;  %v28_v8 = vld [vmem:[%s6345_s0 + $0x78] sm:$0xff]  ;;  %v2987_v9 = vpack.c.bf16 %v1321_v6, %v1320_v4  ;;  %v1322_v10 = vld [vmem:[%s6346_s1 + $0xd0] sm:$0xff]  ;;  %v93_v12 = vld [vmem:[%s6345_s0 + $0x280] sm:$0xff] }
  0x15   :  { %v1323_v11 = vld [vmem:[%s6346_s1 + $0xd8] sm:$0xff]  ;;  %v29_v13 = vld [vmem:[%s6345_s0 + $0x80] sm:$0xff]  ;;  %v1325_v16 = vld [vmem:[%s6346_s1 + $0xe8] sm:$0xff] }
  0x16   :  { %352 = vperm.xlu1 %3035, %v82_v20   ;;  %160 = vperm.xlu0 %3034, %v18_v21   ;;  %v2990_v14 = vpack.c.bf16 %v1323_v11, %v1322_v10  ;;  %v1324_v15 = vld [vmem:[%s6346_s1 + $0xe0] sm:$0xff]  ;;  %v94_v17 = vld [vmem:[%s6345_s0 + $0x288] sm:$0xff]  ;;  %v1326_v20 = vld [vmem:[%s6346_s1 + $0xf0] sm:$0xff] }
  0x17   :  { %2964 = vmatpush1.bf16.msra.mxu0 %v2963_v32  ;;  %3018 = vmatpush1.bf16.msra.mxu1 %v2963_v32  ;;  %v30_v18 = vld [vmem:[%s6345_s0 + $0x88] sm:$0xff]  ;;  %v2993_v19 = vpack.c.bf16 %v1325_v16, %v1324_v15  ;;  %v1327_v21 = vld [vmem:[%s6346_s1 + $0xf8] sm:$0xff]  ;;  %v95_v22 = vld [vmem:[%s6345_s0 + $0x290] sm:$0xff] }
  0x18   :  { %2965 = vmatprep.subr.bf16.mxu0 %v3037_v5  ;;  %3003 = vmatprep.subr.bf16.mxu1 %v3037_v5  ;;  %v31_v23 = vld [vmem:[%s6345_s0 + $0x90] sm:$0xff]  ;;  %v2996_v24 = vpack.c.bf16 %v1327_v21, %v1326_v20  ;;  %v97_v27 = vld [vmem:[%s6345_s0 + $0x2a0] sm:$0xff]  ;;  %v98_v28 = vld [vmem:[%s6345_s0 + $0x2a8] sm:$0xff] }
  0x19   :  { %v34_v29 = vld [vmem:[%s6345_s0 + $0xa8] sm:$0xff]  ;;  %v100_v32 = vld [vmem:[%s6345_s0 + $0x2b8] sm:$0xff]  ;;  %v101_v34 = vld [vmem:[%s6345_s0 + $0x2c0] sm:$0xff] }
  0x1a   :  { %355 = vperm.xlu1 %3035, %v83_v25   ;;  %163 = vperm.xlu0 %3034, %v19_v26   ;;  %v96_v25 = vld [vmem:[%s6345_s0 + $0x298] sm:$0xff]  ;;  %v103_v38 = vld [vmem:[%s6345_s0 + $0x2d0] sm:$0xff]  ;;  %v41_v43 = vld [vmem:[%s6345_s0 + $0xe0] sm:$0xff] }
  0x1b   :  { %2967 = vmatpush1.bf16.msra.mxu0 %v2966_v37  ;;  %3019 = vmatpush1.bf16.msra.mxu1 %v2966_v37  ;;  %v32_v26 = vld [vmem:[%s6345_s0 + $0x98] sm:$0xff]  ;;  %v38_v37 = vld [vmem:[%s6345_s0 + $0xc8] sm:$0xff]  ;;  %v39_v39 = vld [vmem:[%s6345_s0 + $0xd0] sm:$0xff] }
  0x1c   :  { %2968 = vmatprep.subr.bf16.mxu0 %v3037_v5  ;;  %3004 = vmatprep.subr.bf16.mxu1 %v3037_v5  ;;  %v36_v33 = vld [vmem:[%s6345_s0 + $0xb8] sm:$0xff]  ;;  %v106_v44 = vld [vmem:[%s6345_s0 + $0x2e8] sm:$0xff]  ;;  %v43_v48 = vld [vmem:[%s6345_s0 + $0xf0] sm:$0xff] }
  0x1d   :  { %v109_v53 = vld [vmem:[%s6345_s0 + $0x300] sm:$0xff]  ;;  %v46_v63 = vld [vmem:[%s6345_s0 + $0x108] sm:$0xff]  ;;  %v111_v6 = vld [vmem:[%s6345_s0 + $0x310] sm:$0xff] }
  0x1e   :  { %358 = vperm.xlu1 %3035, %v84_v30   ;;  %166 = vperm.xlu0 %3034, %v20_v31   ;;  %v99_v30 = vld [vmem:[%s6345_s0 + $0x2b0] sm:$0xff]  ;;  %v45_v54 = vld [vmem:[%s6345_s0 + $0x100] sm:$0xff] }
  0x1f   :  { %2970 = vmatpush1.bf16.msra.mxu0 %v2969_v42  ;;  %3020 = vmatpush1.bf16.msra.mxu1 %v2969_v42  ;;  %v35_v31 = vld [vmem:[%s6345_s0 + $0xb0] sm:$0xff]  ;;  %v105_v42 = vld [vmem:[%s6345_s0 + $0x2e0] sm:$0xff] }
  0x20   :  { %2971 = vmatprep.subr.bf16.mxu0 %v3037_v5  ;;  %3005 = vmatprep.subr.bf16.mxu1 %v3037_v5  ;;  %v113_v20 = vld [vmem:[%s6345_s0 + $0x320] sm:$0xff] }
  0x21   :  { %v49_v21 = vld [vmem:[%s6345_s0 + $0x120] sm:$0xff] }
  0x22   :  { %361 = vperm.xlu1 %3035, %v85_v35   ;;  %169 = vperm.xlu0 %3034, %v21_v36   ;;  %v37_v35 = vld [vmem:[%s6345_s0 + $0xc0] sm:$0xff]  ;;  %v102_v36 = vld [vmem:[%s6345_s0 + $0x2c8] sm:$0xff] }
  0x23   :  { %2973 = vmatpush1.bf16.msra.mxu0 %v2972_v47  ;;  %3021 = vmatpush1.bf16.msra.mxu1 %v2972_v47  ;;  %v107_v47 = vld [vmem:[%s6345_s0 + $0x2f0] sm:$0xff] }
  0x24   :  { %2974 = vmatprep.subr.bf16.mxu0 %v3037_v5  ;;  %3006 = vmatprep.subr.bf16.mxu1 %v3037_v5 }
  0x26   :  { %364 = vperm.xlu1 %3035, %v86_v40   ;;  %172 = vperm.xlu0 %3034, %v22_v41   ;;  %v104_v40 = vld [vmem:[%s6345_s0 + $0x2d8] sm:$0xff] }
  0x27   :  { %2976 = vmatpush1.bf16.msra.mxu0 %v2975_v52  ;;  %3022 = vmatpush1.bf16.msra.mxu1 %v2975_v52  ;;  %v40_v41 = vld [vmem:[%s6345_s0 + $0xd8] sm:$0xff] }
  0x28   :  { %2977 = vmatprep.subr.bf16.mxu0 %v3037_v5  ;;  %3007 = vmatprep.subr.bf16.mxu1 %v3037_v5 }
  0x2a   :  { %367 = vperm.xlu1 %3035, %v87_v45   ;;  %175 = vperm.xlu0 %3034, %v23_v46   ;;  %v42_v45 = vld [vmem:[%s6345_s0 + $0xe8] sm:$0xff]  ;;  %v141_v46 = vlaneseq }
  0x2b   :  { %2979 = vmatpush1.bf16.msra.mxu0 %v2978_v57  ;;  %3023 = vmatpush1.bf16.msra.mxu1 %v2978_v57  ;;  %v6448_v57 = vmov 0.0  }
  0x2c   :  { %2980 = vmatprep.subr.bf16.mxu0 %v3037_v5  ;;  %3008 = vmatprep.subr.bf16.mxu1 %v3037_v5  ;;  %v3374_v49 = vand.u32 127, %v141_v46 }
  0x2e   :  { %370 = vperm.xlu1 %3035, %v88_v50   ;;  %178 = vperm.xlu0 %3034, %v24_v51   ;;  %v108_v50 = vld [vmem:[%s6345_s0 + $0x2f8] sm:$0xff]  ;;  %v3383_v52 = vadd.s32 128, %v3374_v49 }
  0x2f   :  { %2982 = vmatpush1.bf16.msra.mxu0 %v2981_v62  ;;  %3024 = vmatpush1.bf16.msra.mxu1 %v2981_v62  ;;  %v44_v51 = vld [vmem:[%s6345_s0 + $0xf8] sm:$0xff]  ;;  %v110_v62 = vld [vmem:[%s6345_s0 + $0x308] sm:$0xff] }
  0x30   :  { %2983 = vmatprep.subr.bf16.mxu0 %v3037_v5  ;;  %3009 = vmatprep.subr.bf16.mxu1 %v3037_v5 }
  0x32   :  { %373 = vperm.xlu1 %3035, %v89_v55   ;;  %181 = vperm.xlu0 %3034, %v25_v56  }
  0x33   :  { %2985 = vmatpush1.bf16.msra.mxu0 %v2984_v3  ;;  %3025 = vmatpush1.bf16.msra.mxu1 %v2984_v3 }
  0x34   :  { %2986 = vmatprep.subr.bf16.mxu0 %v3037_v5  ;;  %3010 = vmatprep.subr.bf16.mxu1 %v3037_v5 }
  0x36   :  { %376 = vperm.xlu1 %3035, %v90_v60   ;;  %184 = vperm.xlu0 %3034, %v26_v61   ;;  %v6514_v60 = vmov 1.0  }
  0x37   :  { %2988 = vmatpush1.bf16.msra.mxu0 %v2987_v9  ;;  %3026 = vmatpush1.bf16.msra.mxu1 %v2987_v9 }
  0x38   :  { %2989 = vmatprep.subr.bf16.mxu0 %v3037_v5  ;;  %3011 = vmatprep.subr.bf16.mxu1 %v3037_v5 }
  0x3a   :  { %379 = vperm.xlu1 %3035, %v91_v1   ;;  %187 = vperm.xlu0 %3034, %v27_v2  }
  0x3b   :  { %2991 = vmatpush1.bf16.msra.mxu0 %v2990_v14  ;;  %3027 = vmatpush1.bf16.msra.mxu1 %v2990_v14 }
  0x3c   :  { %2992 = vmatprep.subr.bf16.mxu0 %v3037_v5  ;;  %3012 = vmatprep.subr.bf16.mxu1 %v3037_v5 }
  0x3e   :  { %382 = vperm.xlu1 %3035, %v92_v7   ;;  %190 = vperm.xlu0 %3034, %v28_v8   ;;  %v47_v7 = vld [vmem:[%s6345_s0 + $0x110] sm:$0xff] }
  0x3f   :  { %2994 = vmatpush1.bf16.msra.mxu0 %v2993_v19  ;;  %3028 = vmatpush1.bf16.msra.mxu1 %v2993_v19 }
  0x40   :  { %2995 = vmatprep.subr.bf16.mxu0 %v3037_v5  ;;  %3013 = vmatprep.subr.bf16.mxu1 %v3037_v5  ;;  %v33_v5 = vld [vmem:[%s6345_s0 + $0xa0] sm:$0xff] }
  0x42   :  { %385 = vperm.xlu1 %3035, %v93_v12   ;;  %193 = vperm.xlu0 %3034, %v29_v13   ;;  %v112_v12 = vld [vmem:[%s6345_s0 + $0x318] sm:$0xff] }
  0x43   :  { %2997 = vmatpush1.bf16.msra.mxu0 %v2996_v24  ;;  %3029 = vmatpush1.bf16.msra.mxu1 %v2996_v24  ;;  %v48_v13 = vld [vmem:[%s6345_s0 + $0x118] sm:$0xff] }
  0x46   :  { %388 = vperm.xlu1 %3035, %v94_v17   ;;  %196 = vperm.xlu0 %3034, %v30_v18  }
  0x4a   :  { %391 = vperm.xlu1 %3035, %v95_v22   ;;  %199 = vperm.xlu0 %3034, %v31_v23  }
  0x4e   :  { %394 = vperm.xlu1 %3035, %v96_v25   ;;  %202 = vperm.xlu0 %3034, %v32_v26  }
  0x52   :  { %397 = vperm.xlu1 %3035, %v97_v27   ;;  %205 = vperm.xlu0 %3034, %v33_v5   ;;  %v114_v5 = vld [vmem:[%s6345_s0 + $0x328] sm:$0xff] }
  0x56   :  { %400 = vperm.xlu1 %3035, %v98_v28   ;;  %208 = vperm.xlu0 %3034, %v34_v29   ;;  %v50_v28 = vld [vmem:[%s6345_s0 + $0x128] sm:$0xff] }
  0x5a   :  { %403 = vperm.xlu1 %3035, %v99_v30   ;;  %211 = vperm.xlu0 %3034, %v35_v31  }
  0x5e   :  { %406 = vperm.xlu1 %3035, %v100_v32   ;;  %214 = vperm.xlu0 %3034, %v36_v33  }
  0x62   :  { %409 = vperm.xlu1 %3035, %v101_v34   ;;  %217 = vperm.xlu0 %3034, %v37_v35   ;;  %v115_v35 = vld [vmem:[%s6345_s0 + $0x330] sm:$0xff] }
  0x66   :  { %412 = vperm.xlu1 %3035, %v102_v36   ;;  %220 = vperm.xlu0 %3034, %v38_v37   ;;  %v51_v36 = vld [vmem:[%s6345_s0 + $0x130] sm:$0xff] }
  0x6a   :  { %415 = vperm.xlu1 %3035, %v103_v38   ;;  %223 = vperm.xlu0 %3034, %v39_v39  }
  0x6e   :  { %418 = vperm.xlu1 %3035, %v104_v40   ;;  %226 = vperm.xlu0 %3034, %v40_v41  }
  0x72   :  { %421 = vperm.xlu1 %3035, %v105_v42   ;;  %229 = vperm.xlu0 %3034, %v41_v43   ;;  %v116_v43 = vld [vmem:[%s6345_s0 + $0x338] sm:$0xff] }
  0x76   :  { %424 = vperm.xlu1 %3035, %v106_v44   ;;  %232 = vperm.xlu0 %3034, %v42_v45   ;;  %v52_v44 = vld [vmem:[%s6345_s0 + $0x138] sm:$0xff] }
  0x7a   :  { %427 = vperm.xlu1 %3035, %v107_v47   ;;  %235 = vperm.xlu0 %3034, %v43_v48  }
  0x7e   :  { %430 = vperm.xlu1 %3035, %v108_v50   ;;  %238 = vperm.xlu0 %3034, %v44_v51  }
  0x81   :  { %v149_v55 = vpop.permute.xlu1 %148  ;;  %v146_v56 = vpop.permute.xlu0 %145 }
  0x82   :  { %vm531_vm0 = vcmp.eq.s32.totalorder %v149_v55, %v3383_v52  ;;  %433 = vperm.xlu1 %3035, %v109_v53   ;;  %241 = vperm.xlu0 %3034, %v45_v54   ;;  %vm529_vm1 = vcmp.eq.s32.totalorder %v146_v56, %v3383_v52  ;;  %vm528_vm2 = vcmp.eq.s32.totalorder %v146_v56, %v3374_v49  ;;  %v117_v53 = vld [vmem:[%s6345_s0 + $0x340] sm:$0xff] }
  0x83   :  { %v2439_v58 = vsel %vm529_vm1, 1.0, %v6448_v57  ;;  %v2441_v59 = vsel %vm531_vm0, 1.0, %v6448_v57  ;;  %2694 = vmatprep.mubr.msk.f32.mxu0 %vm529_vm1, %v6514_v60  ;;  %v2438_v61 = vsel %vm528_vm2, 1.0, %v6448_v57  ;;  %vm530_vm3 = vcmp.eq.s32.totalorder %v149_v55, %v3374_v49  ;;  %v53_v54 = vld [vmem:[%s6345_s0 + $0x140] sm:$0xff] }
  0x84   :  { %v2295_v0 = vadd.f32 %v2441_v59, %v2439_v58  ;;  %2695 = vmatmul.mubr.msk.f32.vlgmr.msra.gmra.mrb[0].mxu0 %vm528_vm2, %v6514_v60  ;;  %v2440_v1 = vsel %vm530_vm3, 1.0, %v6448_v57 }
  0x85   :  { %v3409_v2 = vpop.permute.xlu1 %340  ;;  %v3411_v3 = vpop.permute.xlu0 %337  ;;  %2696 = vmatprep.mubr.msk.f32.mxu0 %vm531_vm0, %v6514_v60  ;;  %v2162_v4 = vadd.f32 %v2440_v1, %v2438_v61 }
  0x86   :  { %436 = vperm.xlu1 %3035, %v110_v62   ;;  %244 = vperm.xlu0 %3034, %v46_v63   ;;  %vm6421_vm4 = vcmp.eq.s32.totalorder %v3411_v3, %v3383_v52  ;;  %vm6418_vm5 = vcmp.eq.s32.totalorder %v3411_v3, %v3374_v49  ;;  %vm6417_vm6 = vcmp.eq.s32.totalorder %v3409_v2, %v3383_v52  ;;  %v118_v63 = vld [vmem:[%s6345_s0 + $0x348] sm:$0xff] }
  0x87   :  { %2822 = vmatprep.mubr.msk.f32.mxu1 %vm6421_vm4, %v6514_v60  ;;  %vm6414_vm9 = vcmp.eq.s32.totalorder %v3409_v2, %v3374_v49 }
  0x88   :  { %2697 = vmatmul.mubr.msk.f32.gmra.mrb[2].mxu0 %vm530_vm3, %v6514_v60  ;;  %2823 = vmatmul.mubr.msk.f32.vlgmr.msra.gmra.mrb[0].mxu1 %vm6418_vm5, %v6514_v60 }
  0x89   :  { %v3437_v8 = vpop.permute.xlu1 %343  ;;  %2824 = vmatprep.mubr.msk.f32.mxu1 %vm6417_vm6, %v6514_v60  ;;  %v152_v9 = vpop.permute.xlu0 %151 }
  0x8a   :  { %439 = vperm.xlu1 %3035, %v111_v6   ;;  %247 = vperm.xlu0 %3034, %v47_v7   ;;  %vm533_vm7 = vcmp.eq.s32.totalorder %v152_v9, %v3383_v52  ;;  %vm532_vm8 = vcmp.eq.s32.totalorder %v152_v9, %v3374_v49  ;;  %vm6413_vm10 = vcmp.eq.s32.totalorder %v3437_v8, %v3383_v52 }
  0x8b   :  { %v2443_v10 = vsel %vm533_vm7, 1.0, %v6448_v57  ;;  %2698 = vmatprep.mubr.msk.f32.mxu0 %vm533_vm7, %v6514_v60  ;;  %v2442_v11 = vsel %vm532_vm8, 1.0, %v6448_v57  ;;  %vm6410_vm13 = vcmp.eq.s32.totalorder %v3437_v8, %v3374_v49 }
  0x8c   :  { %v2296_v14 = vadd.f32 %v2443_v10, %v2295_v0  ;;  %2699 = vmatmul.mubr.msk.f32.gmra.mrb[4].mxu0 %vm532_vm8, %v6514_v60  ;;  %v2163_v15 = vadd.f32 %v2442_v11, %v2162_v4  ;;  %2825 = vmatmul.mubr.msk.f32.gmra.mrb[2].mxu1 %vm6414_vm9, %v6514_v60  ;;  %v54_v0 = vld [vmem:[%s6345_s0 + $0x148] sm:$0xff]  ;;  %v119_v11 = vld [vmem:[%s6345_s0 + $0x350] sm:$0xff] }
  0x8d   :  { %v3463_v16 = vpop.permute.xlu1 %346  ;;  %2826 = vmatprep.mubr.msk.f32.mxu1 %vm6413_vm10, %v6514_v60  ;;  %v155_v17 = vpop.permute.xlu0 %154 }
  0x8e   :  { %442 = vperm.xlu1 %3035, %v112_v12   ;;  %250 = vperm.xlu0 %3034, %v48_v13   ;;  %vm535_vm11 = vcmp.eq.s32.totalorder %v155_v17, %v3383_v52  ;;  %vm534_vm12 = vcmp.eq.s32.totalorder %v155_v17, %v3374_v49  ;;  %vm6409_vm14 = vcmp.eq.s32.totalorder %v3463_v16, %v3383_v52  ;;  %v55_v12 = vld [vmem:[%s6345_s0 + $0x150] sm:$0xff] }
  0x8f   :  { %v2445_v18 = vsel %vm535_vm11, 1.0, %v6448_v57  ;;  %2700 = vmatprep.mubr.msk.f32.mxu0 %vm535_vm11, %v6514_v60  ;;  %v2444_v19 = vsel %vm534_vm12, 1.0, %v6448_v57  ;;  %vm6406_vm1 = vcmp.eq.s32.totalorder %v3463_v16, %v3374_v49 }
  0x90   :  { %v2297_v22 = vadd.f32 %v2445_v18, %v2296_v14  ;;  %2701 = vmatmul.mubr.msk.f32.gmra.mrb[6].mxu0 %vm534_vm12, %v6514_v60  ;;  %v2164_v23 = vadd.f32 %v2444_v19, %v2163_v15  ;;  %2827 = vmatmul.mubr.msk.f32.gmra.mrb[4].mxu1 %vm6410_vm13, %v6514_v60 }
  0x91   :  { %v3489_v24 = vpop.permute.xlu1 %349  ;;  %2828 = vmatprep.mubr.msk.f32.mxu1 %vm6409_vm14, %v6514_v60  ;;  %v158_v25 = vpop.permute.xlu0 %157 }
  0x92   :  { %445 = vperm.xlu1 %3035, %v113_v20   ;;  %253 = vperm.xlu0 %3034, %v49_v21   ;;  %vm537_vm15 = vcmp.eq.s32.totalorder %v158_v25, %v3383_v52  ;;  %vm536_vm0 = vcmp.eq.s32.totalorder %v158_v25, %v3374_v49  ;;  %vm6405_vm2 = vcmp.eq.s32.totalorder %v3489_v24, %v3383_v52  ;;  %v120_v20 = vld [vmem:[%s6345_s0 + $0x358] sm:$0xff] }
  0x93   :  { %v2447_v26 = vsel %vm537_vm15, 1.0, %v6448_v57  ;;  %2702 = vmatprep.mubr.msk.f32.mxu0 %vm537_vm15, %v6514_v60  ;;  %v2446_v27 = vsel %vm536_vm0, 1.0, %v6448_v57  ;;  %vm6402_vm8 = vcmp.eq.s32.totalorder %v3489_v24, %v3374_v49  ;;  %v56_v21 = vld [vmem:[%s6345_s0 + $0x158] sm:$0xff] }
  0x94   :  { %v2298_v29 = vadd.f32 %v2447_v26, %v2297_v22  ;;  %2703 = vmatmul.mubr.msk.f32.gmra.mrb[8].mxu0 %vm536_vm0, %v6514_v60  ;;  %v2165_v30 = vadd.f32 %v2446_v27, %v2164_v23  ;;  %2829 = vmatmul.mubr.msk.f32.gmra.mrb[6].mxu1 %vm6406_vm1, %v6514_v60 }
  0x95   :  { %v3515_v31 = vpop.permute.xlu1 %352  ;;  %2830 = vmatprep.mubr.msk.f32.mxu1 %vm6405_vm2, %v6514_v60  ;;  %v161_v32 = vpop.permute.xlu0 %160 }
  0x96   :  { %448 = vperm.xlu1 %3035, %v114_v5   ;;  %256 = vperm.xlu0 %3034, %v50_v28   ;;  %vm539_vm3 = vcmp.eq.s32.totalorder %v161_v32, %v3383_v52  ;;  %vm538_vm7 = vcmp.eq.s32.totalorder %v161_v32, %v3374_v49  ;;  %vm6401_vm11 = vcmp.eq.s32.totalorder %v3515_v31, %v3383_v52  ;;  %v121_v28 = vld [vmem:[%s6345_s0 + $0x360] sm:$0xff] }
  0x97   :  { %v2449_v33 = vsel %vm539_vm3, 1.0, %v6448_v57  ;;  %2704 = vmatprep.mubr.msk.f32.mxu0 %vm539_vm3, %v6514_v60  ;;  %v2448_v34 = vsel %vm538_vm7, 1.0, %v6448_v57  ;;  %vm6397_vm0 = vcmp.eq.s32.totalorder %v3515_v31, %v3374_v49 }
  0x98   :  { %v2299_v37 = vadd.f32 %v2449_v33, %v2298_v29  ;;  %2705 = vmatmul.mubr.msk.f32.gmra.mrb[10].mxu0 %vm538_vm7, %v6514_v60  ;;  %v2166_v38 = vadd.f32 %v2448_v34, %v2165_v30  ;;  %2831 = vmatmul.mubr.msk.f32.gmra.mrb[8].mxu1 %vm6402_vm8, %v6514_v60  ;;  %v57_v29 = vld [vmem:[%s6345_s0 + $0x160] sm:$0xff] }
  0x99   :  { %v3541_v39 = vpop.permute.xlu1 %355  ;;  %2832 = vmatprep.mubr.msk.f32.mxu1 %vm6401_vm11, %v6514_v60  ;;  %v164_v40 = vpop.permute.xlu0 %163 }
  0x9a   :  { %451 = vperm.xlu1 %3035, %v115_v35   ;;  %259 = vperm.xlu0 %3034, %v51_v36   ;;  %vm541_vm12 = vcmp.eq.s32.totalorder %v164_v40, %v3383_v52  ;;  %vm540_vm15 = vcmp.eq.s32.totalorder %v164_v40, %v3374_v49  ;;  %vm6349_vm3 = vcmp.eq.s32.totalorder %v3541_v39, %v3383_v52 }
  0x9b   :  { %v2451_v41 = vsel %vm541_vm12, 1.0, %v6448_v57  ;;  %2706 = vmatprep.mubr.msk.f32.mxu0 %vm541_vm12, %v6514_v60  ;;  %v2450_v42 = vsel %vm540_vm15, 1.0, %v6448_v57 }
  0x9c   :  { %v2300_v45 = vadd.f32 %v2451_v41, %v2299_v37  ;;  %2707 = vmatmul.mubr.msk.f32.gmra.mrb[12].mxu0 %vm540_vm15, %v6514_v60  ;;  %v2167_v46 = vadd.f32 %v2450_v42, %v2166_v38  ;;  %2833 = vmatmul.mubr.msk.f32.gmra.mrb[10].mxu1 %vm6397_vm0, %v6514_v60  ;;  %vm6350_vm15 = vcmp.eq.s32.totalorder %v3541_v39, %v3374_v49  ;;  %v122_v37 = vld [vmem:[%s6345_s0 + $0x368] sm:$0xff] }
  0x9d   :  { %v3567_v47 = vpop.permute.xlu1 %358  ;;  %2834 = vmatprep.mubr.msk.f32.mxu1 %vm6349_vm3, %v6514_v60  ;;  %v167_v48 = vpop.permute.xlu0 %166  ;;  %v58_v38 = vld [vmem:[%s6345_s0 + $0x168] sm:$0xff] }
  0x9e   :  { %454 = vperm.xlu1 %3035, %v116_v43   ;;  %262 = vperm.xlu0 %3034, %v52_v44   ;;  %vm543_vm7 = vcmp.eq.s32.totalorder %v167_v48, %v3383_v52  ;;  %vm542_vm12 = vcmp.eq.s32.totalorder %v167_v48, %v3374_v49  ;;  %v59_v48 = vld [vmem:[%s6345_s0 + $0x170] sm:$0xff] }
  0x9f   :  { %v2453_v50 = vsel %vm543_vm7, 1.0, %v6448_v57  ;;  %2708 = vmatprep.mubr.msk.f32.mxu0 %vm543_vm7, %v6514_v60  ;;  %v2452_v51 = vsel %vm542_vm12, 1.0, %v6448_v57  ;;  %vm6351_vm7 = vcmp.eq.s32.totalorder %v3567_v47, %v3383_v52 }
  0xa0   :  { %v2301_v55 = vadd.f32 %v2453_v50, %v2300_v45  ;;  %2709 = vmatmul.mubr.msk.f32.gmra.mrb[14].mxu0 %vm542_vm12, %v6514_v60  ;;  %v2168_v56 = vadd.f32 %v2452_v51, %v2167_v46  ;;  %2835 = vmatmul.mubr.msk.f32.gmra.mrb[12].mxu1 %vm6350_vm15, %v6514_v60  ;;  %vm6352_vm15 = vcmp.eq.s32.totalorder %v3567_v47, %v3374_v49  ;;  %v123_v46 = vld [vmem:[%s6345_s0 + $0x370] sm:$0xff] }
  0xa1   :  { %v3593_v58 = vpop.permute.xlu1 %361  ;;  %2836 = vmatprep.mubr.msk.f32.mxu1 %vm6351_vm7, %v6514_v60  ;;  %v170_v59 = vpop.permute.xlu0 %169 }
  0xa2   :  { %457 = vperm.xlu1 %3035, %v117_v53   ;;  %265 = vperm.xlu0 %3034, %v53_v54   ;;  %vm545_vm12 = vcmp.eq.s32.totalorder %v170_v59, %v3383_v52  ;;  %vm544_vm3 = vcmp.eq.s32.totalorder %v170_v59, %v3374_v49  ;;  %v124_v59 = vld [vmem:[%s6345_s0 + $0x378] sm:$0xff] }
  0xa3   :  { %v2455_v61 = vsel %vm545_vm12, 1.0, %v6448_v57  ;;  %2710 = vmatprep.mubr.msk.f32.mxu0 %vm545_vm12, %v6514_v60  ;;  %v2454_v62 = vsel %vm544_vm3, 1.0, %v6448_v57  ;;  %vm6353_vm12 = vcmp.eq.s32.totalorder %v3593_v58, %v3383_v52 }
  0xa4   :  { %v2302_v1 = vadd.f32 %v2455_v61, %v2301_v55  ;;  %2711 = vmatmul.mubr.msk.f32.gmra.mrb[16].mxu0 %vm544_vm3, %v6514_v60  ;;  %v2169_v4 = vadd.f32 %v2454_v62, %v2168_v56  ;;  %2837 = vmatmul.mubr.msk.f32.gmra.mrb[14].mxu1 %vm6352_vm15, %v6514_v60  ;;  %vm6354_vm15 = vcmp.eq.s32.totalorder %v3593_v58, %v3374_v49 }
  0xa5   :  { %v3619_v6 = vpop.permute.xlu1 %364  ;;  %2838 = vmatprep.mubr.msk.f32.mxu1 %vm6353_vm12, %v6514_v60  ;;  %v173_v7 = vpop.permute.xlu0 %172 }
  0xa6   :  { %460 = vperm.xlu1 %3035, %v118_v63   ;;  %268 = vperm.xlu0 %3034, %v54_v0   ;;  %vm547_vm3 = vcmp.eq.s32.totalorder %v173_v7, %v3383_v52  ;;  %vm546_vm7 = vcmp.eq.s32.totalorder %v173_v7, %v3374_v49  ;;  %v60_v63 = vld [vmem:[%s6345_s0 + $0x178] sm:$0xff] }
  0xa7   :  { %v2457_v9 = vsel %vm547_vm3, 1.0, %v6448_v57  ;;  %2712 = vmatprep.mubr.msk.f32.mxu0 %vm547_vm3, %v6514_v60  ;;  %v2456_v10 = vsel %vm546_vm7, 1.0, %v6448_v57  ;;  %vm6355_vm3 = vcmp.eq.s32.totalorder %v3619_v6, %v3383_v52 }
  0xa8   :  { %v2303_v13 = vadd.f32 %v2457_v9, %v2302_v1  ;;  %2713 = vmatmul.mubr.msk.f32.gmra.mrb[18].mxu0 %vm546_vm7, %v6514_v60  ;;  %v2170_v14 = vadd.f32 %v2456_v10, %v2169_v4  ;;  %2839 = vmatmul.mubr.msk.f32.gmra.mrb[16].mxu1 %vm6354_vm15, %v6514_v60  ;;  %vm6356_vm15 = vcmp.eq.s32.totalorder %v3619_v6, %v3374_v49  ;;  %v125_v9 = vld [vmem:[%s6345_s0 + $0x380] sm:$0xff] }
  0xa9   :  { %v3645_v15 = vpop.permute.xlu1 %367  ;;  %2840 = vmatprep.mubr.msk.f32.mxu1 %vm6355_vm3, %v6514_v60  ;;  %v176_v17 = vpop.permute.xlu0 %175 }
  0xaa   :  { %463 = vperm.xlu1 %3035, %v119_v11   ;;  %271 = vperm.xlu0 %3034, %v55_v12   ;;  %vm549_vm7 = vcmp.eq.s32.totalorder %v176_v17, %v3383_v52  ;;  %vm548_vm12 = vcmp.eq.s32.totalorder %v176_v17, %v3374_v49  ;;  %v61_v12 = vld [vmem:[%s6345_s0 + $0x180] sm:$0xff] }
  0xab   :  { %v2459_v18 = vsel %vm549_vm7, 1.0, %v6448_v57  ;;  %2714 = vmatprep.mubr.msk.f32.mxu0 %vm549_vm7, %v6514_v60  ;;  %v2458_v19 = vsel %vm548_vm12, 1.0, %v6448_v57  ;;  %vm6357_vm7 = vcmp.eq.s32.totalorder %v3645_v15, %v3383_v52 }
  0xac   :  { %v2304_v22 = vadd.f32 %v2459_v18, %v2303_v13  ;;  %2715 = vmatmul.mubr.msk.f32.gmra.mrb[20].mxu0 %vm548_vm12, %v6514_v60  ;;  %v2171_v23 = vadd.f32 %v2458_v19, %v2170_v14  ;;  %2841 = vmatmul.mubr.msk.f32.gmra.mrb[18].mxu1 %vm6356_vm15, %v6514_v60  ;;  %vm6358_vm15 = vcmp.eq.s32.totalorder %v3645_v15, %v3374_v49  ;;  %v126_v19 = vld [vmem:[%s6345_s0 + $0x388] sm:$0xff] }
  0xad   :  { %v3671_v25 = vpop.permute.xlu1 %370  ;;  %2842 = vmatprep.mubr.msk.f32.mxu1 %vm6357_vm7, %v6514_v60  ;;  %v179_v26 = vpop.permute.xlu0 %178 }
  0xae   :  { %466 = vperm.xlu1 %3035, %v120_v20   ;;  %274 = vperm.xlu0 %3034, %v56_v21   ;;  %vm551_vm12 = vcmp.eq.s32.totalorder %v179_v26, %v3383_v52  ;;  %vm550_vm3 = vcmp.eq.s32.totalorder %v179_v26, %v3374_v49 }
  0xaf   :  { %v2461_v27 = vsel %vm551_vm12, 1.0, %v6448_v57  ;;  %2716 = vmatprep.mubr.msk.f32.mxu0 %vm551_vm12, %v6514_v60  ;;  %v2460_v5 = vsel %vm550_vm3, 1.0, %v6448_v57  ;;  %vm6359_vm12 = vcmp.eq.s32.totalorder %v3671_v25, %v3383_v52 }
  0xb0   :  { %v2305_v30 = vadd.f32 %v2461_v27, %v2304_v22  ;;  %2717 = vmatmul.mubr.msk.f32.gmra.mrb[22].mxu0 %vm550_vm3, %v6514_v60  ;;  %v2172_v32 = vadd.f32 %v2460_v5, %v2171_v23  ;;  %2843 = vmatmul.mubr.msk.f32.gmra.mrb[20].mxu1 %vm6358_vm15, %v6514_v60  ;;  %vm6360_vm15 = vcmp.eq.s32.totalorder %v3671_v25, %v3374_v49  ;;  %v62_v22 = vld [vmem:[%s6345_s0 + $0x188] sm:$0xff] }
  0xb1   :  { %v3697_v33 = vpop.permute.xlu1 %373  ;;  %2844 = vmatprep.mubr.msk.f32.mxu1 %vm6359_vm12, %v6514_v60  ;;  %v182_v34 = vpop.permute.xlu0 %181 }
  0xb2   :  { %469 = vperm.xlu1 %3035, %v121_v28   ;;  %277 = vperm.xlu0 %3034, %v57_v29   ;;  %vm553_vm3 = vcmp.eq.s32.totalorder %v182_v34, %v3383_v52  ;;  %vm552_vm7 = vcmp.eq.s32.totalorder %v182_v34, %v3374_v49  ;;  %v127_v28 = vld [vmem:[%s6345_s0 + $0x390] sm:$0xff] }
  0xb3   :  { %v2463_v35 = vsel %vm553_vm3, 1.0, %v6448_v57  ;;  %2718 = vmatprep.mubr.msk.f32.mxu0 %vm553_vm3, %v6514_v60  ;;  %v2462_v36 = vsel %vm552_vm7, 1.0, %v6448_v57  ;;  %vm6361_vm3 = vcmp.eq.s32.totalorder %v3697_v33, %v3383_v52 }
  0xb4   :  { %v2306_v40 = vadd.f32 %v2463_v35, %v2305_v30  ;;  %2719 = vmatmul.mubr.msk.f32.gmra.mrb[24].mxu0 %vm552_vm7, %v6514_v60  ;;  %v2173_v41 = vadd.f32 %v2462_v36, %v2172_v32  ;;  %2845 = vmatmul.mubr.msk.f32.gmra.mrb[22].mxu1 %vm6360_vm15, %v6514_v60  ;;  %vm6362_vm15 = vcmp.eq.s32.totalorder %v3697_v33, %v3374_v49  ;;  %v63_v32 = vld [vmem:[%s6345_s0 + $0x190] sm:$0xff] }
  0xb5   :  { %v3723_v42 = vpop.permute.xlu1 %376  ;;  %2846 = vmatprep.mubr.msk.f32.mxu1 %vm6361_vm3, %v6514_v60  ;;  %v185_v43 = vpop.permute.xlu0 %184 }
  0xb6   :  { %472 = vperm.xlu1 %3035, %v122_v37   ;;  %280 = vperm.xlu0 %3034, %v58_v38   ;;  %vm555_vm7 = vcmp.eq.s32.totalorder %v185_v43, %v3383_v52  ;;  %vm554_vm12 = vcmp.eq.s32.totalorder %v185_v43, %v3374_v49  ;;  %v128_v38 = vld [vmem:[%s6345_s0 + $0x398] sm:$0xff] }
  0xb7   :  { %v2465_v44 = vsel %vm555_vm7, 1.0, %v6448_v57  ;;  %2720 = vmatprep.mubr.msk.f32.mxu0 %vm555_vm7, %v6514_v60  ;;  %v2464_v45 = vsel %vm554_vm12, 1.0, %v6448_v57  ;;  %vm6363_vm7 = vcmp.eq.s32.totalorder %v3723_v42, %v3383_v52  ;;  %v64_v43 = vld [vmem:[%s6345_s0 + $0x198] sm:$0xff] }
  0xb8   :  { %v2307_v50 = vadd.f32 %v2465_v44, %v2306_v40  ;;  %2721 = vmatmul.mubr.msk.f32.gmra.mrb[26].mxu0 %vm554_vm12, %v6514_v60  ;;  %v2174_v51 = vadd.f32 %v2464_v45, %v2173_v41  ;;  %2847 = vmatmul.mubr.msk.f32.gmra.mrb[24].mxu1 %vm6362_vm15, %v6514_v60  ;;  %vm6364_vm15 = vcmp.eq.s32.totalorder %v3723_v42, %v3374_v49 }
  0xb9   :  { %v3749_v53 = vpop.permute.xlu1 %379  ;;  %2848 = vmatprep.mubr.msk.f32.mxu1 %vm6363_vm7, %v6514_v60  ;;  %v188_v54 = vpop.permute.xlu0 %187 }
  0xba   :  { %475 = vperm.xlu1 %3035, %v123_v46   ;;  %283 = vperm.xlu0 %3034, %v59_v48   ;;  %vm557_vm12 = vcmp.eq.s32.totalorder %v188_v54, %v3383_v52  ;;  %vm556_vm3 = vcmp.eq.s32.totalorder %v188_v54, %v3374_v49 }
  0xbb   :  { %v2467_v55 = vsel %vm557_vm12, 1.0, %v6448_v57  ;;  %2722 = vmatprep.mubr.msk.f32.mxu0 %vm557_vm12, %v6514_v60  ;;  %v2466_v56 = vsel %vm556_vm3, 1.0, %v6448_v57  ;;  %vm6365_vm12 = vcmp.eq.s32.totalorder %v3749_v53, %v3383_v52 }
  0xbc   :  { %v2308_v61 = vadd.f32 %v2467_v55, %v2307_v50  ;;  %2723 = vmatmul.mubr.msk.f32.gmra.mrb[28].mxu0 %vm556_vm3, %v6514_v60  ;;  %v2175_v62 = vadd.f32 %v2466_v56, %v2174_v51  ;;  %2849 = vmatmul.mubr.msk.f32.gmra.mrb[26].mxu1 %vm6364_vm15, %v6514_v60  ;;  %vm6366_vm15 = vcmp.eq.s32.totalorder %v3749_v53, %v3374_v49  ;;  %v129_v50 = vld [vmem:[%s6345_s0 + $0x3a0] sm:$0xff] }
  0xbd   :  { %v3775_v0 = vpop.permute.xlu1 %382  ;;  %2850 = vmatprep.mubr.msk.f32.mxu1 %vm6365_vm12, %v6514_v60  ;;  %v191_v1 = vpop.permute.xlu0 %190  ;;  %v65_v55 = vld [vmem:[%s6345_s0 + $0x1a0] sm:$0xff] }
  0xbe   :  { %vm558_vm3 = vcmp.eq.s32.totalorder %v191_v1, %v3374_v49  ;;  %vm559_vm7 = vcmp.eq.s32.totalorder %v191_v1, %v3383_v52  ;;  %478 = vperm.xlu1 %3035, %v124_v59   ;;  %286 = vperm.xlu0 %3034, %v60_v63   ;;  %vm6367_vm12 = vcmp.eq.s32.totalorder %v3775_v0, %v3383_v52  ;;  %v130_v63 = vld [vmem:[%s6345_s0 + $0x3a8] sm:$0xff] }
  0xbf   :  { %v2468_v4 = vsel %vm558_vm3, 1.0, %v6448_v57  ;;  %v2469_v7 = vsel %vm559_vm7, 1.0, %v6448_v57  ;;  %2724 = vmatprep.mubr.msk.f32.mxu0 %vm559_vm7, %v6514_v60 }
  0xc0   :  { %v2176_v10 = vadd.f32 %v2468_v4, %v2175_v62  ;;  %v2309_v11 = vadd.f32 %v2469_v7, %v2308_v61  ;;  %2725 = vmatmul.mubr.msk.f32.gmra.mrb[30].mxu0 %vm558_vm3, %v6514_v60  ;;  %2851 = vmatmul.mubr.msk.f32.gmra.mrb[28].mxu1 %vm6366_vm15, %v6514_v60  ;;  %vm6368_vm15 = vcmp.eq.s32.totalorder %v3775_v0, %v3374_v49  ;;  %v66_v7 = vld [vmem:[%s6345_s0 + $0x1a8] sm:$0xff] }
  0xc1   :  { %v3801_v13 = vpop.permute.xlu1 %385  ;;  %2852 = vmatprep.mubr.msk.f32.mxu1 %vm6367_vm12, %v6514_v60  ;;  %v194_v14 = vpop.permute.xlu0 %193 }
  0xc2   :  { %vm560_vm7 = vcmp.eq.s32.totalorder %v194_v14, %v3374_v49  ;;  %vm561_vm3 = vcmp.eq.s32.totalorder %v194_v14, %v3383_v52  ;;  %481 = vperm.xlu1 %3035, %v125_v9   ;;  %289 = vperm.xlu0 %3034, %v61_v12   ;;  %vm6369_vm12 = vcmp.eq.s32.totalorder %v3801_v13, %v3383_v52  ;;  %v131_v14 = vld [vmem:[%s6345_s0 + $0x3b0] sm:$0xff] }
  0xc3   :  { %v2470_v17 = vsel %vm560_vm7, 1.0, %v6448_v57  ;;  %v2471_v18 = vsel %vm561_vm3, 1.0, %v6448_v57  ;;  %2726 = vmatprep.mubr.msk.f32.mxu0 %vm561_vm3, %v6514_v60 }
  0xc4   :  { %v2177_v20 = vadd.f32 %v2470_v17, %v2176_v10  ;;  %v2310_v21 = vadd.f32 %v2471_v18, %v2309_v11  ;;  %2727 = vmatmul.mubr.msk.f32.gmra.mrb[32].mxu0 %vm560_vm7, %v6514_v60  ;;  %2853 = vmatmul.mubr.msk.f32.gmra.mrb[30].mxu1 %vm6368_vm15, %v6514_v60  ;;  %vm6370_vm15 = vcmp.eq.s32.totalorder %v3801_v13, %v3374_v49 }
  0xc5   :  { %v3827_v23 = vpop.permute.xlu1 %388  ;;  %2854 = vmatprep.mubr.msk.f32.mxu1 %vm6369_vm12, %v6514_v60  ;;  %v197_v26 = vpop.permute.xlu0 %196 }
  0xc6   :  { %vm562_vm3 = vcmp.eq.s32.totalorder %v197_v26, %v3374_v49  ;;  %vm563_vm7 = vcmp.eq.s32.totalorder %v197_v26, %v3383_v52  ;;  %484 = vperm.xlu1 %3035, %v126_v19   ;;  %292 = vperm.xlu0 %3034, %v62_v22   ;;  %vm6371_vm12 = vcmp.eq.s32.totalorder %v3827_v23, %v3383_v52  ;;  %v67_v19 = vld [vmem:[%s6345_s0 + $0x1b0] sm:$0xff] }
  0xc7   :  { %v2472_v27 = vsel %vm562_vm3, 1.0, %v6448_v57  ;;  %v2473_v5 = vsel %vm563_vm7, 1.0, %v6448_v57  ;;  %2728 = vmatprep.mubr.msk.f32.mxu0 %vm563_vm7, %v6514_v60 }
  0xc8   :  { %v2178_v29 = vadd.f32 %v2472_v27, %v2177_v20  ;;  %v2311_v30 = vadd.f32 %v2473_v5, %v2310_v21  ;;  %2729 = vmatmul.mubr.msk.f32.gmra.mrb[34].mxu0 %vm562_vm3, %v6514_v60  ;;  %2855 = vmatmul.mubr.msk.f32.gmra.mrb[32].mxu1 %vm6370_vm15, %v6514_v60  ;;  %vm6372_vm15 = vcmp.eq.s32.totalorder %v3827_v23, %v3374_v49  ;;  %v132_v27 = vld [vmem:[%s6345_s0 + $0x3b8] sm:$0xff] }
  0xc9   :  { %v3853_v34 = vpop.permute.xlu1 %391  ;;  %2856 = vmatprep.mubr.msk.f32.mxu1 %vm6371_vm12, %v6514_v60  ;;  %v200_v35 = vpop.permute.xlu0 %199 }
  0xca   :  { %vm564_vm7 = vcmp.eq.s32.totalorder %v200_v35, %v3374_v49  ;;  %vm565_vm3 = vcmp.eq.s32.totalorder %v200_v35, %v3383_v52  ;;  %487 = vperm.xlu1 %3035, %v127_v28   ;;  %295 = vperm.xlu0 %3034, %v63_v32   ;;  %vm6373_vm12 = vcmp.eq.s32.totalorder %v3853_v34, %v3383_v52 }
  0xcb   :  { %v2474_v36 = vsel %vm564_vm7, 1.0, %v6448_v57  ;;  %v2475_v37 = vsel %vm565_vm3, 1.0, %v6448_v57  ;;  %2730 = vmatprep.mubr.msk.f32.mxu0 %vm565_vm3, %v6514_v60 }
  0xcc   :  { %v2179_v40 = vadd.f32 %v2474_v36, %v2178_v29  ;;  %v2312_v41 = vadd.f32 %v2475_v37, %v2311_v30  ;;  %2731 = vmatmul.mubr.msk.f32.gmra.mrb[36].mxu0 %vm564_vm7, %v6514_v60  ;;  %2857 = vmatmul.mubr.msk.f32.gmra.mrb[34].mxu1 %vm6372_vm15, %v6514_v60  ;;  %vm6374_vm15 = vcmp.eq.s32.totalorder %v3853_v34, %v3374_v49  ;;  %v68_v29 = vld [vmem:[%s6345_s0 + $0x1b8] sm:$0xff]  ;;  %v133_v37 = vld [vmem:[%s6345_s0 + $0x3c0] sm:$0xff] }
  0xcd   :  { %v3879_v44 = vpop.permute.xlu1 %394  ;;  %2858 = vmatprep.mubr.msk.f32.mxu1 %vm6373_vm12, %v6514_v60  ;;  %v203_v45 = vpop.permute.xlu0 %202 }
  0xce   :  { %vm566_vm3 = vcmp.eq.s32.totalorder %v203_v45, %v3374_v49  ;;  %vm567_vm7 = vcmp.eq.s32.totalorder %v203_v45, %v3383_v52  ;;  %490 = vperm.xlu1 %3035, %v128_v38   ;;  %298 = vperm.xlu0 %3034, %v64_v43   ;;  %vm6375_vm12 = vcmp.eq.s32.totalorder %v3879_v44, %v3383_v52 }
  0xcf   :  { %v2476_v46 = vsel %vm566_vm3, 1.0, %v6448_v57  ;;  %v2477_v48 = vsel %vm567_vm7, 1.0, %v6448_v57  ;;  %2732 = vmatprep.mubr.msk.f32.mxu0 %vm567_vm7, %v6514_v60 }
  0xd0   :  { %v2180_v51 = vadd.f32 %v2476_v46, %v2179_v40  ;;  %v2313_v54 = vadd.f32 %v2477_v48, %v2312_v41  ;;  %2733 = vmatmul.mubr.msk.f32.gmra.mrb[38].mxu0 %vm566_vm3, %v6514_v60  ;;  %2859 = vmatmul.mubr.msk.f32.gmra.mrb[36].mxu1 %vm6374_vm15, %v6514_v60  ;;  %vm6376_vm15 = vcmp.eq.s32.totalorder %v3879_v44, %v3374_v49  ;;  %v69_v41 = vld [vmem:[%s6345_s0 + $0x1c0] sm:$0xff] }
  0xd1   :  { %v3905_v56 = vpop.permute.xlu1 %397  ;;  %2860 = vmatprep.mubr.msk.f32.mxu1 %vm6375_vm12, %v6514_v60  ;;  %v206_v59 = vpop.permute.xlu0 %205 }
  0xd2   :  { %vm568_vm7 = vcmp.eq.s32.totalorder %v206_v59, %v3374_v49  ;;  %vm569_vm3 = vcmp.eq.s32.totalorder %v206_v59, %v3383_v52  ;;  %493 = vperm.xlu1 %3035, %v129_v50   ;;  %301 = vperm.xlu0 %3034, %v65_v55   ;;  %vm6377_vm12 = vcmp.eq.s32.totalorder %v3905_v56, %v3383_v52  ;;  %v134_v50 = vld [vmem:[%s6345_s0 + $0x3c8] sm:$0xff] }
  0xd3   :  { %v2478_v61 = vsel %vm568_vm7, 1.0, %v6448_v57  ;;  %v2479_v62 = vsel %vm569_vm3, 1.0, %v6448_v57  ;;  %2734 = vmatprep.mubr.msk.f32.mxu0 %vm569_vm3, %v6514_v60  ;;  %v70_v55 = vld [vmem:[%s6345_s0 + $0x1c8] sm:$0xff] }
  0xd4   :  { %v2181_v1 = vadd.f32 %v2478_v61, %v2180_v51  ;;  %v2314_v4 = vadd.f32 %v2479_v62, %v2313_v54  ;;  %2735 = vmatmul.mubr.msk.f32.gmra.mrb[40].mxu0 %vm568_vm7, %v6514_v60  ;;  %2861 = vmatmul.mubr.msk.f32.gmra.mrb[38].mxu1 %vm6376_vm15, %v6514_v60  ;;  %vm6378_vm15 = vcmp.eq.s32.totalorder %v3905_v56, %v3374_v49 }
  0xd5   :  { %v3931_v9 = vpop.permute.xlu1 %400  ;;  %2862 = vmatprep.mubr.msk.f32.mxu1 %vm6377_vm12, %v6514_v60  ;;  %v209_v10 = vpop.permute.xlu0 %208 }
  0xd6   :  { %vm570_vm3 = vcmp.eq.s32.totalorder %v209_v10, %v3374_v49  ;;  %vm571_vm7 = vcmp.eq.s32.totalorder %v209_v10, %v3383_v52  ;;  %496 = vperm.xlu1 %3035, %v130_v63   ;;  %304 = vperm.xlu0 %3034, %v66_v7   ;;  %vm6379_vm12 = vcmp.eq.s32.totalorder %v3931_v9, %v3383_v52  ;;  %v71_v10 = vld [vmem:[%s6345_s0 + $0x1d0] sm:$0xff] }
  0xd7   :  { %v2480_v11 = vsel %vm570_vm3, 1.0, %v6448_v57  ;;  %v2481_v12 = vsel %vm571_vm7, 1.0, %v6448_v57  ;;  %2736 = vmatprep.mubr.msk.f32.mxu0 %vm571_vm7, %v6514_v60 }
  0xd8   :  { %v2182_v17 = vadd.f32 %v2480_v11, %v2181_v1  ;;  %v2315_v18 = vadd.f32 %v2481_v12, %v2314_v4  ;;  %2737 = vmatmul.mubr.msk.f32.gmra.mrb[42].mxu0 %vm570_vm3, %v6514_v60  ;;  %2863 = vmatmul.mubr.msk.f32.gmra.mrb[40].mxu1 %vm6378_vm15, %v6514_v60  ;;  %vm6380_vm15 = vcmp.eq.s32.totalorder %v3931_v9, %v3374_v49  ;;  %v135_v1 = vld [vmem:[%s6345_s0 + $0x3d0] sm:$0xff] }
  0xd9   :  { %v3957_v20 = vpop.permute.xlu1 %403  ;;  %2864 = vmatprep.mubr.msk.f32.mxu1 %vm6379_vm12, %v6514_v60  ;;  %v212_v21 = vpop.permute.xlu0 %211 }
  0xda   :  { %vm572_vm7 = vcmp.eq.s32.totalorder %v212_v21, %v3374_v49  ;;  %vm573_vm3 = vcmp.eq.s32.totalorder %v212_v21, %v3383_v52  ;;  %499 = vperm.xlu1 %3035, %v131_v14   ;;  %307 = vperm.xlu0 %3034, %v67_v19   ;;  %vm6381_vm12 = vcmp.eq.s32.totalorder %v3957_v20, %v3383_v52 }
  0xdb   :  { %v2482_v22 = vsel %vm572_vm7, 1.0, %v6448_v57  ;;  %v2483_v26 = vsel %vm573_vm3, 1.0, %v6448_v57  ;;  %2738 = vmatprep.mubr.msk.f32.mxu0 %vm573_vm3, %v6514_v60 }
  0xdc   :  { %v2183_v5 = vadd.f32 %v2482_v22, %v2182_v17  ;;  %v2316_v28 = vadd.f32 %v2483_v26, %v2315_v18  ;;  %2739 = vmatmul.mubr.msk.f32.gmra.mrb[44].mxu0 %vm572_vm7, %v6514_v60  ;;  %2865 = vmatmul.mubr.msk.f32.gmra.mrb[42].mxu1 %vm6380_vm15, %v6514_v60  ;;  %vm6382_vm15 = vcmp.eq.s32.totalorder %v3957_v20, %v3374_v49  ;;  %v136_v18 = vld [vmem:[%s6345_s0 + $0x3d8] sm:$0xff] }
  0xdd   :  { %v3983_v30 = vpop.permute.xlu1 %406  ;;  %2866 = vmatprep.mubr.msk.f32.mxu1 %vm6381_vm12, %v6514_v60  ;;  %v215_v32 = vpop.permute.xlu0 %214  ;;  %v72_v22 = vld [vmem:[%s6345_s0 + $0x1d8] sm:$0xff] }
  0xde   :  { %vm574_vm3 = vcmp.eq.s32.totalorder %v215_v32, %v3374_v49  ;;  %vm575_vm7 = vcmp.eq.s32.totalorder %v215_v32, %v3383_v52  ;;  %502 = vperm.xlu1 %3035, %v132_v27   ;;  %310 = vperm.xlu0 %3034, %v68_v29   ;;  %vm6383_vm12 = vcmp.eq.s32.totalorder %v3983_v30, %v3383_v52  ;;  %v137_v29 = vld [vmem:[%s6345_s0 + $0x3e0] sm:$0xff] }
  0xdf   :  { %v2484_v35 = vsel %vm574_vm3, 1.0, %v6448_v57  ;;  %v2485_v36 = vsel %vm575_vm7, 1.0, %v6448_v57  ;;  %2740 = vmatprep.mubr.msk.f32.mxu0 %vm575_vm7, %v6514_v60 }
  0xe0   :  { %v2184_v38 = vadd.f32 %v2484_v35, %v2183_v5  ;;  %v2317_v40 = vadd.f32 %v2485_v36, %v2316_v28  ;;  %2741 = vmatmul.mubr.msk.f32.gmra.mrb[46].mxu0 %vm574_vm3, %v6514_v60  ;;  %2867 = vmatmul.mubr.msk.f32.gmra.mrb[44].mxu1 %vm6382_vm15, %v6514_v60  ;;  %vm6384_vm15 = vcmp.eq.s32.totalorder %v3983_v30, %v3374_v49  ;;  %v73_v36 = vld [vmem:[%s6345_s0 + $0x1e0] sm:$0xff] }
  0xe1   :  { %v4009_v43 = vpop.permute.xlu1 %409  ;;  %2868 = vmatprep.mubr.msk.f32.mxu1 %vm6383_vm12, %v6514_v60  ;;  %v218_v45 = vpop.permute.xlu0 %217 }
  0xe2   :  { %vm576_vm7 = vcmp.eq.s32.totalorder %v218_v45, %v3374_v49  ;;  %vm577_vm3 = vcmp.eq.s32.totalorder %v218_v45, %v3383_v52  ;;  %505 = vperm.xlu1 %3035, %v133_v37   ;;  %313 = vperm.xlu0 %3034, %v69_v41   ;;  %vm6385_vm12 = vcmp.eq.s32.totalorder %v4009_v43, %v3383_v52  ;;  %v138_v45 = vld [vmem:[%s6345_s0 + $0x3e8] sm:$0xff] }
  0xe3   :  { %v2486_v46 = vsel %vm576_vm7, 1.0, %v6448_v57  ;;  %v2487_v48 = vsel %vm577_vm3, 1.0, %v6448_v57  ;;  %2742 = vmatprep.mubr.msk.f32.mxu0 %vm577_vm3, %v6514_v60 }
  0xe4   :  { %v2185_v51 = vadd.f32 %v2486_v46, %v2184_v38  ;;  %v2318_v54 = vadd.f32 %v2487_v48, %v2317_v40  ;;  %2743 = vmatmul.mubr.msk.f32.gmra.mrb[48].mxu0 %vm576_vm7, %v6514_v60  ;;  %2869 = vmatmul.mubr.msk.f32.gmra.mrb[46].mxu1 %vm6384_vm15, %v6514_v60  ;;  %vm6386_vm15 = vcmp.eq.s32.totalorder %v4009_v43, %v3374_v49 }
  0xe5   :  { %v4035_v59 = vpop.permute.xlu1 %412  ;;  %2870 = vmatprep.mubr.msk.f32.mxu1 %vm6385_vm12, %v6514_v60  ;;  %v221_v61 = vpop.permute.xlu0 %220 }
  0xe6   :  { %vm578_vm3 = vcmp.eq.s32.totalorder %v221_v61, %v3374_v49  ;;  %vm579_vm7 = vcmp.eq.s32.totalorder %v221_v61, %v3383_v52  ;;  %508 = vperm.xlu1 %3035, %v134_v50   ;;  %316 = vperm.xlu0 %3034, %v70_v55   ;;  %vm6387_vm12 = vcmp.eq.s32.totalorder %v4035_v59, %v3383_v52  ;;  %v74_v50 = vld [vmem:[%s6345_s0 + $0x1e8] sm:$0xff] }
  0xe7   :  { %v2488_v62 = vsel %vm578_vm3, 1.0, %v6448_v57  ;;  %v2489_v63 = vsel %vm579_vm7, 1.0, %v6448_v57  ;;  %2744 = vmatprep.mubr.msk.f32.mxu0 %vm579_vm7, %v6514_v60 }
  0xe8   :  { %v2186_v4 = vadd.f32 %v2488_v62, %v2185_v51  ;;  %v2319_v7 = vadd.f32 %v2489_v63, %v2318_v54  ;;  %2745 = vmatmul.mubr.msk.f32.gmra.mrb[50].mxu0 %vm578_vm3, %v6514_v60  ;;  %2871 = vmatmul.mubr.msk.f32.gmra.mrb[48].mxu1 %vm6386_vm15, %v6514_v60  ;;  %vm6388_vm15 = vcmp.eq.s32.totalorder %v4035_v59, %v3374_v49  ;;  %v139_v62 = vld [vmem:[%s6345_s0 + $0x3f0] sm:$0xff] }
  0xe9   :  { %v4061_v11 = vpop.permute.xlu1 %415  ;;  %2872 = vmatprep.mubr.msk.f32.mxu1 %vm6387_vm12, %v6514_v60  ;;  %v224_v12 = vpop.permute.xlu0 %223 }
  0xea   :  { %vm580_vm7 = vcmp.eq.s32.totalorder %v224_v12, %v3374_v49  ;;  %vm581_vm3 = vcmp.eq.s32.totalorder %v224_v12, %v3383_v52  ;;  %511 = vperm.xlu1 %3035, %v135_v1   ;;  %319 = vperm.xlu0 %3034, %v71_v10   ;;  %vm6389_vm12 = vcmp.eq.s32.totalorder %v4061_v11, %v3383_v52 }
  0xeb   :  { %v2490_v14 = vsel %vm580_vm7, 1.0, %v6448_v57  ;;  %v2491_v17 = vsel %vm581_vm3, 1.0, %v6448_v57  ;;  %2746 = vmatprep.mubr.msk.f32.mxu0 %vm581_vm3, %v6514_v60 }
  0xec   :  { %v2187_v19 = vadd.f32 %v2490_v14, %v2186_v4  ;;  %v2320_v21 = vadd.f32 %v2491_v17, %v2319_v7  ;;  %2747 = vmatmul.mubr.msk.f32.gmra.mrb[52].mxu0 %vm580_vm7, %v6514_v60  ;;  %2873 = vmatmul.mubr.msk.f32.gmra.mrb[50].mxu1 %vm6388_vm15, %v6514_v60  ;;  %vm6390_vm15 = vcmp.eq.s32.totalorder %v4061_v11, %v3374_v49  ;;  %v75_v4 = vld [vmem:[%s6345_s0 + $0x1f0] sm:$0xff]  ;;  %v140_v17 = vld [vmem:[%s6345_s0 + $0x3f8] sm:$0xff] }
  0xed   :  { %v4087_v26 = vpop.permute.xlu1 %418  ;;  %2874 = vmatprep.mubr.msk.f32.mxu1 %vm6389_vm12, %v6514_v60  ;;  %v227_v27 = vpop.permute.xlu0 %226 }
  0xee   :  { %vm582_vm3 = vcmp.eq.s32.totalorder %v227_v27, %v3374_v49  ;;  %vm583_vm7 = vcmp.eq.s32.totalorder %v227_v27, %v3383_v52  ;;  %514 = vperm.xlu1 %3035, %v136_v18   ;;  %322 = vperm.xlu0 %3034, %v72_v22   ;;  %vm6391_vm12 = vcmp.eq.s32.totalorder %v4087_v26, %v3383_v52 }
  0xef   :  { %v2492_v5 = vsel %vm582_vm3, 1.0, %v6448_v57  ;;  %v2493_v28 = vsel %vm583_vm7, 1.0, %v6448_v57  ;;  %2748 = vmatprep.mubr.msk.f32.mxu0 %vm583_vm7, %v6514_v60 }
  0xf0   :  { %v2188_v32 = vadd.f32 %v2492_v5, %v2187_v19  ;;  %v2321_v35 = vadd.f32 %v2493_v28, %v2320_v21  ;;  %2749 = vmatmul.mubr.msk.f32.gmra.mrb[54].mxu0 %vm582_vm3, %v6514_v60  ;;  %2875 = vmatmul.mubr.msk.f32.gmra.mrb[52].mxu1 %vm6390_vm15, %v6514_v60  ;;  %vm6392_vm15 = vcmp.eq.s32.totalorder %v4087_v26, %v3374_v49  ;;  %v76_v21 = vld [vmem:[%s6345_s0 + $0x1f8] sm:$0xff] }
  0xf1   :  { %v4113_v37 = vpop.permute.xlu1 %421  ;;  %2876 = vmatprep.mubr.msk.f32.mxu1 %vm6391_vm12, %v6514_v60  ;;  %v230_v38 = vpop.permute.xlu0 %229 }
  0xf2   :  { %vm584_vm7 = vcmp.eq.s32.totalorder %v230_v38, %v3374_v49  ;;  %vm585_vm3 = vcmp.eq.s32.totalorder %v230_v38, %v3383_v52  ;;  %517 = vperm.xlu1 %3035, %v137_v29   ;;  %325 = vperm.xlu0 %3034, %v73_v36   ;;  %vm6393_vm12 = vcmp.eq.s32.totalorder %v4113_v37, %v3383_v52 }
  0xf3   :  { %v2494_v40 = vsel %vm584_vm7, 1.0, %v6448_v57  ;;  %v2495_v41 = vsel %vm585_vm3, 1.0, %v6448_v57  ;;  %2750 = vmatprep.mubr.msk.f32.mxu0 %vm585_vm3, %v6514_v60 }
  0xf4   :  { %v2189_v46 = vadd.f32 %v2494_v40, %v2188_v32  ;;  %v2322_v48 = vadd.f32 %v2495_v41, %v2321_v35  ;;  %2751 = vmatmul.mubr.msk.f32.gmra.mrb[56].mxu0 %vm584_vm7, %v6514_v60  ;;  %2877 = vmatmul.mubr.msk.f32.gmra.mrb[54].mxu1 %vm6392_vm15, %v6514_v60  ;;  %vm6394_vm15 = vcmp.eq.s32.totalorder %v4113_v37, %v3374_v49 }
  0xf5   :  { %v4139_v51 = vpop.permute.xlu1 %424  ;;  %2878 = vmatprep.mubr.msk.f32.mxu1 %vm6393_vm12, %v6514_v60  ;;  %v233_v54 = vpop.permute.xlu0 %232 }
  0xf6   :  { %vm586_vm3 = vcmp.eq.s32.totalorder %v233_v54, %v3374_v49  ;;  %vm587_vm7 = vcmp.eq.s32.totalorder %v233_v54, %v3383_v52  ;;  %520 = vperm.xlu1 %3035, %v138_v45   ;;  %328 = vperm.xlu0 %3034, %v74_v50   ;;  %vm6395_vm12 = vcmp.eq.s32.totalorder %v4139_v51, %v3383_v52 }
  0xf7   :  { %v2496_v55 = vsel %vm586_vm3, 1.0, %v6448_v57  ;;  %v2497_v61 = vsel %vm587_vm7, 1.0, %v6448_v57  ;;  %2752 = vmatprep.mubr.msk.f32.mxu0 %vm587_vm7, %v6514_v60 }
  0xf8   :  { %v2190_v63 = vadd.f32 %v2496_v55, %v2189_v46  ;;  %v2323_v1 = vadd.f32 %v2497_v61, %v2322_v48  ;;  %2753 = vmatmul.mubr.msk.f32.gmra.mrb[58].mxu0 %vm586_vm3, %v6514_v60  ;;  %2879 = vmatmul.mubr.msk.f32.gmra.mrb[56].mxu1 %vm6394_vm15, %v6514_v60  ;;  %vm6396_vm15 = vcmp.eq.s32.totalorder %v4139_v51, %v3374_v49 }
  0xf9   :  { %v4165_v7 = vpop.permute.xlu1 %427  ;;  %2880 = vmatprep.mubr.msk.f32.mxu1 %vm6395_vm12, %v6514_v60  ;;  %v236_v10 = vpop.permute.xlu0 %235 }
  0xfa   :  { %vm588_vm7 = vcmp.eq.s32.totalorder %v236_v10, %v3374_v49  ;;  %vm589_vm3 = vcmp.eq.s32.totalorder %v236_v10, %v3383_v52  ;;  %523 = vperm.xlu1 %3035, %v139_v62   ;;  %331 = vperm.xlu0 %3034, %v75_v4   ;;  %vm6398_vm12 = vcmp.eq.s32.totalorder %v4165_v7, %v3383_v52 }
  0xfb   :  { %v2498_v12 = vsel %vm588_vm7, 1.0, %v6448_v57  ;;  %v2499_v14 = vsel %vm589_vm3, 1.0, %v6448_v57  ;;  %2754 = vmatprep.mubr.msk.f32.mxu0 %vm589_vm3, %v6514_v60 }
  0xfc   :  { %v2191_v18 = vadd.f32 %v2498_v12, %v2190_v63  ;;  %v2324_v19 = vadd.f32 %v2499_v14, %v2323_v1  ;;  %2755 = vmatmul.mubr.msk.f32.gmra.mrb[60].mxu0 %vm588_vm7, %v6514_v60  ;;  %2881 = vmatmul.mubr.msk.f32.gmra.mrb[58].mxu1 %vm6396_vm15, %v6514_v60  ;;  %vm6399_vm15 = vcmp.eq.s32.totalorder %v4165_v7, %v3374_v49 }
  0xfd   :  { %v4191_v22 = vpop.permute.xlu1 %430  ;;  %2882 = vmatprep.mubr.msk.f32.mxu1 %vm6398_vm12, %v6514_v60  ;;  %v239_v27 = vpop.permute.xlu0 %238 }
  0xfe   :  { %vm590_vm3 = vcmp.eq.s32.totalorder %v239_v27, %v3374_v49  ;;  %vm591_vm7 = vcmp.eq.s32.totalorder %v239_v27, %v3383_v52  ;;  %526 = vperm.xlu1 %3035, %v140_v17   ;;  %334 = vperm.xlu0 %3034, %v76_v21   ;;  %vm6400_vm0 = vcmp.eq.s32.totalorder %v4191_v22, %v3383_v52 }
  0xff   :  { %v2500_v5 = vsel %vm590_vm3, 1.0, %v6448_v57  ;;  %v2501_v28 = vsel %vm591_vm7, 1.0, %v6448_v57  ;;  %2756 = vmatprep.mubr.msk.f32.mxu0 %vm591_vm7, %v6514_v60  ;;  %vm6403_vm12 = vcmp.eq.s32.totalorder %v4191_v22, %v3374_v49 }
 0x100   :  { %v4206_v29 = vadd.f32 %v2500_v5, %v2191_v18  ;;  %v4208_v32 = vadd.f32 %v2501_v28, %v2324_v19  ;;  %2757 = vmatmul.mubr.msk.f32.gmra.mrb[62].mxu0 %vm590_vm3, %v6514_v60  ;;  %2883 = vmatmul.mubr.msk.f32.gmra.mrb[60].mxu1 %vm6399_vm15, %v6514_v60 }
 0x101   :  { %v4215_v35 = vpop.permute.xlu1 %433  ;;  %2884 = vmatprep.mubr.msk.f32.mxu1 %vm6400_vm0, %v6514_v60  ;;  %v4221_v36 = vpop.permute.xlu0 %241 }
 0x102   :  { %vm592_vm7 = vcmp.eq.s32.totalorder %v4221_v36, %v3374_v49  ;;  %vm593_vm3 = vcmp.eq.s32.totalorder %v4221_v36, %v3383_v52  ;;  %vm6404_vm15 = vcmp.eq.s32.totalorder %v4215_v35, %v3383_v52  ;;  %vm6407_vm8 = vcmp.eq.s32.totalorder %v4215_v35, %v3374_v49 }
 0x103   :  { %2758 = vmatprep.mubr.msk.f32.mxu0 %vm593_vm3, %v6514_v60 }
 0x104   :  { %2759 = vmatmul.mubr.msk.f32.gmra.mrb[64].mxu0 %vm592_vm7, %v6514_v60  ;;  %2885 = vmatmul.mubr.msk.f32.gmra.mrb[62].mxu1 %vm6403_vm12, %v6514_v60 }
 0x105   :  { %v4243_v38 = vpop.permute.xlu1 %436  ;;  %2886 = vmatprep.mubr.msk.f32.mxu1 %vm6404_vm15, %v6514_v60  ;;  %v4249_v40 = vpop.permute.xlu0 %244 }
 0x106   :  { %6524 = vst [vmem:[#allocation2_spill] sm:$0xff] %v4243_v38  ;;  %vm594_vm0 = vcmp.eq.s32.totalorder %v4249_v40, %v3374_v49  ;;  %vm595_vm11 = vcmp.eq.s32.totalorder %v4249_v40, %v3383_v52  ;;  %vm6408_vm12 = vcmp.eq.s32.totalorder %v4243_v38, %v3383_v52  ;;  %vm6411_vm1 = vcmp.eq.s32.totalorder %v4243_v38, %v3374_v49 }
 0x107   :  { %2760 = vmatprep.mubr.msk.f32.mxu0 %vm595_vm11, %v6514_v60 }
 0x108   :  { %2761 = vmatmul.mubr.msk.f32.gmra.mrb[66].mxu0 %vm594_vm0, %v6514_v60  ;;  %2887 = vmatmul.mubr.msk.f32.gmra.mrb[64].mxu1 %vm6407_vm8, %v6514_v60 }
 0x109   :  { %v4271_v41 = vpop.permute.xlu1 %439  ;;  %2888 = vmatprep.mubr.msk.f32.mxu1 %vm6408_vm12, %v6514_v60  ;;  %v4277_v45 = vpop.permute.xlu0 %247 }
 0x10a   :  { %6525 = vst [vmem:[#allocation3_spill] sm:$0xff] %v4271_v41  ;;  %vm596_vm15 = vcmp.eq.s32.totalorder %v4277_v45, %v3374_v49  ;;  %vm597_vm2 = vcmp.eq.s32.totalorder %v4277_v45, %v3383_v52  ;;  %vm6412_vm8 = vcmp.eq.s32.totalorder %v4271_v41, %v3383_v52  ;;  %vm6415_vm13 = vcmp.eq.s32.totalorder %v4271_v41, %v3374_v49 }
 0x10b   :  { %2762 = vmatprep.mubr.msk.f32.mxu0 %vm597_vm2, %v6514_v60 }
 0x10c   :  { %2763 = vmatmul.mubr.msk.f32.gmra.mrb[68].mxu0 %vm596_vm15, %v6514_v60  ;;  %2889 = vmatmul.mubr.msk.f32.gmra.mrb[66].mxu1 %vm6411_vm1, %v6514_v60 }
 0x10d   :  { %v4299_v46 = vpop.permute.xlu1 %442  ;;  %2890 = vmatprep.mubr.msk.f32.mxu1 %vm6412_vm8, %v6514_v60  ;;  %v4305_v48 = vpop.permute.xlu0 %250 }
 0x10e   :  { %6526 = vst [vmem:[#allocation4_spill] sm:$0xff] %v4299_v46  ;;  %vm598_vm12 = vcmp.eq.s32.totalorder %v4305_v48, %v3374_v49  ;;  %vm599_vm14 = vcmp.eq.s32.totalorder %v4305_v48, %v3383_v52  ;;  %vm6416_vm1 = vcmp.eq.s32.totalorder %v4299_v46, %v3383_v52  ;;  %vm6419_vm9 = vcmp.eq.s32.totalorder %v4299_v46, %v3374_v49 }
 0x10f   :  { %2764 = vmatprep.mubr.msk.f32.mxu0 %vm599_vm14, %v6514_v60 }
 0x110   :  { %2765 = vmatmul.mubr.msk.f32.gmra.mrb[70].mxu0 %vm598_vm12, %v6514_v60  ;;  %2891 = vmatmul.mubr.msk.f32.gmra.mrb[68].mxu1 %vm6415_vm13, %v6514_v60 }
 0x111   :  { %v4327_v50 = vpop.permute.xlu1 %445  ;;  %2892 = vmatprep.mubr.msk.f32.mxu1 %vm6416_vm1, %v6514_v60  ;;  %v4333_v54 = vpop.permute.xlu0 %253 }
 0x112   :  { %6527 = vst [vmem:[#allocation5_spill] sm:$0xff] %v4327_v50  ;;  %vm600_vm8 = vcmp.eq.s32.totalorder %v4333_v54, %v3374_v49  ;;  %vm601_vm10 = vcmp.eq.s32.totalorder %v4333_v54, %v3383_v52  ;;  %vm6420_vm13 = vcmp.eq.s32.totalorder %v4327_v50, %v3383_v52  ;;  %vm6423_vm5 = vcmp.eq.s32.totalorder %v4327_v50, %v3374_v49 }
 0x113   :  { %2766 = vmatprep.mubr.msk.f32.mxu0 %vm601_vm10, %v6514_v60 }
 0x114   :  { %2767 = vmatmul.mubr.msk.f32.gmra.mrb[72].mxu0 %vm600_vm8, %v6514_v60  ;;  %2893 = vmatmul.mubr.msk.f32.gmra.mrb[70].mxu1 %vm6419_vm9, %v6514_v60 }
 0x115   :  { %v4355_v55 = vpop.permute.xlu1 %448  ;;  %2894 = vmatprep.mubr.msk.f32.mxu1 %vm6420_vm13, %v6514_v60  ;;  %v4361_v61 = vpop.permute.xlu0 %256 }
 0x116   :  { %6528 = vst [vmem:[#allocation6_spill] sm:$0xff] %v4355_v55  ;;  %vm602_vm1 = vcmp.eq.s32.totalorder %v4361_v61, %v3374_v49  ;;  %vm6422_vm6 = vcmp.eq.s32.totalorder %v4361_v61, %v3383_v52  ;;  %vm6424_vm9 = vcmp.eq.s32.totalorder %v4355_v55, %v3383_v52 }
 0x117   :  { %2768 = vmatprep.mubr.msk.f32.mxu0 %vm6422_vm6, %v6514_v60  ;;  %vm6427_vm6 = vcmp.eq.s32.totalorder %v4355_v55, %v3374_v49 }
 0x118   :  { %2769 = vmatmul.mubr.msk.f32.gmra.mrb[74].mxu0 %vm602_vm1, %v6514_v60  ;;  %2895 = vmatmul.mubr.msk.f32.gmra.mrb[72].mxu1 %vm6423_vm5, %v6514_v60 }
 0x119   :  { %v4383_v62 = vpop.permute.xlu1 %451  ;;  %2896 = vmatprep.mubr.msk.f32.mxu1 %vm6424_vm9, %v6514_v60  ;;  %v4389_v63 = vpop.permute.xlu0 %259 }
 0x11a   :  { %6529 = vst [vmem:[#allocation7_spill] sm:$0xff] %v4383_v62  ;;  %vm6426_vm13 = vcmp.eq.s32.totalorder %v4389_v63, %v3374_v49  ;;  %vm6425_vm4 = vcmp.eq.s32.totalorder %v4389_v63, %v3383_v52  ;;  %vm6428_vm5 = vcmp.eq.s32.totalorder %v4383_v62, %v3383_v52 }
 0x11b   :  { %2770 = vmatprep.mubr.msk.f32.mxu0 %vm6425_vm4, %v6514_v60 }
 0x11c   :  { %2771 = vmatmul.mubr.msk.f32.gmra.mrb[76].mxu0 %vm6426_vm13, %v6514_v60  ;;  %2897 = vmatmul.mubr.msk.f32.gmra.mrb[74].mxu1 %vm6427_vm6, %v6514_v60  ;;  %vm6431_vm13 = vcmp.eq.s32.totalorder %v4383_v62, %v3374_v49 }
 0x11d   :  { %v4411_v1 = vpop.permute.xlu1 %454  ;;  %2898 = vmatprep.mubr.msk.f32.mxu1 %vm6428_vm5, %v6514_v60  ;;  %v4417_v4 = vpop.permute.xlu0 %262 }
 0x11e   :  { %6530 = vst [vmem:[#allocation8_spill] sm:$0xff] %v4411_v1  ;;  %vm6430_vm9 = vcmp.eq.s32.totalorder %v4417_v4, %v3374_v49  ;;  %vm6429_vm4 = vcmp.eq.s32.totalorder %v4417_v4, %v3383_v52  ;;  %vm6432_vm6 = vcmp.eq.s32.totalorder %v4411_v1, %v3383_v52 }
 0x11f   :  { %2772 = vmatprep.mubr.msk.f32.mxu0 %vm6429_vm4, %v6514_v60 }
 0x120   :  { %2773 = vmatmul.mubr.msk.f32.gmra.mrb[78].mxu0 %vm6430_vm9, %v6514_v60  ;;  %2899 = vmatmul.mubr.msk.f32.gmra.mrb[76].mxu1 %vm6431_vm13, %v6514_v60  ;;  %vm6435_vm9 = vcmp.eq.s32.totalorder %v4411_v1, %v3374_v49 }
 0x121   :  { %v4439_v10 = vpop.permute.xlu1 %457  ;;  %2900 = vmatprep.mubr.msk.f32.mxu1 %vm6432_vm6, %v6514_v60  ;;  %v4445_v12 = vpop.permute.xlu0 %265 }
 0x122   :  { %6531 = vst [vmem:[#allocation9_spill] sm:$0xff] %v4439_v10  ;;  %vm6434_vm5 = vcmp.eq.s32.totalorder %v4445_v12, %v3374_v49  ;;  %vm6433_vm4 = vcmp.eq.s32.totalorder %v4445_v12, %v3383_v52  ;;  %vm6436_vm13 = vcmp.eq.s32.totalorder %v4439_v10, %v3383_v52 }
 0x123   :  { %2774 = vmatprep.mubr.msk.f32.mxu0 %vm6433_vm4, %v6514_v60 }
 0x124   :  { %2775 = vmatmul.mubr.msk.f32.gmra.mrb[80].mxu0 %vm6434_vm5, %v6514_v60  ;;  %2901 = vmatmul.mubr.msk.f32.gmra.mrb[78].mxu1 %vm6435_vm9, %v6514_v60  ;;  %vm6439_vm5 = vcmp.eq.s32.totalorder %v4439_v10, %v3374_v49  ;;  %v6538_v10 = vmov 0.0  }
 0x125   :  { %v4467_v14 = vpop.permute.xlu1 %460  ;;  %2902 = vmatprep.mubr.msk.f32.mxu1 %vm6436_vm13, %v6514_v60  ;;  %v4473_v17 = vpop.permute.xlu0 %268  ;;  %v2502_v1 = vsel %vm592_vm7, 1.0, %v6538_v10  ;;  %v2504_v36 = vsel %vm594_vm0, 1.0, %v6538_v10  ;;  %v2505_v55 = vsel %vm595_vm11, 1.0, %v6538_v10  ;;  %v2506_v40 = vsel %vm596_vm15, 1.0, %v6538_v10 }
 0x126   :  { %6532 = vst [vmem:[#allocation10_spill] sm:$0xff] %v4467_v14  ;;  %vm6438_vm6 = vcmp.eq.s32.totalorder %v4473_v17, %v3374_v49  ;;  %vm6437_vm4 = vcmp.eq.s32.totalorder %v4473_v17, %v3383_v52  ;;  %vm6440_vm9 = vcmp.eq.s32.totalorder %v4467_v14, %v3383_v52  ;;  %v2507_v38 = vsel %vm597_vm2, 1.0, %v6538_v10 }
 0x127   :  { %2776 = vmatprep.mubr.msk.f32.mxu0 %vm6437_vm4, %v6514_v60  ;;  %v2509_v45 = vsel %vm599_vm14, 1.0, %v6538_v10  ;;  %v2510_v48 = vsel %vm600_vm8, 1.0, %v6538_v10  ;;  %v2512_v54 = vsel %vm602_vm1, 1.0, %v6538_v10  ;;  %vm6540_vm1 = vcmp.eq.s32.totalorder %v4389_v63, %v3374_v49 }
 0x128   :  { %2777 = vmatmul.mubr.msk.f32.gmra.mrb[82].mxu0 %vm6438_vm6, %v6514_v60  ;;  %2903 = vmatmul.mubr.msk.f32.gmra.mrb[80].mxu1 %vm6439_vm5, %v6514_v60  ;;  %vm6443_vm6 = vcmp.eq.s32.totalorder %v4467_v14, %v3374_v49 }
 0x129   :  { %v4495_v18 = vpop.permute.xlu1 %463  ;;  %2904 = vmatprep.mubr.msk.f32.mxu1 %vm6440_vm9, %v6514_v60  ;;  %v4501_v19 = vpop.permute.xlu0 %271 }
 0x12a   :  { %6533 = vst [vmem:[#allocation11_spill] sm:$0xff] %v4495_v18  ;;  %vm6442_vm13 = vcmp.eq.s32.totalorder %v4501_v19, %v3374_v49  ;;  %vm6441_vm4 = vcmp.eq.s32.totalorder %v4501_v19, %v3383_v52  ;;  %vm6444_vm5 = vcmp.eq.s32.totalorder %v4495_v18, %v3383_v52 }
 0x12b   :  { %2778 = vmatprep.mubr.msk.f32.mxu0 %vm6441_vm4, %v6514_v60 }
 0x12c   :  { %2779 = vmatmul.mubr.msk.f32.gmra.mrb[84].mxu0 %vm6442_vm13, %v6514_v60  ;;  %2905 = vmatmul.mubr.msk.f32.gmra.mrb[82].mxu1 %vm6443_vm6, %v6514_v60  ;;  %vm6447_vm13 = vcmp.eq.s32.totalorder %v4495_v18, %v3374_v49 }
 0x12d   :  { %v4523_v21 = vpop.permute.xlu1 %466  ;;  %2906 = vmatprep.mubr.msk.f32.mxu1 %vm6444_vm5, %v6514_v60  ;;  %v4529_v27 = vpop.permute.xlu0 %274 }
 0x12e   :  { %6534 = vst [vmem:[#allocation12_spill] sm:$0xff] %v4523_v21  ;;  %vm6446_vm9 = vcmp.eq.s32.totalorder %v4529_v27, %v3374_v49  ;;  %vm6445_vm4 = vcmp.eq.s32.totalorder %v4529_v27, %v3383_v52  ;;  %vm6452_vm6 = vcmp.eq.s32.totalorder %v4523_v21, %v3383_v52 }
 0x12f   :  { %2780 = vmatprep.mubr.msk.f32.mxu0 %vm6445_vm4, %v6514_v60 }
 0x130   :  { %2781 = vmatmul.mubr.msk.f32.gmra.mrb[86].mxu0 %vm6446_vm9, %v6514_v60  ;;  %2907 = vmatmul.mubr.msk.f32.gmra.mrb[84].mxu1 %vm6447_vm13, %v6514_v60  ;;  %vm6455_vm9 = vcmp.eq.s32.totalorder %v4523_v21, %v3374_v49 }
 0x131   :  { %v4551_v5 = vpop.permute.xlu1 %469  ;;  %2908 = vmatprep.mubr.msk.f32.mxu1 %vm6452_vm6, %v6514_v60  ;;  %v4557_v28 = vpop.permute.xlu0 %277 }
 0x132   :  { %6535 = vst [vmem:[#allocation13_spill] sm:$0xff] %v4551_v5  ;;  %vm6454_vm5 = vcmp.eq.s32.totalorder %v4557_v28, %v3374_v49  ;;  %vm6453_vm4 = vcmp.eq.s32.totalorder %v4557_v28, %v3383_v52  ;;  %vm6460_vm13 = vcmp.eq.s32.totalorder %v4551_v5, %v3383_v52 }
 0x133   :  { %2782 = vmatprep.mubr.msk.f32.mxu0 %vm6453_vm4, %v6514_v60 }
 0x134   :  { %2783 = vmatmul.mubr.msk.f32.gmra.mrb[88].mxu0 %vm6454_vm5, %v6514_v60  ;;  %2909 = vmatmul.mubr.msk.f32.gmra.mrb[86].mxu1 %vm6455_vm9, %v6514_v60  ;;  %vm6463_vm5 = vcmp.eq.s32.totalorder %v4551_v5, %v3374_v49 }
 0x135   :  { %v4579_v57 = vpop.permute.xlu1 %472  ;;  %2910 = vmatprep.mubr.msk.f32.mxu1 %vm6460_vm13, %v6514_v60  ;;  %v4585_v18 = vpop.permute.xlu0 %280 }
 0x136   :  { %6536 = vst [vmem:[#allocation14_spill] sm:$0xff] %v4579_v57  ;;  %vm6462_vm6 = vcmp.eq.s32.totalorder %v4585_v18, %v3374_v49  ;;  %vm6461_vm4 = vcmp.eq.s32.totalorder %v4585_v18, %v3383_v52  ;;  %vm6474_vm9 = vcmp.eq.s32.totalorder %v4579_v57, %v3383_v52 }
 0x137   :  { %2784 = vmatprep.mubr.msk.f32.mxu0 %vm6461_vm4, %v6514_v60 }
 0x138   :  { %2785 = vmatmul.mubr.msk.f32.gmra.mrb[90].mxu0 %vm6462_vm6, %v6514_v60  ;;  %2911 = vmatmul.mubr.msk.f32.gmra.mrb[88].mxu1 %vm6463_vm5, %v6514_v60  ;;  %vm6475_vm6 = vcmp.eq.s32.totalorder %v4579_v57, %v3374_v49  ;;  %v2503_v57 = vsel %vm593_vm3, 1.0, %v6538_v10  ;;  %vm6541_vm3 = vcmp.eq.s32.totalorder %v4389_v63, %v3383_v52 }
 0x139   :  { %v4607_v21 = vpop.permute.xlu1 %475  ;;  %2912 = vmatprep.mubr.msk.f32.mxu1 %vm6474_vm9, %v6514_v60  ;;  %v4613_v14 = vpop.permute.xlu0 %283  ;;  %v2326_v46 = vadd.f32 %v2503_v57, %v4208_v32  ;;  %v2508_v32 = vsel %vm598_vm12, 1.0, %v6538_v10 }
 0x13a   :  { %6537 = vst [vmem:[#allocation15_spill] sm:$0xff] %v4607_v21  ;;  %vm620_vm13 = vcmp.eq.s32.totalorder %v4613_v14, %v3374_v49  ;;  %vm6477_vm4 = vcmp.eq.s32.totalorder %v4613_v14, %v3383_v52  ;;  %vm6476_vm5 = vcmp.eq.s32.totalorder %v4607_v21, %v3383_v52  ;;  %vm6499_vm9 = vcmp.eq.s32.totalorder %v4607_v21, %v3374_v49 }
 0x13b   :  { %2786 = vmatprep.mubr.msk.f32.mxu0 %vm6477_vm4, %v6514_v60  ;;  %v2193_v21 = vadd.f32 %v2502_v1, %v4206_v29  ;;  %v2327_v29 = vadd.f32 %v2505_v55, %v2326_v46 }
 0x13c   :  { %2787 = vmatmul.mubr.msk.f32.gmra.mrb[92].mxu0 %vm620_vm13, %v6514_v60  ;;  %2913 = vmatmul.mubr.msk.f32.gmra.mrb[90].mxu1 %vm6475_vm6, %v6514_v60 }
 0x13d   :  { %v4635_v5 = vpop.permute.xlu1 %478  ;;  %2914 = vmatprep.mubr.msk.f32.mxu1 %vm6476_vm5, %v6514_v60  ;;  %v4645_v62 = vpop.permute.xlu0 %286  ;;  %v2194_v57 = vadd.f32 %v2504_v36, %v2193_v21  ;;  %v2328_v1 = vadd.f32 %v2507_v38, %v2327_v29  ;;  %v2511_v36 = vsel %vm601_vm10, 1.0, %v6538_v10  ;;  %vm6539_vm10 = vcmp.eq.s32.totalorder %v4361_v61, %v3383_v52 }
 0x13e   :  { %vm622_vm6 = vcmp.eq.s32.totalorder %v4645_v62, %v3374_v49  ;;  %vm623_vm5 = vcmp.eq.s32.totalorder %v4645_v62, %v3383_v52  ;;  %vm6495_vm4 = vcmp.eq.s32.totalorder %v4635_v5, %v3383_v52  ;;  %vm6496_vm11 = vcmp.eq.s32.totalorder %v4635_v5, %v3374_v49 }
 0x13f   :  { %2788 = vmatprep.mubr.msk.f32.mxu0 %vm623_vm5, %v6514_v60  ;;  %v2195_v55 = vadd.f32 %v2506_v40, %v2194_v57  ;;  %v2329_v40 = vadd.f32 %v2509_v45, %v2328_v1  ;;  %v2513_v57 = vsel %vm6539_vm10, 1.0, %v6538_v10  ;;  %v2514_v61 = vsel %vm6540_vm1, 1.0, %v6538_v10 }
 0x140   :  { %2915 = vmatmul.mubr.msk.f32.gmra.mrb[92].mxu1 %vm6499_vm9, %v6514_v60  ;;  %2789 = vmatmul.mubr.msk.f32.gmra.mrb[94].mxu0 %vm622_vm6, %v6514_v60  ;;  %v2515_v1 = vsel %vm6541_vm3, 1.0, %v6538_v10  ;;  %vm6542_vm3 = vcmp.eq.s32.totalorder %v4417_v4, %v3374_v49 }
 0x141   :  { %v4679_v50 = vpop.permute.xlu1 %481  ;;  %2916 = vmatprep.mubr.msk.f32.mxu1 %vm6495_vm4, %v6514_v60  ;;  %v4691_v41 = vpop.permute.xlu0 %289  ;;  %v2196_v38 = vadd.f32 %v2508_v32, %v2195_v55  ;;  %v2330_v45 = vadd.f32 %v2511_v36, %v2329_v40  ;;  %v2516_v63 = vsel %vm6542_vm3, 1.0, %v6538_v10  ;;  %vm6544_vm3 = vcmp.eq.s32.totalorder %v4445_v12, %v3374_v49 }
 0x142   :  { %vm624_vm0 = vcmp.eq.s32.totalorder %v4691_v41, %v3374_v49  ;;  %vm625_vm7 = vcmp.eq.s32.totalorder %v4691_v41, %v3383_v52  ;;  %vm6491_vm15 = vcmp.eq.s32.totalorder %v4679_v50, %v3383_v52  ;;  %vm6492_vm14 = vcmp.eq.s32.totalorder %v4679_v50, %v3374_v49 }
 0x143   :  { %2790 = vmatprep.mubr.msk.f32.mxu0 %vm625_vm7, %v6514_v60  ;;  %v2197_v32 = vadd.f32 %v2510_v48, %v2196_v38  ;;  %v2331_v36 = vadd.f32 %v2513_v57, %v2330_v45  ;;  %v2534_v62 = vsel %vm624_vm0, 1.0, %v6538_v10 }
 0x144   :  { %2917 = vmatmul.mubr.msk.f32.gmra.mrb[94].mxu1 %vm6496_vm11, %v6514_v60  ;;  %2791 = vmatmul.mubr.msk.f32.gmra.mrb[96].mxu0 %vm624_vm0, %v6514_v60  ;;  %vm6547_vm11 = vcmp.eq.s32.totalorder %v4473_v17, %v3383_v52 }
 0x145   :  { %v4725_v46 = vpop.permute.xlu1 %484  ;;  %2918 = vmatprep.mubr.msk.f32.mxu1 %vm6491_vm15, %v6514_v60  ;;  %v4735_v21 = vpop.permute.xlu0 %292  ;;  %v2198_v48 = vadd.f32 %v2512_v54, %v2197_v32  ;;  %v2332_v57 = vadd.f32 %v2515_v1, %v2331_v36 }
 0x146   :  { %vm626_vm2 = vcmp.eq.s32.totalorder %v4735_v21, %v3374_v49  ;;  %vm627_vm12 = vcmp.eq.s32.totalorder %v4735_v21, %v3383_v52  ;;  %vm6490_vm8 = vcmp.eq.s32.totalorder %v4725_v46, %v3383_v52  ;;  %vm6493_vm10 = vcmp.eq.s32.totalorder %v4725_v46, %v3374_v49 }
 0x147   :  { %2792 = vmatprep.mubr.msk.f32.mxu0 %vm627_vm12, %v6514_v60  ;;  %v2199_v54 = vadd.f32 %v2514_v61, %v2198_v48  ;;  %v2521_v48 = vsel %vm6547_vm11, 1.0, %v6538_v10  ;;  %vm6549_vm11 = vcmp.eq.s32.totalorder %v4501_v19, %v3383_v52 }
 0x148   :  { %2919 = vmatmul.mubr.msk.f32.gmra.mrb[96].mxu1 %vm6492_vm14, %v6514_v60  ;;  %2793 = vmatmul.mubr.msk.f32.gmra.mrb[98].mxu0 %vm626_vm2, %v6514_v60  ;;  %vm6543_vm14 = vcmp.eq.s32.totalorder %v4417_v4, %v3383_v52  ;;  %v2518_v4 = vsel %vm6544_vm3, 1.0, %v6538_v10 }
 0x149   :  { %v4769_v29 = vpop.permute.xlu1 %487  ;;  %2920 = vmatprep.mubr.msk.f32.mxu1 %vm6490_vm8, %v6514_v60  ;;  %v4779_v55 = vpop.permute.xlu0 %295  ;;  %v2517_v38 = vsel %vm6543_vm14, 1.0, %v6538_v10  ;;  %vm6545_vm14 = vcmp.eq.s32.totalorder %v4445_v12, %v3383_v52  ;;  %v2200_v61 = vadd.f32 %v2516_v63, %v2199_v54 }
 0x14a   :  { %vm628_vm8 = vcmp.eq.s32.totalorder %v4779_v55, %v3374_v49  ;;  %vm629_vm15 = vcmp.eq.s32.totalorder %v4779_v55, %v3383_v52  ;;  %vm6494_vm1 = vcmp.eq.s32.totalorder %v4769_v29, %v3383_v52  ;;  %v2519_v45 = vsel %vm6545_vm14, 1.0, %v6538_v10 }
 0x14b   :  { %2794 = vmatprep.mubr.msk.f32.mxu0 %vm629_vm15, %v6514_v60  ;;  %v2333_v1 = vadd.f32 %v2517_v38, %v2332_v57  ;;  %vm6546_vm14 = vcmp.eq.s32.totalorder %v4473_v17, %v3374_v49  ;;  %v2201_v63 = vadd.f32 %v2518_v4, %v2200_v61  ;;  %v2523_v57 = vsel %vm6549_vm11, 1.0, %v6538_v10 }
 0x14c   :  { %2921 = vmatmul.mubr.msk.f32.gmra.mrb[98].mxu1 %vm6493_vm10, %v6514_v60  ;;  %2795 = vmatmul.mubr.msk.f32.gmra.mrb[100].mxu0 %vm628_vm8, %v6514_v60  ;;  %vm6497_vm10 = vcmp.eq.s32.totalorder %v4769_v29, %v3374_v49  ;;  %v2520_v12 = vsel %vm6546_vm14, 1.0, %v6538_v10  ;;  %vm6548_vm14 = vcmp.eq.s32.totalorder %v4501_v19, %v3374_v49  ;;  %vm6550_vm11 = vcmp.eq.s32.totalorder %v4529_v27, %v3374_v49 }
 0x14d   :  { %v4813_v40 = vpop.permute.xlu1 %490  ;;  %2922 = vmatprep.mubr.msk.f32.mxu1 %vm6494_vm1, %v6514_v60  ;;  %v4823_v32 = vpop.permute.xlu0 %298  ;;  %v2334_v38 = vadd.f32 %v2519_v45, %v2333_v1  ;;  %v2522_v17 = vsel %vm6548_vm14, 1.0, %v6538_v10  ;;  %v2202_v4 = vadd.f32 %v2520_v12, %v2201_v63  ;;  %v2524_v19 = vsel %vm6550_vm11, 1.0, %v6538_v10 }
 0x14e   :  { %vm6505_vm1 = vcmp.eq.s32.totalorder %v4823_v32, %v3374_v49  ;;  %vm6500_vm4 = vcmp.eq.s32.totalorder %v4823_v32, %v3383_v52  ;;  %vm6498_vm3 = vcmp.eq.s32.totalorder %v4813_v40, %v3383_v52  ;;  %vm6552_vm11 = vcmp.eq.s32.totalorder %v4557_v28, %v3374_v49 }
 0x14f   :  { %2796 = vmatprep.mubr.msk.f32.mxu0 %vm6500_vm4, %v6514_v60  ;;  %v2335_v45 = vadd.f32 %v2521_v48, %v2334_v38  ;;  %vm6551_vm4 = vcmp.eq.s32.totalorder %v4529_v27, %v3383_v52  ;;  %v2203_v12 = vadd.f32 %v2522_v17, %v2202_v4  ;;  %v2526_v27 = vsel %vm6552_vm11, 1.0, %v6538_v10 }
 0x150   :  { %2923 = vmatmul.mubr.msk.f32.gmra.mrb[100].mxu1 %vm6497_vm10, %v6514_v60  ;;  %2797 = vmatmul.mubr.msk.f32.gmra.mrb[102].mxu0 %vm6505_vm1, %v6514_v60  ;;  %vm6501_vm10 = vcmp.eq.s32.totalorder %v4813_v40, %v3374_v49  ;;  %v2525_v61 = vsel %vm6551_vm4, 1.0, %v6538_v10  ;;  %vm6553_vm4 = vcmp.eq.s32.totalorder %v4557_v28, %v3383_v52  ;;  %vm6555_vm1 = vcmp.eq.s32.totalorder %v4585_v18, %v3383_v52 }
 0x151   :  { %v4857_v36 = vpop.permute.xlu1 %493  ;;  %2924 = vmatprep.mubr.msk.f32.mxu1 %vm6498_vm3, %v6514_v60  ;;  %v4867_v54 = vpop.permute.xlu0 %301  ;;  %v2336_v48 = vadd.f32 %v2523_v57, %v2335_v45  ;;  %v2527_v38 = vsel %vm6553_vm4, 1.0, %v6538_v10  ;;  %v2204_v57 = vadd.f32 %v2524_v19, %v2203_v12  ;;  %vm6554_vm4 = vcmp.eq.s32.totalorder %v4585_v18, %v3374_v49 }
 0x152   :  { %vm6504_vm3 = vcmp.eq.s32.totalorder %v4867_v54, %v3374_v49  ;;  %vm6502_vm9 = vcmp.eq.s32.totalorder %v4867_v54, %v3383_v52  ;;  %vm6503_vm14 = vcmp.eq.s32.totalorder %v4857_v36, %v3383_v52  ;;  %v2528_v45 = vsel %vm6554_vm4, 1.0, %v6538_v10 }
 0x153   :  { %2798 = vmatprep.mubr.msk.f32.mxu0 %vm6502_vm9, %v6514_v60  ;;  %vm6507_vm9 = vcmp.eq.s32.totalorder %v4857_v36, %v3374_v49  ;;  %v2337_v4 = vadd.f32 %v2525_v61, %v2336_v48  ;;  %v2529_v19 = vsel %vm6555_vm1, 1.0, %v6538_v10  ;;  %v2205_v12 = vadd.f32 %v2526_v27, %v2204_v57 }
 0x154   :  { %2925 = vmatmul.mubr.msk.f32.gmra.mrb[102].mxu1 %vm6501_vm10, %v6514_v60  ;;  %2799 = vmatmul.mubr.msk.f32.gmra.mrb[104].mxu0 %vm6504_vm3, %v6514_v60  ;;  %vm2033_vm10 = vcmask 261120   ;;  %v2530_v18 = vsel %vm620_vm13, 1.0, %v6538_v10  ;;  %vm6556_vm1 = vcmp.eq.s32.totalorder %v4613_v14, %v3383_v52  ;;  %v2538_v21 = vsel %vm628_vm8, 1.0, %v6538_v10 }
 0x155   :  { %v4901_v1 = vpop.permute.xlu1 %496  ;;  %2926 = vmatprep.mubr.msk.f32.mxu1 %vm6503_vm14, %v6514_v60  ;;  %v4911_v63 = vpop.permute.xlu0 %304  ;;  %v2338_v48 = vadd.f32 %v2527_v38, %v2337_v4  ;;  %v2206_v57 = vadd.f32 %v2528_v45, %v2205_v12  ;;  %v2533_v12 = vsel %vm623_vm5, 1.0, %v6538_v10 }
 0x156   :  { %vm634_vm14 = vcmp.eq.s32.totalorder %v4911_v63, %v3374_v49  ;;  %vm635_vm3 = vcmp.eq.s32.totalorder %v4911_v63, %v3383_v52  ;;  %vm6506_vm11 = vcmp.eq.s32.totalorder %v4901_v1, %v3383_v52  ;;  %vm762_vm4 = vcmp.eq.s32.totalorder %v4901_v1, %v3374_v49 }
 0x157   :  { %v1394_v17 = vpop.f32.mrb[0].mxu0  ;;  %2800 = vmatprep.mubr.msk.f32.mxu0 %vm635_vm3, %v6514_v60  ;;  %v2339_v4 = vadd.f32 %v2529_v19, %v2338_v48  ;;  %v2532_v19 = vsel %vm622_vm6, 1.0, %v6538_v10 }
 0x158   :  { %2034 = vst.msk [vmem:[%s6347_s2] sm:$0xff] %vm2033_vm10, %v1394_v17  ;;  %v1396_v28 = vpop.f32.mrb[1].mxu0  ;;  %2927 = vmatmul.mubr.msk.f32.gmra.mrb[104].mxu1 %vm6507_vm9, %v6514_v60  ;;  %2801 = vmatmul.mubr.msk.f32.gmra.mrb[106].mxu0 %vm634_vm14, %v6514_v60 }
 0x159   :  { %v4949_v61 = vpop.permute.xlu1 %499  ;;  %2928 = vmatprep.mubr.msk.f32.mxu1 %vm6506_vm11, %v6514_v60  ;;  %v4959_v17 = vpop.permute.xlu0 %307  ;;  %v2531_v28 = vsel %vm6556_vm1, 1.0, %v6538_v10 }
 0x15a   :  { %vm636_vm11 = vcmp.eq.s32.totalorder %v4959_v17, %v3374_v49  ;;  %vm637_vm9 = vcmp.eq.s32.totalorder %v4959_v17, %v3383_v52  ;;  %vm6511_vm13 = vcmp.eq.s32.totalorder %v4949_v61, %v3383_v52  ;;  %vm764_vm5 = vcmp.eq.s32.totalorder %v4949_v61, %v3374_v49 }
 0x15b   :  { %v1399_v27 = vpop.f32.mrb[2].mxu0  ;;  %v1714_v38 = vpop.f32.mrb[0].mxu1  ;;  %2802 = vmatprep.mubr.msk.f32.mxu0 %vm637_vm9, %v6514_v60  ;;  %v2546_v63 = vsel %vm636_vm11, 1.0, %v6538_v10 }
 0x15c   :  { %2035 = vst.msk [vmem:[%s6347_s2 + $0x8] sm:$0xff] %vm2033_vm10, %v1399_v27  ;;  %2098 = vst.msk [vmem:[%s6347_s2 + $0x200] sm:$0xff] %vm2033_vm10, %v1714_v38  ;;  %v1401_v14 = vpop.f32.mrb[3].mxu0  ;;  %v1716_v45 = vpop.f32.mrb[1].mxu1  ;;  %2929 = vmatmul.mubr.msk.f32.gmra.mrb[106].mxu1 %vm762_vm4, %v6514_v60  ;;  %2803 = vmatmul.mubr.msk.f32.gmra.mrb[108].mxu0 %vm636_vm11, %v6514_v60  ;;  %v2207_v27 = vadd.f32 %v2530_v18, %v2206_v57  ;;  %v2340_v38 = vadd.f32 %v2531_v28, %v2339_v4 }
 0x15d   :  { %v5001_v48 = vpop.permute.xlu1 %502  ;;  %2930 = vmatprep.mubr.msk.f32.mxu1 %vm6511_vm13, %v6514_v60  ;;  %v5011_v14 = vpop.permute.xlu0 %310  ;;  %v2535_v45 = vsel %vm625_vm7, 1.0, %v6538_v10 }
 0x15e   :  { %vm638_vm6 = vcmp.eq.s32.totalorder %v5011_v14, %v3374_v49  ;;  %vm639_vm1 = vcmp.eq.s32.totalorder %v5011_v14, %v3383_v52  ;;  %v2208_v57 = vadd.f32 %v2532_v19, %v2207_v27  ;;  %v2341_v4 = vadd.f32 %v2533_v12, %v2340_v38 }
 0x15f   :  { %v1404_v18 = vpop.f32.mrb[4].mxu0  ;;  %v1719_v28 = vpop.f32.mrb[2].mxu1  ;;  %vm6508_vm0 = vcmp.eq.s32.totalorder %v5001_v48, %v3383_v52  ;;  %2804 = vmatprep.mubr.msk.f32.mxu0 %vm639_vm1, %v6514_v60  ;;  %v2536_v12 = vsel %vm626_vm2, 1.0, %v6538_v10  ;;  %v2537_v27 = vsel %vm627_vm12, 1.0, %v6538_v10  ;;  %vm6509_vm7 = vcmp.eq.s32.totalorder %v5001_v48, %v3374_v49 }
 0x160   :  { %2036 = vst.msk [vmem:[%s6347_s2 + $0x10] sm:$0xff] %vm2033_vm10, %v1404_v18  ;;  %2099 = vst.msk [vmem:[%s6347_s2 + $0x208] sm:$0xff] %vm2033_vm10, %v1719_v28  ;;  %v1406_v41 = vpop.f32.mrb[5].mxu0  ;;  %v1721_v19 = vpop.f32.mrb[3].mxu1  ;;  %2931 = vmatmul.mubr.msk.f32.gmra.mrb[108].mxu1 %vm764_vm5, %v6514_v60  ;;  %2805 = vmatmul.mubr.msk.f32.gmra.mrb[110].mxu0 %vm638_vm6, %v6514_v60  ;;  %v2209_v18 = vadd.f32 %v2534_v62, %v2208_v57  ;;  %v2342_v28 = vadd.f32 %v2535_v45, %v2341_v4 }
 0x161   :  { %v5053_v38 = vpop.permute.xlu1 %505  ;;  %2932 = vmatprep.mubr.msk.f32.mxu1 %vm6508_vm0, %v6514_v60  ;;  %v5063_v41 = vpop.permute.xlu0 %313  ;;  %v2539_v19 = vsel %vm629_vm15, 1.0, %v6538_v10  ;;  %vm6557_vm15 = vcmp.eq.s32.totalorder %v4823_v32, %v3374_v49  ;;  %vm6558_vm0 = vcmp.eq.s32.totalorder %v4823_v32, %v3383_v52 }
 0x162   :  { %vm640_vm2 = vcmp.eq.s32.totalorder %v5063_v41, %v3374_v49  ;;  %vm641_vm12 = vcmp.eq.s32.totalorder %v5063_v41, %v3383_v52  ;;  %v2210_v57 = vadd.f32 %v2536_v12, %v2209_v18  ;;  %v2343_v4 = vadd.f32 %v2537_v27, %v2342_v28 }
 0x163   :  { %v1409_v62 = vpop.f32.mrb[6].mxu0  ;;  %v1724_v45 = vpop.f32.mrb[4].mxu1  ;;  %vm6510_vm8 = vcmp.eq.s32.totalorder %v5053_v38, %v3383_v52  ;;  %2806 = vmatprep.mubr.msk.f32.mxu0 %vm641_vm12, %v6514_v60  ;;  %v2540_v27 = vsel %vm6557_vm15, 1.0, %v6538_v10  ;;  %v2541_v18 = vsel %vm6558_vm0, 1.0, %v6538_v10  ;;  %vm6559_vm15 = vcmp.eq.s32.totalorder %v4867_v54, %v3374_v49 }
 0x164   :  { %2037 = vst.msk [vmem:[%s6347_s2 + $0x18] sm:$0xff] %vm2033_vm10, %v1409_v62  ;;  %2100 = vst.msk [vmem:[%s6347_s2 + $0x210] sm:$0xff] %vm2033_vm10, %v1724_v45  ;;  %v1411_v55 = vpop.f32.mrb[7].mxu0  ;;  %v1726_v12 = vpop.f32.mrb[5].mxu1  ;;  %2933 = vmatmul.mubr.msk.f32.gmra.mrb[110].mxu1 %vm6509_vm7, %v6514_v60  ;;  %2807 = vmatmul.mubr.msk.f32.gmra.mrb[112].mxu0 %vm640_vm2, %v6514_v60  ;;  %v2211_v62 = vadd.f32 %v2538_v21, %v2210_v57  ;;  %v2344_v45 = vadd.f32 %v2539_v19, %v2343_v4  ;;  %v2542_v32 = vsel %vm6559_vm15, 1.0, %v6538_v10 }
 0x165   :  { %v5105_v28 = vpop.permute.xlu1 %508  ;;  %2934 = vmatprep.mubr.msk.f32.mxu1 %vm6510_vm8, %v6514_v60  ;;  %v5115_v55 = vpop.permute.xlu0 %316  ;;  %vm6560_vm0 = vcmp.eq.s32.totalorder %v4867_v54, %v3383_v52  ;;  %vm768_vm7 = vcmp.eq.s32.totalorder %v5053_v38, %v3374_v49 }
 0x166   :  { %v2543_v12 = vsel %vm6560_vm0, 1.0, %v6538_v10  ;;  %vm642_vm8 = vcmp.eq.s32.totalorder %v5115_v55, %v3374_v49  ;;  %vm643_vm13 = vcmp.eq.s32.totalorder %v5115_v55, %v3383_v52  ;;  %v2212_v57 = vadd.f32 %v2540_v27, %v2211_v62 }
 0x167   :  { %v1414_v21 = vpop.f32.mrb[8].mxu0  ;;  %v1729_v19 = vpop.f32.mrb[6].mxu1  ;;  %v2345_v4 = vadd.f32 %v2541_v18, %v2344_v45  ;;  %vm771_vm15 = vcmp.eq.s32.totalorder %v5105_v28, %v3383_v52  ;;  %2808 = vmatprep.mubr.msk.f32.mxu0 %vm643_vm13, %v6514_v60  ;;  %v2544_v18 = vsel %vm634_vm14, 1.0, %v6538_v10  ;;  %v2545_v62 = vsel %vm635_vm3, 1.0, %v6538_v10 }
 0x168   :  { %2038 = vst.msk [vmem:[%s6347_s2 + $0x20] sm:$0xff] %vm2033_vm10, %v1414_v21  ;;  %2101 = vst.msk [vmem:[%s6347_s2 + $0x218] sm:$0xff] %vm2033_vm10, %v1729_v19  ;;  %v1416_v54 = vpop.f32.mrb[9].mxu0  ;;  %v1731_v27 = vpop.f32.mrb[7].mxu1  ;;  %2935 = vmatmul.mubr.msk.f32.gmra.mrb[112].mxu1 %vm768_vm7, %v6514_v60  ;;  %2809 = vmatmul.mubr.msk.f32.gmra.mrb[114].mxu0 %vm642_vm8, %v6514_v60  ;;  %v2213_v21 = vadd.f32 %v2542_v32, %v2212_v57  ;;  %vm770_vm3 = vcmp.eq.s32.totalorder %v5105_v28, %v3374_v49 }
 0x169   :  { %v5157_v45 = vpop.permute.xlu1 %511  ;;  %2936 = vmatprep.mubr.msk.f32.mxu1 %vm771_vm15, %v6514_v60  ;;  %v2346_v19 = vadd.f32 %v2543_v12, %v2345_v4  ;;  %v320_v54 = vpop.permute.xlu0 %319  ;;  %v2547_v27 = vsel %vm637_vm9, 1.0, %v6538_v10 }
 0x16a   :  { %6561 = vst [vmem:[#allocation16_spill] sm:$0xff] %v5157_v45  ;;  %vm644_vm14 = vcmp.eq.s32.totalorder %v320_v54, %v3374_v49  ;;  %vm645_vm0 = vcmp.eq.s32.totalorder %v320_v54, %v3383_v52  ;;  %v2214_v57 = vadd.f32 %v2544_v18, %v2213_v21  ;;  %vm773_vm11 = vcmp.eq.s32.totalorder %v5157_v45, %v3383_v52 }
 0x16b   :  { %v1419_v32 = vpop.f32.mrb[10].mxu0  ;;  %v1734_v12 = vpop.f32.mrb[8].mxu1  ;;  %v2347_v4 = vadd.f32 %v2545_v62, %v2346_v19  ;;  %2810 = vmatprep.mubr.msk.f32.mxu0 %vm645_vm0, %v6514_v60  ;;  %v2548_v62 = vsel %vm638_vm6, 1.0, %v6538_v10  ;;  %v2549_v21 = vsel %vm639_vm1, 1.0, %v6538_v10  ;;  %vm772_vm9 = vcmp.eq.s32.totalorder %v5157_v45, %v3374_v49 }
 0x16c   :  { %2039 = vst.msk [vmem:[%s6347_s2 + $0x28] sm:$0xff] %vm2033_vm10, %v1419_v32  ;;  %2102 = vst.msk [vmem:[%s6347_s2 + $0x220] sm:$0xff] %vm2033_vm10, %v1734_v12  ;;  %v1421_v17 = vpop.f32.mrb[11].mxu0  ;;  %v1736_v18 = vpop.f32.mrb[9].mxu1  ;;  %2937 = vmatmul.mubr.msk.f32.gmra.mrb[114].mxu1 %vm770_vm3, %v6514_v60  ;;  %2811 = vmatmul.mubr.msk.f32.gmra.mrb[116].mxu0 %vm644_vm14, %v6514_v60  ;;  %v2215_v32 = vadd.f32 %v2546_v63, %v2214_v57  ;;  %v2555_v55 = vsel %vm645_vm0, 1.0, %v6538_v10  ;;  %v6563_v54 = vmov 1.0  }
 0x16d   :  { %v5203_v19 = vpop.permute.xlu1 %514  ;;  %2938 = vmatprep.mubr.msk.f32.mxu1 %vm773_vm11, %v6514_v60  ;;  %v2348_v12 = vadd.f32 %v2547_v27, %v2347_v4  ;;  %v2550_v17 = vsel %vm640_vm2, 1.0, %v6538_v10  ;;  %v323_v14 = vpop.permute.xlu0 %322  ;;  %v2551_v18 = vsel %vm641_vm12, 1.0, %v6538_v10  ;;  %v2682_v28 = vsel %vm772_vm9, 1.0, %v6538_v10 }
 0x16e   :  { %6562 = vst [vmem:[#allocation17_spill] sm:$0xff] %v5203_v19  ;;  %vm646_vm6 = vcmp.eq.s32.totalorder %v323_v14, %v3374_v49  ;;  %vm647_vm1 = vcmp.eq.s32.totalorder %v323_v14, %v3383_v52  ;;  %v2216_v57 = vadd.f32 %v2548_v62, %v2215_v32  ;;  %vm6516_vm2 = vcmp.eq.s32.totalorder %v5203_v19, %v3383_v52 }
 0x16f   :  { %v1424_v63 = vpop.f32.mrb[12].mxu0  ;;  %v1739_v27 = vpop.f32.mrb[10].mxu1  ;;  %v2349_v4 = vadd.f32 %v2549_v21, %v2348_v12  ;;  %2812 = vmatprep.mubr.msk.f32.mxu0 %vm647_vm1, %v6514_v60  ;;  %v2552_v21 = vsel %vm642_vm8, 1.0, %v6538_v10  ;;  %v2553_v32 = vsel %vm643_vm13, 1.0, %v6538_v10  ;;  %vm774_vm13 = vcmp.eq.s32.totalorder %v5203_v19, %v3374_v49 }
 0x170   :  { %2040 = vst.msk [vmem:[%s6347_s2 + $0x30] sm:$0xff] %vm2033_vm10, %v1424_v63  ;;  %2103 = vst.msk [vmem:[%s6347_s2 + $0x228] sm:$0xff] %vm2033_vm10, %v1739_v27  ;;  %v1426_v41 = vpop.f32.mrb[13].mxu0  ;;  %v1741_v62 = vpop.f32.mrb[11].mxu1  ;;  %2939 = vmatmul.mubr.msk.f32.gmra.mrb[116].mxu1 %vm772_vm9, %v6514_v60  ;;  %2813 = vmatmul.mubr.msk.f32.gmra.mrb[118].mxu0 %vm646_vm6, %v6514_v60  ;;  %v2217_v63 = vadd.f32 %v2550_v17, %v2216_v57 }
 0x171   :  { %v5249_v12 = vpop.permute.xlu1 %517  ;;  %2940 = vmatprep.mubr.msk.f32.mxu1 %vm6516_vm2, %v6514_v60  ;;  %v2350_v27 = vadd.f32 %v2551_v18, %v2349_v4  ;;  %v2554_v41 = vsel %vm644_vm14, 1.0, %v6538_v10  ;;  %v326_v62 = vpop.permute.xlu0 %325 }
 0x172   :  { %vm648_vm12 = vcmp.eq.s32.totalorder %v326_v62, %v3374_v49  ;;  %vm649_vm8 = vcmp.eq.s32.totalorder %v326_v62, %v3383_v52  ;;  %v2218_v17 = vadd.f32 %v2552_v21, %v2217_v63  ;;  %vm6519_vm2 = vcmp.eq.s32.totalorder %v5249_v12, %v3383_v52 }
 0x173   :  { %v1429_v45 = vpop.f32.mrb[14].mxu0  ;;  %v1744_v60 = vpop.f32.mrb[12].mxu1  ;;  %v2351_v18 = vadd.f32 %v2553_v32, %v2350_v27  ;;  %2814 = vmatprep.mubr.msk.f32.mxu0 %vm649_vm8, %v6563_v54  ;;  %v2557_v63 = vsel %vm647_vm1, 1.0, %v6538_v10  ;;  %vm776_vm14 = vcmp.eq.s32.totalorder %v5249_v12, %v3374_v49  ;;  %v2559_v14 = vsel %vm649_vm8, 1.0, %v6538_v10 }
 0x174   :  { %2041 = vst.msk [vmem:[%s6347_s2 + $0x38] sm:$0xff] %vm2033_vm10, %v1429_v45  ;;  %2104 = vst.msk [vmem:[%s6347_s2 + $0x230] sm:$0xff] %vm2033_vm10, %v1744_v60  ;;  %v1431_v57 = vpop.f32.mrb[15].mxu0  ;;  %v1746_v4 = vpop.f32.mrb[13].mxu1  ;;  %2941 = vmatmul.mubr.msk.f32.gmra.mrb[118].mxu1 %vm774_vm13, %v6563_v54  ;;  %v2556_v45 = vsel %vm646_vm6, 1.0, %v6538_v10  ;;  %2815 = vmatmul.mubr.msk.f32.gmra.mrb[120].mxu0 %vm648_vm12, %v6563_v54  ;;  %v2219_v60 = vadd.f32 %v2554_v41, %v2218_v17 }
 0x175   :  { %v5288_v21 = vpop.permute.xlu1 %520  ;;  %2942 = vmatprep.mubr.msk.f32.mxu1 %vm6519_vm2, %v6563_v54  ;;  %v2352_v32 = vadd.f32 %v2555_v55, %v2351_v18  ;;  %v329_v27 = vpop.permute.xlu0 %328  ;;  %v2558_v57 = vsel %vm648_vm12, 1.0, %v6538_v10 }
 0x176   :  { %vm650_vm0 = vcmp.eq.s32.totalorder %v329_v27, %v3374_v49  ;;  %vm651_vm6 = vcmp.eq.s32.totalorder %v329_v27, %v3383_v52  ;;  %v2220_v41 = vadd.f32 %v2556_v45, %v2219_v60  ;;  %vm6520_vm1 = vcmp.eq.s32.totalorder %v5288_v21, %v3383_v52 }
 0x177   :  { %v1434_v4 = vpop.f32.mrb[16].mxu0  ;;  %v1749_v19 = vpop.f32.mrb[14].mxu1  ;;  %2816 = vmatprep.mubr.msk.f32.mxu0 %vm651_vm6, %v6563_v54  ;;  %v2353_v17 = vadd.f32 %v2557_v63, %v2352_v32  ;;  %v2560_v45 = vsel %vm650_vm0, 1.0, %v6538_v10  ;;  %v2561_v60 = vsel %vm651_vm6, 1.0, %v6538_v10  ;;  %vm778_vm12 = vcmp.eq.s32.totalorder %v5288_v21, %v3374_v49 }
 0x178   :  { %2042 = vst.msk [vmem:[%s6347_s2 + $0x40] sm:$0xff] %vm2033_vm10, %v1434_v4  ;;  %2105 = vst.msk [vmem:[%s6347_s2 + $0x238] sm:$0xff] %vm2033_vm10, %v1749_v19  ;;  %v1436_v55 = vpop.f32.mrb[17].mxu0  ;;  %v1751_v62 = vpop.f32.mrb[15].mxu1  ;;  %2943 = vmatmul.mubr.msk.f32.gmra.mrb[120].mxu1 %vm776_vm14, %v6563_v54  ;;  %2817 = vmatmul.mubr.msk.f32.gmra.mrb[122].mxu0 %vm650_vm0, %v6563_v54  ;;  %v2221_v19 = vadd.f32 %v2558_v57, %v2220_v41 }
 0x179   :  { %v5327_v18 = vpop.permute.xlu1 %523  ;;  %2944 = vmatprep.mubr.msk.f32.mxu1 %vm6520_vm1, %v6563_v54  ;;  %v332_v32 = vpop.permute.xlu0 %331  ;;  %v2354_v63 = vadd.f32 %v2559_v14, %v2353_v17 }
 0x17a   :  { %vm652_vm8 = vcmp.eq.s32.totalorder %v332_v32, %v3374_v49  ;;  %vm653_vm2 = vcmp.eq.s32.totalorder %v332_v32, %v3383_v52  ;;  %vm6521_vm1 = vcmp.eq.s32.totalorder %v5327_v18, %v3383_v52  ;;  %v2222_v62 = vadd.f32 %v2560_v45, %v2221_v19 }
 0x17b   :  { %v1439_v4 = vpop.f32.mrb[18].mxu0  ;;  %v1754_v55 = vpop.f32.mrb[16].mxu1  ;;  %v2562_v57 = vsel %vm652_vm8, 1.0, %v6538_v10  ;;  %v2563_v41 = vsel %vm653_vm2, 1.0, %v6538_v10  ;;  %2818 = vmatprep.mubr.msk.f32.mxu0 %vm653_vm2, %v6563_v54  ;;  %v2355_v17 = vadd.f32 %v2561_v60, %v2354_v63  ;;  %vm6522_vm2 = vcmp.eq.s32.totalorder %v5327_v18, %v3374_v49 }
 0x17c   :  { %2043 = vst.msk [vmem:[%s6347_s2 + $0x48] sm:$0xff] %vm2033_vm10, %v1439_v4  ;;  %2106 = vst.msk [vmem:[%s6347_s2 + $0x240] sm:$0xff] %vm2033_vm10, %v1754_v55  ;;  %v1441_v27 = vpop.f32.mrb[19].mxu0  ;;  %v1756_v14 = vpop.f32.mrb[17].mxu1  ;;  %2945 = vmatmul.mubr.msk.f32.gmra.mrb[122].mxu1 %vm778_vm12, %v6563_v54  ;;  %2819 = vmatmul.mubr.msk.f32.gmra.mrb[124].mxu0 %vm652_vm8, %v6563_v54  ;;  %v2223_v55 = vadd.f32 %v2562_v57, %v2222_v62  ;;  %vm6695_vm9 = vcmp.eq.s32.totalorder %v5327_v18, %v3383_v52 }
 0x17d   :  { %v5361_v32 = vpop.permute.xlu1 %526  ;;  %2946 = vmatprep.mubr.msk.f32.mxu1 %vm6521_vm1, %v6563_v54  ;;  %v335_v4 = vpop.permute.xlu0 %334  ;;  %v2356_v27 = vadd.f32 %v2563_v41, %v2355_v17  ;;  %vm6565_vm1 = vcmp.eq.s32.totalorder %v3411_v3, %v3374_v49 }
 0x17e   :  { %vm654_vm0 = vcmp.eq.s32.totalorder %v335_v4, %v3374_v49  ;;  %vm655_vm6 = vcmp.eq.s32.totalorder %v335_v4, %v3383_v52  ;;  %vm6523_vm8 = vcmp.eq.s32.totalorder %v5361_v32, %v3383_v52  ;;  %v2566_v4 = vsel %vm6565_vm1, 1.0, %v6538_v10 }
 0x17f   :  { %v1444_v19 = vpop.f32.mrb[20].mxu0  ;;  %v1759_v45 = vpop.f32.mrb[18].mxu1  ;;  %v2564_v60 = vsel %vm654_vm0, 1.0, %v6538_v10  ;;  %v2565_v63 = vsel %vm655_vm6, 1.0, %v6538_v10  ;;  %2820 = vmatprep.mubr.msk.f32.mxu0 %vm655_vm6, %v6563_v54  ;;  %vm6564_vm6 = vcmp.eq.s32.totalorder %v3411_v3, %v3383_v52  ;;  %vm6568_vm1 = vcmp.eq.s32.totalorder %v3437_v8, %v3383_v52 }
 0x180   :  { %2044 = vst.msk [vmem:[%s6347_s2 + $0x50] sm:$0xff] %vm2033_vm10, %v1444_v19  ;;  %2107 = vst.msk [vmem:[%s6347_s2 + $0x248] sm:$0xff] %vm2033_vm10, %v1759_v45  ;;  %v1446_v57 = vpop.f32.mrb[21].mxu0  ;;  %v1761_v41 = vpop.f32.mrb[19].mxu1  ;;  %2947 = vmatmul.mubr.msk.f32.gmra.mrb[124].mxu1 %vm6522_vm2, %v6563_v54  ;;  %v2224_v14 = vadd.f32 %v2564_v60, %v2223_v55  ;;  %v2357_v62 = vadd.f32 %v2565_v63, %v2356_v27  ;;  %2821 = vmatmul.mubr.msk.f32.gmra.mrb[126].mxu0 %vm654_vm0, %v6563_v54  ;;  %v2567_v17 = vsel %vm6564_vm6, 1.0, %v6538_v10 }
 0x181   :  { %2948 = vmatprep.mubr.msk.f32.mxu1 %vm6523_vm8, %v6563_v54  ;;  %vm782_vm2 = vcmp.eq.s32.totalorder %v5361_v32, %v3374_v49  ;;  %vm6566_vm0 = vcmp.eq.s32.totalorder %v3409_v2, %v3383_v52  ;;  %vm6567_vm6 = vcmp.eq.s32.totalorder %v3409_v2, %v3374_v49  ;;  %vm6571_vm8 = vcmp.eq.s32.totalorder %v3463_v16, %v3374_v49 }
 0x182   :  { %v2225_v55 = vadd.f32 %v2566_v4, %v2224_v14  ;;  %v2358_v27 = vadd.f32 %v2567_v17, %v2357_v62  ;;  %v2569_v60 = vsel %vm6566_vm0, 1.0, %v6538_v10  ;;  %v2568_v63 = vsel %vm6567_vm6, 1.0, %v6538_v10 }
 0x183   :  { %v1449_v19 = vpop.f32.mrb[22].mxu0  ;;  %v1764_v45 = vpop.f32.mrb[20].mxu1  ;;  %v2571_v14 = vsel %vm6568_vm1, 1.0, %v6538_v10  ;;  %vm6569_vm0 = vcmp.eq.s32.totalorder %v3437_v8, %v3374_v49  ;;  %vm6570_vm6 = vcmp.eq.s32.totalorder %v3463_v16, %v3383_v52  ;;  %vm6572_vm1 = vcmp.eq.s32.totalorder %v3489_v24, %v3383_v52 }
 0x184   :  { %2045 = vst.msk [vmem:[%s6347_s2 + $0x58] sm:$0xff] %vm2033_vm10, %v1449_v19  ;;  %2108 = vst.msk [vmem:[%s6347_s2 + $0x250] sm:$0xff] %vm2033_vm10, %v1764_v45  ;;  %v1451_v3 = vpop.f32.mrb[23].mxu0  ;;  %v1766_v57 = vpop.f32.mrb[21].mxu1  ;;  %2949 = vmatmul.mubr.msk.f32.gmra.mrb[126].mxu1 %vm782_vm2, %v6563_v54  ;;  %v2226_v41 = vadd.f32 %v2568_v63, %v2225_v55  ;;  %v2359_v2 = vadd.f32 %v2569_v60, %v2358_v27  ;;  %v2570_v62 = vsel %vm6569_vm0, 1.0, %v6538_v10  ;;  %v2573_v54 = vsel %vm6570_vm6, 1.0, %v6538_v10 }
 0x185   :  { %v2572_v55 = vsel %vm6571_vm8, 1.0, %v6538_v10  ;;  %v2575_v16 = vsel %vm6572_vm1, 1.0, %v6538_v10  ;;  %vm6573_vm8 = vcmp.eq.s32.totalorder %v3489_v24, %v3374_v49  ;;  %vm6574_vm0 = vcmp.eq.s32.totalorder %v3515_v31, %v3383_v52 }
 0x186   :  { %v2227_v17 = vadd.f32 %v2570_v62, %v2226_v41  ;;  %v2360_v4 = vadd.f32 %v2571_v14, %v2359_v2  ;;  %v2574_v3 = vsel %vm6573_vm8, 1.0, %v6538_v10  ;;  %v2577_v62 = vsel %vm6574_vm0, 1.0, %v6538_v10 }
 0x187   :  { %v1454_v19 = vpop.f32.mrb[24].mxu0  ;;  %v1769_v45 = vpop.f32.mrb[22].mxu1  ;;  %vm6575_vm6 = vcmp.eq.s32.totalorder %v3515_v31, %v3374_v49  ;;  %vm6576_vm1 = vcmp.eq.s32.totalorder %v3541_v39, %v3383_v52  ;;  %vm6577_vm8 = vcmp.eq.s32.totalorder %v3541_v39, %v3374_v49  ;;  %vm6578_vm0 = vcmp.eq.s32.totalorder %v3567_v47, %v3383_v52 }
 0x188   :  { %2046 = vst.msk [vmem:[%s6347_s2 + $0x60] sm:$0xff] %vm2033_vm10, %v1454_v19  ;;  %2109 = vst.msk [vmem:[%s6347_s2 + $0x258] sm:$0xff] %vm2033_vm10, %v1769_v45  ;;  %v1456_v8 = vpop.f32.mrb[25].mxu0  ;;  %v1771_v27 = vpop.f32.mrb[23].mxu1  ;;  %v2228_v60 = vadd.f32 %v2572_v55, %v2227_v17  ;;  %v2361_v63 = vadd.f32 %v2573_v54, %v2360_v4  ;;  %v2576_v17 = vsel %vm6575_vm6, 1.0, %v6538_v10  ;;  %v2579_v31 = vsel %vm6576_vm1, 1.0, %v6538_v10 }
 0x189   :  { %v2578_v54 = vsel %vm6577_vm8, 1.0, %v6538_v10  ;;  %vm6579_vm6 = vcmp.eq.s32.totalorder %v3567_v47, %v3374_v49  ;;  %vm6580_vm1 = vcmp.eq.s32.totalorder %v3593_v58, %v3383_v52  ;;  %vm6581_vm8 = vcmp.eq.s32.totalorder %v3593_v58, %v3374_v49 }
 0x18a   :  { %v2229_v57 = vadd.f32 %v2574_v3, %v2228_v60  ;;  %v2362_v41 = vadd.f32 %v2575_v16, %v2361_v63  ;;  %v2581_v63 = vsel %vm6578_vm0, 1.0, %v6538_v10  ;;  %v2580_v16 = vsel %vm6579_vm6, 1.0, %v6538_v10 }
 0x18b   :  { %v1459_v2 = vpop.f32.mrb[26].mxu0  ;;  %v1774_v14 = vpop.f32.mrb[24].mxu1  ;;  %v2583_v47 = vsel %vm6580_vm1, 1.0, %v6538_v10  ;;  %vm6582_vm0 = vcmp.eq.s32.totalorder %v3619_v6, %v3383_v52  ;;  %vm6583_vm6 = vcmp.eq.s32.totalorder %v3619_v6, %v3374_v49  ;;  %vm6584_vm1 = vcmp.eq.s32.totalorder %v3645_v15, %v3383_v52 }
 0x18c   :  { %2047 = vst.msk [vmem:[%s6347_s2 + $0x68] sm:$0xff] %vm2033_vm10, %v1459_v2  ;;  %2110 = vst.msk [vmem:[%s6347_s2 + $0x260] sm:$0xff] %vm2033_vm10, %v1774_v14  ;;  %v1461_v24 = vpop.f32.mrb[27].mxu0  ;;  %v1776_v4 = vpop.f32.mrb[25].mxu1  ;;  %v2230_v19 = vadd.f32 %v2576_v17, %v2229_v57  ;;  %v2363_v45 = vadd.f32 %v2577_v62, %v2362_v41  ;;  %v2582_v2 = vsel %vm6581_vm8, 1.0, %v6538_v10  ;;  %v2587_v6 = vsel %vm6584_vm1, 1.0, %v6538_v10 }
 0x18d   :  { %v2585_v4 = vsel %vm6582_vm0, 1.0, %v6538_v10  ;;  %vm6585_vm8 = vcmp.eq.s32.totalorder %v3645_v15, %v3374_v49  ;;  %vm6586_vm0 = vcmp.eq.s32.totalorder %v3671_v25, %v3383_v52  ;;  %vm6588_vm1 = vcmp.eq.s32.totalorder %v3697_v33, %v3383_v52 }
 0x18e   :  { %v2231_v55 = vadd.f32 %v2578_v54, %v2230_v19  ;;  %v2364_v8 = vadd.f32 %v2579_v31, %v2363_v45  ;;  %v2584_v19 = vsel %vm6583_vm6, 1.0, %v6538_v10  ;;  %vm6587_vm6 = vcmp.eq.s32.totalorder %v3671_v25, %v3374_v49 }
 0x18f   :  { %v1464_v27 = vpop.f32.mrb[28].mxu0  ;;  %v1779_v60 = vpop.f32.mrb[26].mxu1  ;;  %v2591_v25 = vsel %vm6588_vm1, 1.0, %v6538_v10  ;;  %vm6592_vm1 = vcmp.eq.s32.totalorder %v3749_v53, %v3383_v52 }
 0x190   :  { %2048 = vst.msk [vmem:[%s6347_s2 + $0x70] sm:$0xff] %vm2033_vm10, %v1464_v27  ;;  %2111 = vst.msk [vmem:[%s6347_s2 + $0x268] sm:$0xff] %vm2033_vm10, %v1779_v60  ;;  %v1466_v39 = vpop.f32.mrb[29].mxu0  ;;  %v1781_v3 = vpop.f32.mrb[27].mxu1  ;;  %v2232_v57 = vadd.f32 %v2580_v16, %v2231_v55  ;;  %v2365_v41 = vadd.f32 %v2581_v63, %v2364_v8  ;;  %v2586_v55 = vsel %vm6585_vm8, 1.0, %v6538_v10  ;;  %v2589_v16 = vsel %vm6586_vm0, 1.0, %v6538_v10 }
 0x191   :  { %v2588_v39 = vsel %vm6587_vm6, 1.0, %v6538_v10  ;;  %vm6589_vm8 = vcmp.eq.s32.totalorder %v3697_v33, %v3374_v49  ;;  %vm6590_vm0 = vcmp.eq.s32.totalorder %v3723_v42, %v3383_v52  ;;  %vm6591_vm6 = vcmp.eq.s32.totalorder %v3723_v42, %v3374_v49 }
 0x192   :  { %v2233_v14 = vadd.f32 %v2582_v2, %v2232_v57  ;;  %v2366_v62 = vadd.f32 %v2583_v47, %v2365_v41  ;;  %v2590_v47 = vsel %vm6589_vm8, 1.0, %v6538_v10  ;;  %v2595_v42 = vsel %vm6592_vm1, 1.0, %v6538_v10 }
 0x193   :  { %v1469_v17 = vpop.f32.mrb[30].mxu0  ;;  %v1784_v24 = vpop.f32.mrb[28].mxu1  ;;  %vm6593_vm8 = vcmp.eq.s32.totalorder %v3749_v53, %v3374_v49  ;;  %vm6596_vm1 = vcmp.eq.s32.totalorder %v3801_v13, %v3374_v49 }
 0x194   :  { %2049 = vst.msk [vmem:[%s6347_s2 + $0x78] sm:$0xff] %vm2033_vm10, %v1469_v17  ;;  %2112 = vst.msk [vmem:[%s6347_s2 + $0x270] sm:$0xff] %vm2033_vm10, %v1784_v24  ;;  %v1471_v58 = vpop.f32.mrb[31].mxu0  ;;  %v1786_v45 = vpop.f32.mrb[29].mxu1  ;;  %v2234_v31 = vadd.f32 %v2584_v19, %v2233_v14  ;;  %v2367_v54 = vadd.f32 %v2585_v4, %v2366_v62  ;;  %v2593_v24 = vsel %vm6590_vm0, 1.0, %v6538_v10  ;;  %v2592_v4 = vsel %vm6591_vm6, 1.0, %v6538_v10 }
 0x195   :  { %vm6594_vm0 = vcmp.eq.s32.totalorder %v3775_v0, %v3374_v49  ;;  %vm6595_vm6 = vcmp.eq.s32.totalorder %v3775_v0, %v3383_v52  ;;  %v2598_v0 = vsel %vm6596_vm1, 1.0, %v6538_v10  ;;  %vm6600_vm1 = vcmp.eq.s32.totalorder %v3853_v34, %v3374_v49 }
 0x196   :  { %v2235_v8 = vadd.f32 %v2586_v55, %v2234_v31  ;;  %v2368_v27 = vadd.f32 %v2587_v6, %v2367_v54  ;;  %v2594_v31 = vsel %vm6593_vm8, 1.0, %v6538_v10  ;;  %vm6597_vm8 = vcmp.eq.s32.totalorder %v3801_v13, %v3383_v52 }
 0x197   :  { %v1474_v60 = vpop.f32.mrb[32].mxu0  ;;  %v1789_v63 = vpop.f32.mrb[30].mxu1 }
 0x198   :  { %2050 = vst.msk [vmem:[%s6347_s2 + $0x80] sm:$0xff] %vm2033_vm10, %v1474_v60  ;;  %2113 = vst.msk [vmem:[%s6347_s2 + $0x278] sm:$0xff] %vm2033_vm10, %v1789_v63  ;;  %v1476_v15 = vpop.f32.mrb[33].mxu0  ;;  %v1791_v3 = vpop.f32.mrb[31].mxu1  ;;  %v2236_v57 = vadd.f32 %v2588_v39, %v2235_v8  ;;  %v2369_v41 = vadd.f32 %v2589_v16, %v2368_v27  ;;  %v2596_v27 = vsel %vm6594_vm0, 1.0, %v6538_v10  ;;  %v2597_v60 = vsel %vm6595_vm6, 1.0, %v6538_v10 }
 0x199   :  { %v2599_v15 = vsel %vm6597_vm8, 1.0, %v6538_v10  ;;  %vm6598_vm0 = vcmp.eq.s32.totalorder %v3827_v23, %v3374_v49  ;;  %vm6599_vm6 = vcmp.eq.s32.totalorder %v3827_v23, %v3383_v52  ;;  %v2602_v23 = vsel %vm6600_vm1, 1.0, %v6538_v10 }
 0x19a   :  { %v2237_v2 = vadd.f32 %v2590_v47, %v2236_v57  ;;  %v2370_v14 = vadd.f32 %v2591_v25, %v2369_v41  ;;  %v2600_v47 = vsel %vm6598_vm0, 1.0, %v6538_v10  ;;  %vm6601_vm8 = vcmp.eq.s32.totalorder %v3853_v34, %v3383_v52 }
 0x19b   :  { %v1479_v62 = vpop.f32.mrb[34].mxu0  ;;  %v1794_v17 = vpop.f32.mrb[32].mxu1  ;;  %vm6602_vm0 = vcmp.eq.s32.totalorder %v3879_v44, %v3374_v49  ;;  %vm6604_vm1 = vcmp.eq.s32.totalorder %v3905_v56, %v3374_v49 }
 0x19c   :  { %2051 = vst.msk [vmem:[%s6347_s2 + $0x88] sm:$0xff] %vm2033_vm10, %v1479_v62  ;;  %2114 = vst.msk [vmem:[%s6347_s2 + $0x280] sm:$0xff] %vm2033_vm10, %v1794_v17  ;;  %v1481_v33 = vpop.f32.mrb[35].mxu0  ;;  %v1796_v19 = vpop.f32.mrb[33].mxu1  ;;  %v2238_v58 = vadd.f32 %v2592_v4, %v2237_v2  ;;  %v2371_v45 = vadd.f32 %v2593_v24, %v2370_v14  ;;  %v2601_v2 = vsel %vm6599_vm6, 1.0, %v6538_v10  ;;  %v2603_v24 = vsel %vm6601_vm8, 1.0, %v6538_v10 }
 0x19d   :  { %vm6603_vm6 = vcmp.eq.s32.totalorder %v3879_v44, %v3383_v52  ;;  %v2606_v44 = vsel %vm6604_vm1, 1.0, %v6538_v10  ;;  %vm6605_vm8 = vcmp.eq.s32.totalorder %v3905_v56, %v3383_v52  ;;  %vm6608_vm1 = vcmp.eq.s32.totalorder %v3957_v20, %v3374_v49 }
 0x19e   :  { %v2239_v54 = vadd.f32 %v2594_v31, %v2238_v58  ;;  %v2372_v6 = vadd.f32 %v2595_v42, %v2371_v45  ;;  %v2604_v45 = vsel %vm6602_vm0, 1.0, %v6538_v10  ;;  %v2605_v42 = vsel %vm6603_vm6, 1.0, %v6538_v10 }
 0x19f   :  { %v1484_v55 = vpop.f32.mrb[36].mxu0  ;;  %v1799_v8 = vpop.f32.mrb[34].mxu1  ;;  %vm6606_vm0 = vcmp.eq.s32.totalorder %v3931_v9, %v3374_v49  ;;  %vm6607_vm6 = vcmp.eq.s32.totalorder %v3931_v9, %v3383_v52  ;;  %v2610_v9 = vsel %vm6608_vm1, 1.0, %v6538_v10  ;;  %vm6612_vm1 = vcmp.eq.s32.totalorder %v4009_v43, %v3374_v49 }
 0x1a0   :  { %2052 = vst.msk [vmem:[%s6347_s2 + $0x90] sm:$0xff] %vm2033_vm10, %v1484_v55  ;;  %2115 = vst.msk [vmem:[%s6347_s2 + $0x288] sm:$0xff] %vm2033_vm10, %v1799_v8  ;;  %v1486_v53 = vpop.f32.mrb[37].mxu0  ;;  %v1801_v63 = vpop.f32.mrb[35].mxu1  ;;  %v2240_v16 = vadd.f32 %v2596_v27, %v2239_v54  ;;  %v2373_v39 = vadd.f32 %v2597_v60, %v2372_v6  ;;  %v2607_v55 = vsel %vm6605_vm8, 1.0, %v6538_v10  ;;  %vm6609_vm8 = vcmp.eq.s32.totalorder %v3957_v20, %v3383_v52 }
 0x1a1   :  { %v2608_v63 = vsel %vm6606_vm0, 1.0, %v6538_v10  ;;  %vm6610_vm0 = vcmp.eq.s32.totalorder %v3983_v30, %v3374_v49 }
 0x1a2   :  { %v2241_v3 = vadd.f32 %v2598_v0, %v2240_v16  ;;  %v2374_v57 = vadd.f32 %v2599_v15, %v2373_v39  ;;  %v2609_v16 = vsel %vm6607_vm6, 1.0, %v6538_v10  ;;  %vm6611_vm6 = vcmp.eq.s32.totalorder %v3983_v30, %v3383_v52 }
 0x1a3   :  { %v1489_v41 = vpop.f32.mrb[38].mxu0  ;;  %v1804_v25 = vpop.f32.mrb[36].mxu1  ;;  %v2614_v30 = vsel %vm6612_vm1, 1.0, %v6538_v10  ;;  %vm6616_vm1 = vcmp.eq.s32.totalorder %v4061_v11, %v3374_v49 }
 0x1a4   :  { %2053 = vst.msk [vmem:[%s6347_s2 + $0x98] sm:$0xff] %vm2033_vm10, %v1489_v41  ;;  %2116 = vst.msk [vmem:[%s6347_s2 + $0x290] sm:$0xff] %vm2033_vm10, %v1804_v25  ;;  %v1491_v13 = vpop.f32.mrb[39].mxu0  ;;  %v1806_v14 = vpop.f32.mrb[37].mxu1  ;;  %v2242_v62 = vadd.f32 %v2600_v47, %v2241_v3  ;;  %v2375_v17 = vadd.f32 %v2601_v2, %v2374_v57  ;;  %v2611_v3 = vsel %vm6609_vm8, 1.0, %v6538_v10  ;;  %v2612_v2 = vsel %vm6610_vm0, 1.0, %v6538_v10 }
 0x1a5   :  { %v2613_v13 = vsel %vm6611_vm6, 1.0, %v6538_v10  ;;  %vm6613_vm8 = vcmp.eq.s32.totalorder %v4009_v43, %v3383_v52  ;;  %vm6614_vm0 = vcmp.eq.s32.totalorder %v4035_v59, %v3374_v49  ;;  %vm6615_vm6 = vcmp.eq.s32.totalorder %v4035_v59, %v3383_v52 }
 0x1a6   :  { %v2243_v4 = vadd.f32 %v2602_v23, %v2242_v62  ;;  %v2376_v33 = vadd.f32 %v2603_v24, %v2375_v17  ;;  %v2615_v23 = vsel %vm6613_vm8, 1.0, %v6538_v10  ;;  %v2618_v59 = vsel %vm6616_vm1, 1.0, %v6538_v10 }
 0x1a7   :  { %v1494_v19 = vpop.f32.mrb[40].mxu0  ;;  %v1809_v58 = vpop.f32.mrb[38].mxu1  ;;  %vm6617_vm8 = vcmp.eq.s32.totalorder %v4061_v11, %v3383_v52  ;;  %vm6620_vm1 = vcmp.eq.s32.totalorder %v4113_v37, %v3374_v49 }
 0x1a8   :  { %2054 = vst.msk [vmem:[%s6347_s2 + $0xa0] sm:$0xff] %vm2033_vm10, %v1494_v19  ;;  %2117 = vst.msk [vmem:[%s6347_s2 + $0x298] sm:$0xff] %vm2033_vm10, %v1809_v58  ;;  %v1496_v34 = vpop.f32.mrb[41].mxu0  ;;  %v1811_v31 = vpop.f32.mrb[39].mxu1  ;;  %v2244_v54 = vadd.f32 %v2604_v45, %v2243_v4  ;;  %v2377_v6 = vadd.f32 %v2605_v42, %v2376_v33  ;;  %v2616_v58 = vsel %vm6614_vm0, 1.0, %v6538_v10  ;;  %v2617_v45 = vsel %vm6615_vm6, 1.0, %v6538_v10 }
 0x1a9   :  { %vm6618_vm0 = vcmp.eq.s32.totalorder %v4087_v26, %v3374_v49  ;;  %vm6619_vm6 = vcmp.eq.s32.totalorder %v4087_v26, %v3383_v52  ;;  %v2622_v26 = vsel %vm6620_vm1, 1.0, %v6538_v10  ;;  %vm6624_vm1 = vcmp.eq.s32.totalorder %v4165_v7, %v3374_v49 }
 0x1aa   :  { %v2245_v8 = vadd.f32 %v2606_v44, %v2244_v54  ;;  %v2378_v27 = vadd.f32 %v2607_v55, %v2377_v6  ;;  %v2619_v54 = vsel %vm6617_vm8, 1.0, %v6538_v10  ;;  %vm6621_vm8 = vcmp.eq.s32.totalorder %v4113_v37, %v3383_v52 }
 0x1ab   :  { %v1499_v60 = vpop.f32.mrb[42].mxu0  ;;  %v1814_v53 = vpop.f32.mrb[40].mxu1 }
 0x1ac   :  { %2055 = vst.msk [vmem:[%s6347_s2 + $0xa8] sm:$0xff] %vm2033_vm10, %v1499_v60  ;;  %2118 = vst.msk [vmem:[%s6347_s2 + $0x2a0] sm:$0xff] %vm2033_vm10, %v1814_v53  ;;  %v1501_v56 = vpop.f32.mrb[43].mxu0  ;;  %v1816_v39 = vpop.f32.mrb[41].mxu1  ;;  %v2246_v0 = vadd.f32 %v2608_v63, %v2245_v8  ;;  %v2379_v15 = vadd.f32 %v2609_v16, %v2378_v27  ;;  %v2620_v27 = vsel %vm6618_vm0, 1.0, %v6538_v10  ;;  %v2621_v60 = vsel %vm6619_vm6, 1.0, %v6538_v10 }
 0x1ad   :  { %v2623_v56 = vsel %vm6621_vm8, 1.0, %v6538_v10  ;;  %vm6622_vm0 = vcmp.eq.s32.totalorder %v4139_v51, %v3374_v49  ;;  %vm6623_vm6 = vcmp.eq.s32.totalorder %v4139_v51, %v3383_v52  ;;  %v2626_v51 = vsel %vm6624_vm1, 1.0, %v6538_v10 }
 0x1ae   :  { %v2247_v57 = vadd.f32 %v2610_v9, %v2246_v0  ;;  %v2380_v41 = vadd.f32 %v2611_v3, %v2379_v15  ;;  %v2624_v3 = vsel %vm6622_vm0, 1.0, %v6538_v10  ;;  %vm6625_vm8 = vcmp.eq.s32.totalorder %v4165_v7, %v3383_v52 }
 0x1af   :  { %v1504_v25 = vpop.f32.mrb[44].mxu0  ;;  %v1819_v47 = vpop.f32.mrb[42].mxu1  ;;  %vm6626_vm0 = vcmp.eq.s32.totalorder %v4191_v22, %v3374_v49  ;;  %vm6628_vm1 = vcmp.eq.s32.totalorder %v4215_v35, %v3374_v49 }
 0x1b0   :  { %2056 = vst.msk [vmem:[%s6347_s2 + $0xb0] sm:$0xff] %vm2033_vm10, %v1504_v25  ;;  %2119 = vst.msk [vmem:[%s6347_s2 + $0x2a8] sm:$0xff] %vm2033_vm10, %v1819_v47  ;;  %v1506_v20 = vpop.f32.mrb[45].mxu0  ;;  %v1821_v14 = vpop.f32.mrb[43].mxu1  ;;  %v2248_v62 = vadd.f32 %v2612_v2, %v2247_v57  ;;  %v2381_v17 = vadd.f32 %v2613_v13, %v2380_v41  ;;  %v2625_v57 = vsel %vm6623_vm6, 1.0, %v6538_v10  ;;  %v2627_v2 = vsel %vm6625_vm8, 1.0, %v6538_v10 }
 0x1b1   :  { %vm6627_vm6 = vcmp.eq.s32.totalorder %v4191_v22, %v3383_v52  ;;  %v2630_v22 = vsel %vm6628_vm1, 1.0, %v6538_v10  ;;  %vm6629_vm8 = vcmp.eq.s32.totalorder %v4215_v35, %v3383_v52 }
 0x1b2   :  { %v2249_v24 = vadd.f32 %v2614_v30, %v2248_v62  ;;  %v2382_v4 = vadd.f32 %v2615_v23, %v2381_v17  ;;  %v2628_v17 = vsel %vm6626_vm0, 1.0, %v6538_v10  ;;  %v2629_v30 = vsel %vm6627_vm6, 1.0, %v6538_v10 }
 0x1b3   :  { %v1509_v33 = vpop.f32.mrb[46].mxu0  ;;  %v1824_v19 = vpop.f32.mrb[44].mxu1 }
 0x1b4   :  { %2057 = vst.msk [vmem:[%s6347_s2 + $0xb8] sm:$0xff] %vm2033_vm10, %v1509_v33  ;;  %2120 = vst.msk [vmem:[%s6347_s2 + $0x2b0] sm:$0xff] %vm2033_vm10, %v1824_v19  ;;  %v1511_v43 = vpop.f32.mrb[47].mxu0  ;;  %v1826_v42 = vpop.f32.mrb[45].mxu1  ;;  %v2250_v34 = vadd.f32 %v2616_v58, %v2249_v24  ;;  %v2383_v31 = vadd.f32 %v2617_v45, %v2382_v4  ;;  %v2631_v33 = vsel %vm6629_vm8, 1.0, %v6538_v10 }
 0x1b5   :  { %v6630_v42 = vld [vmem:[#allocation2_spill] sm:$0xff] }
 0x1b6   :  { %v2251_v6 = vadd.f32 %v2618_v59, %v2250_v34  ;;  %v2384_v44 = vadd.f32 %v2619_v54, %v2383_v31  ;;  %vm6631_vm0 = vcmp.eq.s32.totalorder %v6630_v42, %v3374_v49  ;;  %vm6632_vm6 = vcmp.eq.s32.totalorder %v6630_v42, %v3383_v52 }
 0x1b7   :  { %v1514_v55 = vpop.f32.mrb[48].mxu0  ;;  %v1829_v8 = vpop.f32.mrb[46].mxu1  ;;  %v2632_v34 = vsel %vm6631_vm0, 1.0, %v6538_v10  ;;  %v2633_v31 = vsel %vm6632_vm6, 1.0, %v6538_v10 }
 0x1b8   :  { %2058 = vst.msk [vmem:[%s6347_s2 + $0xc0] sm:$0xff] %vm2033_vm10, %v1514_v55  ;;  %2121 = vst.msk [vmem:[%s6347_s2 + $0x2b8] sm:$0xff] %vm2033_vm10, %v1829_v8  ;;  %v1516_v11 = vpop.f32.mrb[49].mxu0  ;;  %v1831_v53 = vpop.f32.mrb[47].mxu1  ;;  %v2252_v63 = vadd.f32 %v2620_v27, %v2251_v6  ;;  %v2385_v16 = vadd.f32 %v2621_v60, %v2384_v44  ;;  %v6633_v44 = vld [vmem:[#allocation3_spill] sm:$0xff] }
 0x1b9   :  { %vm6634_vm1 = vcmp.eq.s32.totalorder %v6633_v44, %v3374_v49  ;;  %vm6635_vm8 = vcmp.eq.s32.totalorder %v6633_v44, %v3383_v52 }
 0x1ba   :  { %v2253_v39 = vadd.f32 %v2622_v26, %v2252_v63  ;;  %v2386_v0 = vadd.f32 %v2623_v56, %v2385_v16  ;;  %v2634_v55 = vsel %vm6634_vm1, 1.0, %v6538_v10  ;;  %v2635_v8 = vsel %vm6635_vm8, 1.0, %v6538_v10  ;;  %v6636_v63 = vld [vmem:[#allocation4_spill] sm:$0xff] }
 0x1bb   :  { %v1519_v15 = vpop.f32.mrb[50].mxu0  ;;  %v1834_v9 = vpop.f32.mrb[48].mxu1  ;;  %vm6637_vm0 = vcmp.eq.s32.totalorder %v6636_v63, %v3374_v49  ;;  %vm6638_vm6 = vcmp.eq.s32.totalorder %v6636_v63, %v3383_v52 }
 0x1bc   :  { %2059 = vst.msk [vmem:[%s6347_s2 + $0xc8] sm:$0xff] %vm2033_vm10, %v1519_v15  ;;  %2122 = vst.msk [vmem:[%s6347_s2 + $0x2c0] sm:$0xff] %vm2033_vm10, %v1834_v9  ;;  %v1521_v37 = vpop.f32.mrb[51].mxu0  ;;  %v1836_v41 = vpop.f32.mrb[49].mxu1  ;;  %v2254_v25 = vadd.f32 %v2624_v3, %v2253_v39  ;;  %v2387_v47 = vadd.f32 %v2625_v57, %v2386_v0  ;;  %v2636_v16 = vsel %vm6637_vm0, 1.0, %v6538_v10  ;;  %v2637_v26 = vsel %vm6638_vm6, 1.0, %v6538_v10 }
 0x1bd   :  { %v6639_v9 = vld [vmem:[#allocation5_spill] sm:$0xff] }
 0x1be   :  { %v2255_v13 = vadd.f32 %v2626_v51, %v2254_v25  ;;  %v2388_v20 = vadd.f32 %v2627_v2, %v2387_v47  ;;  %vm6640_vm1 = vcmp.eq.s32.totalorder %v6639_v9, %v3374_v49  ;;  %vm6641_vm8 = vcmp.eq.s32.totalorder %v6639_v9, %v3383_v52  ;;  %v6642_v51 = vld [vmem:[#allocation6_spill] sm:$0xff] }
 0x1bf   :  { %v1524_v14 = vpop.f32.mrb[52].mxu0  ;;  %v1839_v62 = vpop.f32.mrb[50].mxu1  ;;  %v2638_v3 = vsel %vm6640_vm1, 1.0, %v6538_v10  ;;  %v2639_v57 = vsel %vm6641_vm8, 1.0, %v6538_v10  ;;  %vm6643_vm0 = vcmp.eq.s32.totalorder %v6642_v51, %v3374_v49  ;;  %vm6644_vm6 = vcmp.eq.s32.totalorder %v6642_v51, %v3383_v52 }
 0x1c0   :  { %2060 = vst.msk [vmem:[%s6347_s2 + $0xd0] sm:$0xff] %vm2033_vm10, %v1524_v14  ;;  %2123 = vst.msk [vmem:[%s6347_s2 + $0x2c8] sm:$0xff] %vm2033_vm10, %v1839_v62  ;;  %v1526_v7 = vpop.f32.mrb[53].mxu0  ;;  %v1841_v23 = vpop.f32.mrb[51].mxu1  ;;  %v2256_v24 = vadd.f32 %v2628_v17, %v2255_v13  ;;  %v2389_v4 = vadd.f32 %v2629_v30, %v2388_v20  ;;  %v2640_v2 = vsel %vm6643_vm0, 1.0, %v6538_v10  ;;  %v2641_v13 = vsel %vm6644_vm6, 1.0, %v6538_v10 }
 0x1c1   :  { %v6645_v30 = vld [vmem:[#allocation7_spill] sm:$0xff] }
 0x1c2   :  { %v2257_v19 = vadd.f32 %v2630_v22, %v2256_v24  ;;  %v2390_v58 = vadd.f32 %v2631_v33, %v2389_v4  ;;  %vm6646_vm1 = vcmp.eq.s32.totalorder %v6645_v30, %v3374_v49  ;;  %vm6647_vm8 = vcmp.eq.s32.totalorder %v6645_v30, %v3383_v52 }
 0x1c3   :  { %v1529_v45 = vpop.f32.mrb[54].mxu0  ;;  %v1844_v43 = vpop.f32.mrb[52].mxu1  ;;  %v2642_v7 = vsel %vm6646_vm1, 1.0, %v6538_v10  ;;  %v2643_v23 = vsel %vm6647_vm8, 1.0, %v6538_v10 }
 0x1c4   :  { %2061 = vst.msk [vmem:[%s6347_s2 + $0xd8] sm:$0xff] %vm2033_vm10, %v1529_v45  ;;  %2124 = vst.msk [vmem:[%s6347_s2 + $0x2d0] sm:$0xff] %vm2033_vm10, %v1844_v43  ;;  %v1531_v35 = vpop.f32.mrb[55].mxu0  ;;  %v1846_v59 = vpop.f32.mrb[53].mxu1  ;;  %v2258_v54 = vadd.f32 %v2632_v34, %v2257_v19  ;;  %v2391_v6 = vadd.f32 %v2633_v31, %v2390_v58  ;;  %v6648_v19 = vld [vmem:[#allocation8_spill] sm:$0xff] }
 0x1c5   :  { %vm6649_vm0 = vcmp.eq.s32.totalorder %v6648_v19, %v3374_v49  ;;  %vm6650_vm6 = vcmp.eq.s32.totalorder %v6648_v19, %v3383_v52  ;;  %v6651_v35 = vld [vmem:[#allocation9_spill] sm:$0xff] }
 0x1c6   :  { %v2259_v27 = vadd.f32 %v2634_v55, %v2258_v54  ;;  %v2392_v60 = vadd.f32 %v2635_v8, %v2391_v6  ;;  %v2644_v58 = vsel %vm6649_vm0, 1.0, %v6538_v10  ;;  %v2645_v45 = vsel %vm6650_vm6, 1.0, %v6538_v10 }
 0x1c7   :  { %v1534_v11 = vpop.f32.mrb[56].mxu0  ;;  %v1849_v53 = vpop.f32.mrb[54].mxu1  ;;  %vm6652_vm1 = vcmp.eq.s32.totalorder %v6651_v35, %v3374_v49  ;;  %vm6653_vm8 = vcmp.eq.s32.totalorder %v6651_v35, %v3383_v52 }
 0x1c8   :  { %2062 = vst.msk [vmem:[%s6347_s2 + $0xe0] sm:$0xff] %vm2033_vm10, %v1534_v11  ;;  %2125 = vst.msk [vmem:[%s6347_s2 + $0x2d8] sm:$0xff] %vm2033_vm10, %v1849_v53  ;;  %v1536_v56 = vpop.f32.mrb[57].mxu0  ;;  %v1851_v39 = vpop.f32.mrb[55].mxu1  ;;  %v2260_v0 = vadd.f32 %v2636_v16, %v2259_v27  ;;  %v2393_v15 = vadd.f32 %v2637_v26, %v2392_v60  ;;  %v2646_v59 = vsel %vm6652_vm1, 1.0, %v6538_v10  ;;  %v2647_v54 = vsel %vm6653_vm8, 1.0, %v6538_v10 }
 0x1c9   :  { %v6654_v27 = vld [vmem:[#allocation10_spill] sm:$0xff]  ;;  %v6657_v56 = vld [vmem:[#allocation11_spill] sm:$0xff] }
 0x1ca   :  { %v2261_v37 = vadd.f32 %v2638_v3, %v2260_v0  ;;  %v2394_v41 = vadd.f32 %v2639_v57, %v2393_v15  ;;  %vm6655_vm0 = vcmp.eq.s32.totalorder %v6654_v27, %v3374_v49  ;;  %vm6656_vm6 = vcmp.eq.s32.totalorder %v6654_v27, %v3383_v52 }
 0x1cb   :  { %v1539_v25 = vpop.f32.mrb[58].mxu0  ;;  %v1854_v47 = vpop.f32.mrb[56].mxu1  ;;  %v2648_v60 = vsel %vm6655_vm0, 1.0, %v6538_v10  ;;  %v2649_v11 = vsel %vm6656_vm6, 1.0, %v6538_v10  ;;  %vm6658_vm1 = vcmp.eq.s32.totalorder %v6657_v56, %v3374_v49  ;;  %vm6659_vm8 = vcmp.eq.s32.totalorder %v6657_v56, %v3383_v52 }
 0x1cc   :  { %2063 = vst.msk [vmem:[%s6347_s2 + $0xe8] sm:$0xff] %vm2033_vm10, %v1539_v25  ;;  %2126 = vst.msk [vmem:[%s6347_s2 + $0x2e0] sm:$0xff] %vm2033_vm10, %v1854_v47  ;;  %v1541_v20 = vpop.f32.mrb[59].mxu0  ;;  %v1856_v14 = vpop.f32.mrb[57].mxu1  ;;  %v2262_v62 = vadd.f32 %v2640_v2, %v2261_v37  ;;  %v2395_v17 = vadd.f32 %v2641_v13, %v2394_v41  ;;  %v2650_v39 = vsel %vm6658_vm1, 1.0, %v6538_v10  ;;  %v2651_v0 = vsel %vm6659_vm8, 1.0, %v6538_v10 }
 0x1cd   :  { %v6660_v37 = vld [vmem:[#allocation12_spill] sm:$0xff]  ;;  %v6663_v20 = vld [vmem:[#allocation13_spill] sm:$0xff] }
 0x1ce   :  { %v2263_v24 = vadd.f32 %v2642_v7, %v2262_v62  ;;  %v2396_v4 = vadd.f32 %v2643_v23, %v2395_v17  ;;  %vm6661_vm0 = vcmp.eq.s32.totalorder %v6660_v37, %v3374_v49  ;;  %vm6662_vm6 = vcmp.eq.s32.totalorder %v6660_v37, %v3383_v52 }
 0x1cf   :  { %v1544_v22 = vpop.f32.mrb[60].mxu0  ;;  %v1859_v33 = vpop.f32.mrb[58].mxu1  ;;  %v2652_v41 = vsel %vm6661_vm0, 1.0, %v6538_v10  ;;  %v2653_v25 = vsel %vm6662_vm6, 1.0, %v6538_v10  ;;  %vm6664_vm1 = vcmp.eq.s32.totalorder %v6663_v20, %v3374_v49  ;;  %vm6665_vm8 = vcmp.eq.s32.totalorder %v6663_v20, %v3383_v52 }
 0x1d0   :  { %2064 = vst.msk [vmem:[%s6347_s2 + $0xf0] sm:$0xff] %vm2033_vm10, %v1544_v22  ;;  %2127 = vst.msk [vmem:[%s6347_s2 + $0x2e8] sm:$0xff] %vm2033_vm10, %v1859_v33  ;;  %v1546_v43 = vpop.f32.mrb[61].mxu0  ;;  %v1861_v42 = vpop.f32.mrb[59].mxu1  ;;  %v2264_v34 = vadd.f32 %v2644_v58, %v2263_v24  ;;  %v2397_v31 = vadd.f32 %v2645_v45, %v2396_v4  ;;  %v2654_v14 = vsel %vm6664_vm1, 1.0, %v6538_v10  ;;  %v2655_v62 = vsel %vm6665_vm8, 1.0, %v6538_v10 }
 0x1d1   :  { %v6666_v24 = vld [vmem:[#allocation14_spill] sm:$0xff]  ;;  %v6669_v43 = vld [vmem:[#allocation15_spill] sm:$0xff] }
 0x1d2   :  { %v2265_v6 = vadd.f32 %v2646_v59, %v2264_v34  ;;  %v2398_v44 = vadd.f32 %v2647_v54, %v2397_v31  ;;  %vm6667_vm0 = vcmp.eq.s32.totalorder %v6666_v24, %v3374_v49  ;;  %vm6668_vm6 = vcmp.eq.s32.totalorder %v6666_v24, %v3383_v52 }
 0x1d3   :  { %v1549_v55 = vpop.f32.mrb[62].mxu0  ;;  %v1864_v8 = vpop.f32.mrb[60].mxu1  ;;  %v2656_v4 = vsel %vm6667_vm0, 1.0, %v6538_v10  ;;  %v2657_v22 = vsel %vm6668_vm6, 1.0, %v6538_v10  ;;  %vm6670_vm1 = vcmp.eq.s32.totalorder %v6669_v43, %v3374_v49  ;;  %vm6671_vm8 = vcmp.eq.s32.totalorder %v6669_v43, %v3383_v52 }
 0x1d4   :  { %2065 = vst.msk [vmem:[%s6347_s2 + $0xf8] sm:$0xff] %vm2033_vm10, %v1549_v55  ;;  %2128 = vst.msk [vmem:[%s6347_s2 + $0x2f0] sm:$0xff] %vm2033_vm10, %v1864_v8  ;;  %v1551_v53 = vpop.f32.mrb[63].mxu0  ;;  %v1866_v63 = vpop.f32.mrb[61].mxu1  ;;  %v2266_v16 = vadd.f32 %v2648_v60, %v2265_v6  ;;  %v2399_v26 = vadd.f32 %v2649_v11, %v2398_v44  ;;  %v2658_v42 = vsel %vm6670_vm1, 1.0, %v6538_v10  ;;  %v2659_v34 = vsel %vm6671_vm8, 1.0, %v6538_v10 }
 0x1d5   :  { %vm6672_vm0 = vcmp.eq.s32.totalorder %v4635_v5, %v3374_v49  ;;  %vm6673_vm6 = vcmp.eq.s32.totalorder %v4635_v5, %v3383_v52  ;;  %vm6674_vm1 = vcmp.eq.s32.totalorder %v4679_v50, %v3374_v49  ;;  %vm6675_vm8 = vcmp.eq.s32.totalorder %v4679_v50, %v3383_v52 }
 0x1d6   :  { %v2267_v15 = vadd.f32 %v2650_v39, %v2266_v16  ;;  %v2400_v9 = vadd.f32 %v2651_v0, %v2399_v26  ;;  %v2660_v6 = vsel %vm6672_vm0, 1.0, %v6538_v10  ;;  %v2661_v44 = vsel %vm6673_vm6, 1.0, %v6538_v10 }
 0x1d7   :  { %v1554_v3 = vpop.f32.mrb[64].mxu0  ;;  %v1869_v57 = vpop.f32.mrb[62].mxu1  ;;  %v2662_v5 = vsel %vm6674_vm1, 1.0, %v6538_v10  ;;  %v2663_v11 = vsel %vm6675_vm8, 1.0, %v6538_v10  ;;  %vm6676_vm0 = vcmp.eq.s32.totalorder %v4725_v46, %v3374_v49  ;;  %vm6677_vm6 = vcmp.eq.s32.totalorder %v4725_v46, %v3383_v52 }
 0x1d8   :  { %2066 = vst.msk [vmem:[%s6347_s2 + $0x100] sm:$0xff] %vm2033_vm10, %v1554_v3  ;;  %2129 = vst.msk [vmem:[%s6347_s2 + $0x2f8] sm:$0xff] %vm2033_vm10, %v1869_v57  ;;  %v1556_v47 = vpop.f32.mrb[65].mxu0  ;;  %v1871_v51 = vpop.f32.mrb[63].mxu1  ;;  %v2268_v2 = vadd.f32 %v2652_v41, %v2267_v15  ;;  %v2401_v13 = vadd.f32 %v2653_v25, %v2400_v9  ;;  %v2664_v56 = vsel %vm6676_vm0, 1.0, %v6538_v10  ;;  %v2665_v39 = vsel %vm6677_vm6, 1.0, %v6538_v10 }
 0x1d9   :  { %vm6678_vm1 = vcmp.eq.s32.totalorder %v4769_v29, %v3374_v49  ;;  %vm6679_vm8 = vcmp.eq.s32.totalorder %v4769_v29, %v3383_v52  ;;  %vm6680_vm0 = vcmp.eq.s32.totalorder %v4813_v40, %v3374_v49  ;;  %vm6681_vm6 = vcmp.eq.s32.totalorder %v4813_v40, %v3383_v52 }
 0x1da   :  { %v2269_v17 = vadd.f32 %v2654_v14, %v2268_v2  ;;  %v2402_v30 = vadd.f32 %v2655_v62, %v2401_v13  ;;  %v2666_v46 = vsel %vm6678_vm1, 1.0, %v6538_v10  ;;  %v2667_v3 = vsel %vm6679_vm8, 1.0, %v6538_v10 }
 0x1db   :  { %v1559_v7 = vpop.f32.mrb[66].mxu0  ;;  %v1874_v23 = vpop.f32.mrb[64].mxu1  ;;  %v2668_v47 = vsel %vm6680_vm0, 1.0, %v6538_v10  ;;  %v2669_v51 = vsel %vm6681_vm6, 1.0, %v6538_v10  ;;  %vm6682_vm1 = vcmp.eq.s32.totalorder %v4857_v36, %v3374_v49  ;;  %vm6683_vm8 = vcmp.eq.s32.totalorder %v4857_v36, %v3383_v52 }
 0x1dc   :  { %2067 = vst.msk [vmem:[%s6347_s2 + $0x108] sm:$0xff] %vm2033_vm10, %v1559_v7  ;;  %2130 = vst.msk [vmem:[%s6347_s2 + $0x300] sm:$0xff] %vm2033_vm10, %v1874_v23  ;;  %v1561_v33 = vpop.f32.mrb[67].mxu0  ;;  %v1876_v19 = vpop.f32.mrb[65].mxu1  ;;  %v2270_v58 = vadd.f32 %v2656_v4, %v2269_v17  ;;  %v2403_v45 = vadd.f32 %v2657_v22, %v2402_v30  ;;  %v2670_v40 = vsel %vm6682_vm1, 1.0, %v6538_v10  ;;  %v2671_v14 = vsel %vm6683_vm8, 1.0, %v6538_v10 }
 0x1dd   :  { %v2672_v23 = vsel %vm762_vm4, 1.0, %v6538_v10  ;;  %vm6684_vm0 = vcmp.eq.s32.totalorder %v4901_v1, %v3383_v52  ;;  %v2674_v1 = vsel %vm764_vm5, 1.0, %v6538_v10  ;;  %vm6685_vm4 = vcmp.eq.s32.totalorder %v4949_v61, %v3383_v52 }
 0x1de   :  { %v2271_v31 = vadd.f32 %v2658_v42, %v2270_v58  ;;  %v2404_v35 = vadd.f32 %v2659_v34, %v2403_v45  ;;  %v2673_v24 = vsel %vm6684_vm0, 1.0, %v6538_v10  ;;  %v2675_v19 = vsel %vm6685_vm4, 1.0, %v6538_v10 }
 0x1df   :  { %v1564_v59 = vpop.f32.mrb[68].mxu0  ;;  %v1879_v54 = vpop.f32.mrb[66].mxu1  ;;  %vm6686_vm6 = vcmp.eq.s32.totalorder %v5001_v48, %v3374_v49  ;;  %vm6687_vm1 = vcmp.eq.s32.totalorder %v5001_v48, %v3383_v52  ;;  %v2678_v48 = vsel %vm768_vm7, 1.0, %v6538_v10  ;;  %vm6688_vm5 = vcmp.eq.s32.totalorder %v5053_v38, %v3383_v52 }
 0x1e0   :  { %2068 = vst.msk [vmem:[%s6347_s2 + $0x110] sm:$0xff] %vm2033_vm10, %v1564_v59  ;;  %2131 = vst.msk [vmem:[%s6347_s2 + $0x308] sm:$0xff] %vm2033_vm10, %v1879_v54  ;;  %v1566_v55 = vpop.f32.mrb[69].mxu0  ;;  %v1881_v8 = vpop.f32.mrb[67].mxu1  ;;  %v2272_v27 = vadd.f32 %v2660_v6, %v2271_v31  ;;  %v2405_v60 = vadd.f32 %v2661_v44, %v2404_v35  ;;  %v2676_v34 = vsel %vm6686_vm6, 1.0, %v6538_v10  ;;  %v2677_v31 = vsel %vm6687_vm1, 1.0, %v6538_v10 }
 0x1e1   :  { %v2679_v6 = vsel %vm6688_vm5, 1.0, %v6538_v10 }
 0x1e2   :  { %v2273_v53 = vadd.f32 %v2662_v5, %v2272_v27  ;;  %v2406_v63 = vadd.f32 %v2663_v11, %v2405_v60  ;;  %v2680_v60 = vsel %vm770_vm3, 1.0, %v6538_v10  ;;  %v2681_v5 = vsel %vm771_vm15, 1.0, %v6538_v10 }
 0x1e3   :  { %v1569_v16 = vpop.f32.mrb[70].mxu0  ;;  %v1884_v26 = vpop.f32.mrb[68].mxu1  ;;  %vm6692_vm15 = vcmp.eq.s32.totalorder %v5249_v12, %v3383_v52  ;;  %vm6693_vm3 = vcmp.eq.s32.totalorder %v5288_v21, %v3383_v52 }
 0x1e4   :  { %2069 = vst.msk [vmem:[%s6347_s2 + $0x118] sm:$0xff] %vm2033_vm10, %v1569_v16  ;;  %2132 = vst.msk [vmem:[%s6347_s2 + $0x310] sm:$0xff] %vm2033_vm10, %v1884_v26  ;;  %v1571_v50 = vpop.f32.mrb[71].mxu0  ;;  %v1886_v0 = vpop.f32.mrb[69].mxu1  ;;  %v2274_v15 = vadd.f32 %v2664_v56, %v2273_v53  ;;  %v2407_v9 = vadd.f32 %v2665_v39, %v2406_v63  ;;  %v2683_v26 = vsel %vm773_vm11, 1.0, %v6538_v10  ;;  %vm6694_vm11 = vcmp.eq.s32.totalorder %v5327_v18, %v3374_v49 }
 0x1e5   :  { %v2690_v21 = vsel %vm6694_vm11, 1.0, %v6538_v10 }
 0x1e6   :  { %v2275_v57 = vadd.f32 %v2666_v46, %v2274_v15  ;;  %v2408_v37 = vadd.f32 %v2667_v3, %v2407_v9  ;;  %v6690_v15 = vld [vmem:[#allocation17_spill] sm:$0xff]  ;;  %v2684_v9 = vsel %vm774_vm13, 1.0, %v6538_v10  ;;  %vm6696_vm13 = vcmp.eq.s32.totalorder %v5361_v32, %v3383_v52 }
 0x1e7   :  { %v1574_v41 = vpop.f32.mrb[72].mxu0  ;;  %v1889_v25 = vpop.f32.mrb[70].mxu1  ;;  %vm6691_vm7 = vcmp.eq.s32.totalorder %v6690_v15, %v3383_v52 }
 0x1e8   :  { %2070 = vst.msk [vmem:[%s6347_s2 + $0x120] sm:$0xff] %vm2033_vm10, %v1574_v41  ;;  %2133 = vst.msk [vmem:[%s6347_s2 + $0x318] sm:$0xff] %vm2033_vm10, %v1889_v25  ;;  %v1576_v29 = vpop.f32.mrb[73].mxu0  ;;  %v1891_v2 = vpop.f32.mrb[71].mxu1  ;;  %v2276_v13 = vadd.f32 %v2668_v47, %v2275_v57  ;;  %v2409_v20 = vadd.f32 %v2669_v51, %v2408_v37  ;;  %v2685_v46 = vsel %vm6691_vm7, 1.0, %v6538_v10  ;;  %v2686_v25 = vsel %vm776_vm14, 1.0, %v6538_v10 }
 0x1e9   :  { %v2687_v47 = vsel %vm6692_vm15, 1.0, %v6538_v10 }
 0x1ea   :  { %v2277_v62 = vadd.f32 %v2670_v40, %v2276_v13  ;;  %v2410_v17 = vadd.f32 %v2671_v14, %v2409_v20  ;;  %v2688_v20 = vsel %vm778_vm12, 1.0, %v6538_v10  ;;  %v2689_v40 = vsel %vm6693_vm3, 1.0, %v6538_v10 }
 0x1eb   :  { %v1579_v30 = vpop.f32.mrb[74].mxu0  ;;  %v1894_v7 = vpop.f32.mrb[72].mxu1 }
 0x1ec   :  { %2071 = vst.msk [vmem:[%s6347_s2 + $0x128] sm:$0xff] %vm2033_vm10, %v1579_v30  ;;  %2134 = vst.msk [vmem:[%s6347_s2 + $0x320] sm:$0xff] %vm2033_vm10, %v1894_v7  ;;  %v1581_v36 = vpop.f32.mrb[75].mxu0  ;;  %v1896_v4 = vpop.f32.mrb[73].mxu1  ;;  %v2278_v22 = vadd.f32 %v2672_v23, %v2277_v62  ;;  %v2411_v33 = vadd.f32 %v2673_v24, %v2410_v17  ;;  %v2691_v30 = vsel %vm6695_vm9, 1.0, %v6538_v10 }
 0x1ed   :  { %v2692_v4 = vsel %vm782_vm2, 1.0, %v6538_v10 }
 0x1ee   :  { %v2279_v58 = vadd.f32 %v2674_v1, %v2278_v22  ;;  %v2412_v45 = vadd.f32 %v2675_v19, %v2411_v33  ;;  %v2693_v22 = vsel %vm6696_vm13, 1.0, %v6538_v10 }
 0x1ef   :  { %v1584_v43 = vpop.f32.mrb[76].mxu0  ;;  %v1899_v42 = vpop.f32.mrb[74].mxu1 }
 0x1f0   :  { %2072 = vst.msk [vmem:[%s6347_s2 + $0x130] sm:$0xff] %vm2033_vm10, %v1584_v43  ;;  %2135 = vst.msk [vmem:[%s6347_s2 + $0x328] sm:$0xff] %vm2033_vm10, %v1899_v42  ;;  %v1586_v61 = vpop.f32.mrb[77].mxu0  ;;  %v1901_v35 = vpop.f32.mrb[75].mxu1  ;;  %v2280_v59 = vadd.f32 %v2676_v34, %v2279_v58  ;;  %v2413_v54 = vadd.f32 %v2677_v31, %v2412_v45 }
 0x1f2   :  { %v2281_v44 = vadd.f32 %v2678_v48, %v2280_v59  ;;  %v2414_v55 = vadd.f32 %v2679_v6, %v2413_v54 }
 0x1f3   :  { %v1589_v8 = vpop.f32.mrb[78].mxu0  ;;  %v1904_v27 = vpop.f32.mrb[76].mxu1 }
 0x1f4   :  { %2073 = vst.msk [vmem:[%s6347_s2 + $0x138] sm:$0xff] %vm2033_vm10, %v1589_v8  ;;  %2136 = vst.msk [vmem:[%s6347_s2 + $0x330] sm:$0xff] %vm2033_vm10, %v1904_v27  ;;  %v1591_v38 = vpop.f32.mrb[79].mxu0  ;;  %v1906_v11 = vpop.f32.mrb[77].mxu1  ;;  %v2282_v53 = vadd.f32 %v2680_v60, %v2281_v44  ;;  %v2415_v63 = vadd.f32 %v2681_v5, %v2414_v55 }
 0x1f6   :  { %v2283_v56 = vadd.f32 %v2682_v28, %v2282_v53  ;;  %v2416_v39 = vadd.f32 %v2683_v26, %v2415_v63 }
 0x1f7   :  { %v1594_v50 = vpop.f32.mrb[80].mxu0  ;;  %v1909_v0 = vpop.f32.mrb[78].mxu1 }
 0x1f8   :  { %2074 = vst.msk [vmem:[%s6347_s2 + $0x140] sm:$0xff] %vm2033_vm10, %v1594_v50  ;;  %2137 = vst.msk [vmem:[%s6347_s2 + $0x338] sm:$0xff] %vm2033_vm10, %v1909_v0  ;;  %v1596_v3 = vpop.f32.mrb[81].mxu0  ;;  %v1911_v57 = vpop.f32.mrb[79].mxu1  ;;  %v2284_v37 = vadd.f32 %v2684_v9, %v2283_v56  ;;  %v2417_v41 = vadd.f32 %v2685_v46, %v2416_v39 }
 0x1fa   :  { %v2285_v51 = vadd.f32 %v2686_v25, %v2284_v37  ;;  %v2418_v29 = vadd.f32 %v2687_v47, %v2417_v41 }
 0x1fb   :  { %v1599_v2 = vpop.f32.mrb[82].mxu0  ;;  %v1914_v13 = vpop.f32.mrb[80].mxu1 }
 0x1fc   :  { %2075 = vst.msk [vmem:[%s6347_s2 + $0x148] sm:$0xff] %vm2033_vm10, %v1599_v2  ;;  %2138 = vst.msk [vmem:[%s6347_s2 + $0x340] sm:$0xff] %vm2033_vm10, %v1914_v13  ;;  %v1601_v12 = vpop.f32.mrb[83].mxu0  ;;  %v1916_v14 = vpop.f32.mrb[81].mxu1  ;;  %v2286_v62 = vadd.f32 %v2688_v20, %v2285_v51  ;;  %v2419_v17 = vadd.f32 %v2689_v40, %v2418_v29 }
 0x1fe   :  { %v2287_v7 = vadd.f32 %v2690_v21, %v2286_v62  ;;  %v2420_v23 = vadd.f32 %v2691_v30, %v2419_v17 }
 0x1ff   :  { %v1604_v24 = vpop.f32.mrb[84].mxu0  ;;  %v1919_v36 = vpop.f32.mrb[82].mxu1 }
 0x200   :  { %2076 = vst.msk [vmem:[%s6347_s2 + $0x150] sm:$0xff] %vm2033_vm10, %v1604_v24  ;;  %2139 = vst.msk [vmem:[%s6347_s2 + $0x348] sm:$0xff] %vm2033_vm10, %v1919_v36  ;;  %v1606_v18 = vpop.f32.mrb[85].mxu0  ;;  %v1921_v33 = vpop.f32.mrb[83].mxu1  ;;  %v2288_v1 = vadd.f32 %v2692_v4, %v2287_v7  ;;  %v2421_v49 = vadd.f32 %v2693_v22, %v2420_v23 }
 0x202   :  { %v2289_v19 = vrot.slane %v2288_v1, 4  ;;  %v2422_v58 = vrot.slane %v2421_v49, 4 }
 0x203   :  { %v1609_v45 = vpop.f32.mrb[86].mxu0  ;;  %v1924_v43 = vpop.f32.mrb[84].mxu1 }
 0x204   :  { %2077 = vst.msk [vmem:[%s6347_s2 + $0x158] sm:$0xff] %vm2033_vm10, %v1609_v45  ;;  %2140 = vst.msk [vmem:[%s6347_s2 + $0x350] sm:$0xff] %vm2033_vm10, %v1924_v43  ;;  %v1611_v52 = vpop.f32.mrb[87].mxu0  ;;  %v1926_v10 = vpop.f32.mrb[85].mxu1  ;;  %v2290_v32 = vadd.f32 %v2289_v19, %v2288_v1  ;;  %v2423_v42 = vadd.f32 %v2422_v58, %v2421_v49 }
 0x206   :  { %v2291_v34 = vrot.slane %v2290_v32, 2  ;;  %v2424_v31 = vrot.slane %v2423_v42, 2 }
 0x207   :  { %v1614_v61 = vpop.f32.mrb[88].mxu0  ;;  %v1929_v35 = vpop.f32.mrb[86].mxu1 }
 0x208   :  { %2078 = vst.msk [vmem:[%s6347_s2 + $0x160] sm:$0xff] %vm2033_vm10, %v1614_v61  ;;  %2141 = vst.msk [vmem:[%s6347_s2 + $0x358] sm:$0xff] %vm2033_vm10, %v1929_v35  ;;  %v1616_v59 = vpop.f32.mrb[89].mxu0  ;;  %v1931_v54 = vpop.f32.mrb[87].mxu1  ;;  %v2292_v48 = vadd.f32 %v2291_v34, %v2290_v32  ;;  %v2425_v6 = vadd.f32 %v2424_v31, %v2423_v42 }
 0x20a   :  { %v2293_v44 = vrot.slane %v2292_v48, 1  ;;  %v2426_v55 = vrot.slane %v2425_v6, 1 }
 0x20b   :  { %v1619_v8 = vpop.f32.mrb[90].mxu0  ;;  %v1934_v27 = vpop.f32.mrb[88].mxu1 }
 0x20c   :  { %2079 = vst.msk [vmem:[%s6347_s2 + $0x168] sm:$0xff] %vm2033_vm10, %v1619_v8  ;;  %2142 = vst.msk [vmem:[%s6347_s2 + $0x360] sm:$0xff] %vm2033_vm10, %v1934_v27  ;;  %v1621_v60 = vpop.f32.mrb[91].mxu0  ;;  %v1936_v5 = vpop.f32.mrb[89].mxu1  ;;  %v2294_v38 = vadd.f32 %v2293_v44, %v2292_v48  ;;  %v2427_v11 = vadd.f32 %v2426_v55, %v2425_v6 }
 0x20e   :  { %2428 = vst [vmem:[%s6348_s3] sm:$0xff] %v2294_v38  ;;  %2429 = vst [vmem:[%s6348_s3 + $0x8] sm:$0xff] %v2427_v11 }
 0x20f   :  { %v1624_v53 = vpop.f32.mrb[92].mxu0  ;;  %v1939_v63 = vpop.f32.mrb[90].mxu1 }
 0x210   :  { %2080 = vst.msk [vmem:[%s6347_s2 + $0x170] sm:$0xff] %vm2033_vm10, %v1624_v53  ;;  %2143 = vst.msk [vmem:[%s6347_s2 + $0x368] sm:$0xff] %vm2033_vm10, %v1939_v63  ;;  %v1626_v16 = vpop.f32.mrb[93].mxu0  ;;  %v1941_v28 = vpop.f32.mrb[91].mxu1 }
 0x213   :  { %v1944_v26 = vpop.f32.mrb[92].mxu1  ;;  %v1629_v56 = vpop.f32.mrb[94].mxu0 }
 0x214   :  { %2144 = vst.msk [vmem:[%s6347_s2 + $0x370] sm:$0xff] %vm2033_vm10, %v1944_v26  ;;  %v1946_v39 = vpop.f32.mrb[93].mxu1  ;;  %2081 = vst.msk [vmem:[%s6347_s2 + $0x178] sm:$0xff] %vm2033_vm10, %v1629_v56  ;;  %v1631_v50 = vpop.f32.mrb[95].mxu0 }
 0x217   :  { %v1949_v0 = vpop.f32.mrb[94].mxu1  ;;  %v1634_v15 = vpop.f32.mrb[96].mxu0 }
 0x218   :  { %2145 = vst.msk [vmem:[%s6347_s2 + $0x378] sm:$0xff] %vm2033_vm10, %v1949_v0  ;;  %v1951_v9 = vpop.f32.mrb[95].mxu1  ;;  %2082 = vst.msk [vmem:[%s6347_s2 + $0x180] sm:$0xff] %vm2033_vm10, %v1634_v15  ;;  %v1636_v46 = vpop.f32.mrb[97].mxu0 }
 0x21b   :  { %v1954_v3 = vpop.f32.mrb[96].mxu1  ;;  %v1639_v57 = vpop.f32.mrb[98].mxu0 }
 0x21c   :  { %2146 = vst.msk [vmem:[%s6347_s2 + $0x380] sm:$0xff] %vm2033_vm10, %v1954_v3  ;;  %v1956_v37 = vpop.f32.mrb[97].mxu1  ;;  %2083 = vst.msk [vmem:[%s6347_s2 + $0x188] sm:$0xff] %vm2033_vm10, %v1639_v57  ;;  %v1641_v41 = vpop.f32.mrb[99].mxu0 }
 0x21f   :  { %v1959_v25 = vpop.f32.mrb[98].mxu1  ;;  %v1644_v47 = vpop.f32.mrb[100].mxu0 }
 0x220   :  { %2147 = vst.msk [vmem:[%s6347_s2 + $0x388] sm:$0xff] %vm2033_vm10, %v1959_v25  ;;  %v1961_v51 = vpop.f32.mrb[99].mxu1  ;;  %2084 = vst.msk [vmem:[%s6347_s2 + $0x190] sm:$0xff] %vm2033_vm10, %v1644_v47  ;;  %v1646_v29 = vpop.f32.mrb[101].mxu0 }
 0x223   :  { %v1964_v2 = vpop.f32.mrb[100].mxu1  ;;  %v1649_v13 = vpop.f32.mrb[102].mxu0 }
 0x224   :  { %2148 = vst.msk [vmem:[%s6347_s2 + $0x390] sm:$0xff] %vm2033_vm10, %v1964_v2  ;;  %v1966_v20 = vpop.f32.mrb[101].mxu1  ;;  %2085 = vst.msk [vmem:[%s6347_s2 + $0x198] sm:$0xff] %vm2033_vm10, %v1649_v13  ;;  %v1651_v40 = vpop.f32.mrb[103].mxu0 }
 0x227   :  { %v1969_v12 = vpop.f32.mrb[102].mxu1  ;;  %v1654_v14 = vpop.f32.mrb[104].mxu0 }
 0x228   :  { %2149 = vst.msk [vmem:[%s6347_s2 + $0x398] sm:$0xff] %vm2033_vm10, %v1969_v12  ;;  %v1971_v62 = vpop.f32.mrb[103].mxu1  ;;  %2086 = vst.msk [vmem:[%s6347_s2 + $0x1a0] sm:$0xff] %vm2033_vm10, %v1654_v14  ;;  %v1656_v17 = vpop.f32.mrb[105].mxu0 }
 0x22b   :  { %v1974_v21 = vpop.f32.mrb[104].mxu1  ;;  %v1659_v30 = vpop.f32.mrb[106].mxu0 }
 0x22c   :  { %2150 = vst.msk [vmem:[%s6347_s2 + $0x3a0] sm:$0xff] %vm2033_vm10, %v1974_v21  ;;  %v1976_v7 = vpop.f32.mrb[105].mxu1  ;;  %2087 = vst.msk [vmem:[%s6347_s2 + $0x1a8] sm:$0xff] %vm2033_vm10, %v1659_v30  ;;  %v1661_v23 = vpop.f32.mrb[107].mxu0 }
 0x22f   :  { %v1979_v24 = vpop.f32.mrb[106].mxu1  ;;  %v1664_v36 = vpop.f32.mrb[108].mxu0 }
 0x230   :  { %2151 = vst.msk [vmem:[%s6347_s2 + $0x3a8] sm:$0xff] %vm2033_vm10, %v1979_v24  ;;  %v1981_v4 = vpop.f32.mrb[107].mxu1  ;;  %2088 = vst.msk [vmem:[%s6347_s2 + $0x1b0] sm:$0xff] %vm2033_vm10, %v1664_v36  ;;  %v1666_v22 = vpop.f32.mrb[109].mxu0 }
 0x233   :  { %v1984_v18 = vpop.f32.mrb[108].mxu1  ;;  %v1669_v33 = vpop.f32.mrb[110].mxu0 }
 0x234   :  { %2152 = vst.msk [vmem:[%s6347_s2 + $0x3b0] sm:$0xff] %vm2033_vm10, %v1984_v18  ;;  %v1986_v1 = vpop.f32.mrb[109].mxu1  ;;  %2089 = vst.msk [vmem:[%s6347_s2 + $0x1b8] sm:$0xff] %vm2033_vm10, %v1669_v33  ;;  %v1671_v49 = vpop.f32.mrb[111].mxu0 }
 0x237   :  { %v1989_v19 = vpop.f32.mrb[110].mxu1  ;;  %v1674_v58 = vpop.f32.mrb[112].mxu0 }
 0x238   :  { %2153 = vst.msk [vmem:[%s6347_s2 + $0x3b8] sm:$0xff] %vm2033_vm10, %v1989_v19  ;;  %v1991_v45 = vpop.f32.mrb[111].mxu1  ;;  %2090 = vst.msk [vmem:[%s6347_s2 + $0x1c0] sm:$0xff] %vm2033_vm10, %v1674_v58  ;;  %v1676_v43 = vpop.f32.mrb[113].mxu0 }
 0x23b   :  { %v1994_v52 = vpop.f32.mrb[112].mxu1  ;;  %v1679_v10 = vpop.f32.mrb[114].mxu0 }
 0x23c   :  { %2154 = vst.msk [vmem:[%s6347_s2 + $0x3c0] sm:$0xff] %vm2033_vm10, %v1994_v52  ;;  %v1996_v32 = vpop.f32.mrb[113].mxu1  ;;  %2091 = vst.msk [vmem:[%s6347_s2 + $0x1c8] sm:$0xff] %vm2033_vm10, %v1679_v10  ;;  %v1681_v42 = vpop.f32.mrb[115].mxu0 }
 0x23f   :  { %v1999_v34 = vpop.f32.mrb[114].mxu1  ;;  %v1684_v31 = vpop.f32.mrb[116].mxu0 }
 0x240   :  { %2155 = vst.msk [vmem:[%s6347_s2 + $0x3c8] sm:$0xff] %vm2033_vm10, %v1999_v34  ;;  %v2001_v61 = vpop.f32.mrb[115].mxu1  ;;  %2092 = vst.msk [vmem:[%s6347_s2 + $0x1d0] sm:$0xff] %vm2033_vm10, %v1684_v31  ;;  %v1686_v35 = vpop.f32.mrb[117].mxu0 }
 0x243   :  { %v2004_v59 = vpop.f32.mrb[116].mxu1  ;;  %v1689_v54 = vpop.f32.mrb[118].mxu0 }
 0x244   :  { %2156 = vst.msk [vmem:[%s6347_s2 + $0x3d0] sm:$0xff] %vm2033_vm10, %v2004_v59  ;;  %v2006_v48 = vpop.f32.mrb[117].mxu1  ;;  %2093 = vst.msk [vmem:[%s6347_s2 + $0x1d8] sm:$0xff] %vm2033_vm10, %v1689_v54  ;;  %v1691_v6 = vpop.f32.mrb[119].mxu0 }
 0x247   :  { %v2009_v44 = vpop.f32.mrb[118].mxu1  ;;  %v1694_v55 = vpop.f32.mrb[120].mxu0 }
 0x248   :  { %2157 = vst.msk [vmem:[%s6347_s2 + $0x3d8] sm:$0xff] %vm2033_vm10, %v2009_v44  ;;  %v2011_v8 = vpop.f32.mrb[119].mxu1  ;;  %2094 = vst.msk [vmem:[%s6347_s2 + $0x1e0] sm:$0xff] %vm2033_vm10, %v1694_v55  ;;  %v1696_v27 = vpop.f32.mrb[121].mxu0 }
 0x24b   :  { %v2014_v60 = vpop.f32.mrb[120].mxu1  ;;  %v1699_v5 = vpop.f32.mrb[122].mxu0 }
 0x24c   :  { %2158 = vst.msk [vmem:[%s6347_s2 + $0x3e0] sm:$0xff] %vm2033_vm10, %v2014_v60  ;;  %v2016_v38 = vpop.f32.mrb[121].mxu1  ;;  %2095 = vst.msk [vmem:[%s6347_s2 + $0x1e8] sm:$0xff] %vm2033_vm10, %v1699_v5  ;;  %v1701_v11 = vpop.f32.mrb[123].mxu0 }
 0x24f   :  { %v2019_v53 = vpop.f32.mrb[122].mxu1  ;;  %v1704_v63 = vpop.f32.mrb[124].mxu0 }
 0x250   :  { %2159 = vst.msk [vmem:[%s6347_s2 + $0x3e8] sm:$0xff] %vm2033_vm10, %v2019_v53  ;;  %v2021_v16 = vpop.f32.mrb[123].mxu1  ;;  %2096 = vst.msk [vmem:[%s6347_s2 + $0x1f0] sm:$0xff] %vm2033_vm10, %v1704_v63  ;;  %v1706_v28 = vpop.f32.mrb[125].mxu0 }
 0x253   :  { %v2024_v26 = vpop.f32.mrb[124].mxu1  ;;  %v1709_v56 = vpop.f32.mrb[126].mxu0 }
 0x254   :  { %2160 = vst.msk [vmem:[%s6347_s2 + $0x3f0] sm:$0xff] %vm2033_vm10, %v2024_v26  ;;  %v2026_v39 = vpop.f32.mrb[125].mxu1  ;;  %2097 = vst.msk [vmem:[%s6347_s2 + $0x1f8] sm:$0xff] %vm2033_vm10, %v1709_v56  ;;  %v1711_v50 = vpop.f32.mrb[127].mxu0 }
 0x257   :  { %v2029_v0 = vpop.f32.mrb[126].mxu1 }
 0x258   :  { %2161 = vst.msk [vmem:[%s6347_s2 + $0x3f8] sm:$0xff] %vm2033_vm10, %v2029_v0  ;;  %v2031_v15 = vpop.f32.mrb[127].mxu1 }

</bundles_post_ra>
